<compile_context>
chip_gen: v6e
topology: v6e:2x2x1
jax: 0.10.0
libtpu: 0.0.40
codegen_flags: <defaults>
</compile_context>

<pallas_src>
import functools

import jax
import jax.numpy as jnp
from jax.experimental import pallas as pl
from jax.experimental.pallas import tpu as pltpu


def _round_up(x, m):
    return ((x + m - 1) // m) * m


def _vmem_limit_bytes(per_step_blocks, scratch_bytes=0):
    """Size the VMEM limit from actual tiles (double-buffered) + margin."""
    need = sum(2 * n * sz for n, sz in per_step_blocks)
    need += scratch_bytes + (4 << 20)
    return int(min(max(need, 8 << 20), 32 << 20))


def _m_tiling(M, tm_cap):
    """Pick an M tile that is a multiple of 8 and never exceeds the array.

    Returns (pad_rows, M_eff, tm). Rows are physically padded only when
    M < 8 (a <=7-row copy, FC head at tiny batch); otherwise the pl.cdiv grid
    handles the remainder with a partial last block.
    """
    if M < 8:
        return 8 - M, 8, 8
    if M >= tm_cap:
        return 0, M, tm_cap
    return 0, M, (M // 8) * 8


# ---------------------------------------------------------------------------
# Pallas kernel: tiled  relu?(X @ W + b)   (bf16 MXU inputs, f32 accumulate)
# Grid = (M tiles [parallel], K tiles [arbitrary, reduction innermost]).
# ---------------------------------------------------------------------------
def _gemm_bias_act_kernel(x_ref, w_ref, b_ref, o_ref, *scratch,
                          apply_relu, nk):
    part = jnp.dot(x_ref[...], w_ref[...], preferred_element_type=jnp.float32)

    def finalize(acc):
        r = acc + b_ref[...]
        if apply_relu:
            r = jnp.maximum(r, 0.0)
        o_ref[...] = r.astype(o_ref.dtype)

    if nk == 1:
        finalize(part)                       # single VMEM store, no scratch
    else:
        acc_ref = scratch[0]
        k = pl.program_id(1)

        @pl.when(k == 0)
        def _():
            acc_ref[...] = part

        @pl.when(jnp.logical_and(k > 0, k < nk - 1))
        def _():
            acc_ref[...] = acc_ref[...] + part

        @pl.when(k == nk - 1)
        def _():
            finalize(acc_ref[...] + part)    # bias+ReLU folded into last step


def matmul_bias_act(x, wp, bp, n_out, *, apply_relu, out_dtype, tm_cap):
    """y = relu?(x @ wp + bp)[:, :n_out]; wp (K_pad,N_pad) bf16, bp (1,N_pad) f32."""
    M, K_pad = x.shape
    N_pad = wp.shape[1]
    assert wp.shape[0] == K_pad and bp.shape == (1, N_pad) and n_out <= N_pad

    pad_rows, M_eff, tm = _m_tiling(M, tm_cap)
    if pad_rows:
        x = jnp.pad(x, ((0, pad_rows), (0, 0)))

    # K tiling: single step when the (tk, N_pad) weight block is small enough,
    # else a pipelined reduction (tk divides K_pad, which is 128-aligned).
    if K_pad <= 1024:
        tk = K_pad
    elif K_pad % 640 == 0:
        tk = 640
    elif K_pad % 512 == 0:
        tk = 512
    else:
        tk = 128
    nk = K_pad // tk

    kernel = functools.partial(_gemm_bias_act_kernel,
                               apply_relu=apply_relu, nk=nk)
    scratch = [pltpu.VMEM((tm, N_pad), jnp.float32)] if nk > 1 else []

    out = pl.pallas_call(
        kernel,
        out_shape=jax.ShapeDtypeStruct((M_eff, N_pad), out_dtype),
        grid_spec=pltpu.PrefetchScalarGridSpec(
            num_scalar_prefetch=0,
            grid=(pl.cdiv(M_eff, tm), nk),
            in_specs=[
                pl.BlockSpec((tm, tk), lambda i, k: (i, k)),
                pl.BlockSpec((tk, N_pad), lambda i, k: (k, 0)),
                pl.BlockSpec((1, N_pad), lambda i, k: (0, 0)),
            ],
            out_specs=pl.BlockSpec((tm, N_pad), lambda i, k: (i, 0)),
            scratch_shapes=scratch,
        ),
        compiler_params=pltpu.CompilerParams(
            dimension_semantics=("parallel", "arbitrary"),
            vmem_limit_bytes=_vmem_limit_bytes(
                [(tm * tk, 2), (tk * N_pad, 2), (N_pad, 4),
                 (tm * N_pad, jnp.dtype(out_dtype).itemsize)],
                scratch_bytes=(tm * N_pad * 4 if nk > 1 else 0)),
        ),
    )(x, wp, bp)

    out = out[:M] if M_eff != M else out
    return out[:, :n_out] if n_out != N_pad else out


# ---------------------------------------------------------------------------
# Fused FC head kernel:  out = (relu(X @ W4 + b4)) @ W5 + b5
# FC1 K axis is tiled/pipelined; the 512-wide hidden stays in VMEM.
# ---------------------------------------------------------------------------
def _fc_head_kernel(x_ref, w4_ref, b4_ref, w5_ref, b5_ref, o_ref, acc_ref, *,
                    nk):
    part = jnp.dot(x_ref[...], w4_ref[...], preferred_element_type=jnp.float32)

    def finalize(acc):
        h = jnp.maximum(acc + b4_ref[...], 0.0).astype(w5_ref.dtype)
        q = jnp.dot(h, w5_ref[...], preferred_element_type=jnp.float32)
        o_ref[...] = (q + b5_ref[...]).astype(o_ref.dtype)

    if nk == 1:
        finalize(part)
    else:
        k = pl.program_id(1)

        @pl.when(k == 0)
        def _():
            acc_ref[...] = part

        @pl.when(jnp.logical_and(k > 0, k < nk - 1))
        def _():
            acc_ref[...] = acc_ref[...] + part

        @pl.when(k == nk - 1)
        def _():
            finalize(acc_ref[...] + part)


def fc_head(x, w4p, b4p, w5p, b5p, n_actions, *, tm_cap=512, tk=640):
    M, K_pad = x.shape
    N1 = w4p.shape[1]                        # 512 (FC1 width)
    N2 = w5p.shape[1]                        # 128 (padded action count)
    assert w4p.shape[0] == K_pad and w5p.shape[0] == N1
    assert K_pad % tk == 0
    nk = K_pad // tk

    pad_rows, M_eff, tm = _m_tiling(M, tm_cap)
    if pad_rows:
        x = jnp.pad(x, ((0, pad_rows), (0, 0)))

    out = pl.pallas_call(
        functools.partial(_fc_head_kernel, nk=nk),
        out_shape=jax.ShapeDtypeStruct((M_eff, N2), jnp.float32),
        grid_spec=pltpu.PrefetchScalarGridSpec(
            num_scalar_prefetch=0,
            grid=(pl.cdiv(M_eff, tm), nk),
            in_specs=[
                pl.BlockSpec((tm, tk), lambda i, k: (i, k)),
                pl.BlockSpec((tk, N1), lambda i, k: (k, 0)),
                pl.BlockSpec((1, N1), lambda i, k: (0, 0)),
                pl.BlockSpec((N1, N2), lambda i, k: (0, 0)),
                pl.BlockSpec((1, N2), lambda i, k: (0, 0)),
            ],
            out_specs=pl.BlockSpec((tm, N2), lambda i, k: (i, 0)),
            scratch_shapes=[pltpu.VMEM((tm, N1), jnp.float32)],
        ),
        compiler_params=pltpu.CompilerParams(
            dimension_semantics=("parallel", "arbitrary"),
            vmem_limit_bytes=_vmem_limit_bytes(
                [(tm * tk, 2), (tk * N1, 2), (N1, 4),
                 (N1 * N2, 2), (N2, 4), (tm * N2, 4)],
                scratch_bytes=tm * N1 * 4),
        ),
    )(x, w4p, b4p, w5p, b5p)

    out = out[:M] if M_eff != M else out
    return out[:, :n_actions]


# ---------------------------------------------------------------------------
# Conv as im2col (plain-JAX glue) + Pallas GEMM
# ---------------------------------------------------------------------------
def conv2d_relu(x_nhwc, wp, bp, *, kh, kw, n_out, stride, tm_cap):
    N, H, W, C = x_nhwc.shape
    oh = (H - kh) // stride + 1
    ow = (W - kw) // stride + 1
    K = kh * kw * C
    K_pad = wp.shape[0]

    # im2col in (kh, kw, C) order (channel fastest) — matches the (2,3,1,0)
    # weight transpose in prepare_params(). K padding (conv3: 576 -> 640) is
    # built directly into the concatenate, so no extra padded copy.
    # TODO(synk): form the patches inside the kernel (manual DMA over (oh,ow)
    #             tiles of the raw NHWC input) to avoid the kh*kw HBM expansion.
    patches = []
    for i in range(kh):
        for j in range(kw):
            patches.append(
                x_nhwc[:, i:i + stride * oh:stride, j:j + stride * ow:stride, :])
    if K_pad > K:
        patches.append(jnp.zeros((N, oh, ow, K_pad - K), x_nhwc.dtype))
    p = jnp.concatenate(patches, axis=-1).reshape(N * oh * ow, K_pad)

    y = matmul_bias_act(p, wp, bp, n_out, apply_relu=True,
                        out_dtype=jnp.bfloat16, tm_cap=tm_cap)
    return y.reshape(N, oh, ow, n_out)


# ---------------------------------------------------------------------------
# One-time parameter preparation (hoisted out of the forward path)
# ---------------------------------------------------------------------------
def prepare_params(params):
    """PyTorch-layout params -> padded bf16 GEMM operands, computed once.

    - conv weights (O,C,kh,kw) -> (kh*kw*C, O) matching im2col patch order
    - the 1/255 input scaling is folded into w1
    - w4's columns are permuted so FC1 consumes the natural NHWC flatten
    - weights zero-padded to multiples of 128 and cast to bf16 (MXU inputs);
      biases kept in f32 for the epilogue.
    """
    def conv_mat(w, scale=1.0):
        O, C, kh, kw = w.shape
        return jnp.transpose(w * jnp.float32(scale), (2, 3, 1, 0)).reshape(
            kh * kw * C, O)

    def pack(m, b):
        K, N = m.shape
        k_pad = _round_up(K, 128)
        n_pad = _round_up(max(N, 128), 128)
        mp = jnp.zeros((k_pad, n_pad), jnp.bfloat16).at[:K, :N].set(
            m.astype(jnp.bfloat16))
        bp = jnp.zeros((1, n_pad), jnp.float32).at[0, :N].set(
            b.astype(jnp.float32))
        return mp, bp

    w1m, b1p = pack(conv_mat(params["w1"], 1.0 / 255.0), params["b1"])
    w2m, b2p = pack(conv_mat(params["w2"]), params["b2"])
    w3m, b3p = pack(conv_mat(params["w3"]), params["b3"])

    # FC1: permute (c,h,w)-ordered columns to the NHWC (h,w,c) flatten order.
    w4 = params["w4"]                                        # (512, 3136)
    w4_nhwc = jnp.transpose(w4.reshape(512, 64, 7, 7),
                            (0, 2, 3, 1)).reshape(512, 3136)
    w4m, b4p = pack(w4_nhwc.T, params["b4"])

    w5m, b5p = pack(params["w5"].T, params["b5"])

    return dict(w1m=w1m, b1p=b1p, w2m=w2m, b2p=b2p, w3m=w3m, b3p=b3p,
                w4m=w4m, b4p=b4p, w5m=w5m, b5p=b5p)


# ---------------------------------------------------------------------------
# Full DeepQModel forward
# ---------------------------------------------------------------------------
@functools.partial(jax.jit, static_argnames=("n_actions",))
def deep_q_forward(x_nchw, pp, n_actions=6):
    # NCHW (PyTorch) -> NHWC bf16; the /255 is folded into w1.
    x = jnp.transpose(x_nchw, (0, 2, 3, 1)).astype(jnp.bfloat16)

    h = conv2d_relu(x, pp["w1m"], pp["b1p"], kh=8, kw=8, n_out=32, stride=4,
                    tm_cap=256)
    h = conv2d_relu(h, pp["w2m"], pp["b2p"], kh=4, kw=4, n_out=64, stride=2,
                    tm_cap=128)
    h = conv2d_relu(h, pp["w3m"], pp["b3p"], kh=3, kw=3, n_out=64, stride=1,
                    tm_cap=128)

    # Natural NHWC flatten (w4 columns were pre-permuted to match) and K pad
    # 3136 -> 3200 (the extra w4 rows are zero).
    n = h.shape[0]
    h = h.reshape(n, -1)
    k_pad = pp["w4m"].shape[0]
    if k_pad > h.shape[1]:
        h = jnp.concatenate(
            [h, jnp.zeros((n, k_pad - h.shape[1]), h.dtype)], axis=1)

    # Fused FC1 (K-tiled) + ReLU + FC2 head: hidden layer never leaves VMEM.
    return fc_head(h, pp["w4m"], pp["b4p"], pp["w5m"], pp["b5p"], n_actions)


# ---------------------------------------------------------------------------
# Pure-JAX reference (for correctness check)
# ---------------------------------------------------------------------------
def deep_q_reference(x_nchw, params):
    x = x_nchw.astype(jnp.float32) / 255.0

    def conv(x, w, b, stride):
        y = jax.lax.conv_general_dilated(
            x, w, window_strides=(stride, stride), padding="VALID",
            dimension_numbers=("NCHW", "OIHW", "NCHW"))
        return jax.nn.relu(y + b[None, :, None, None])

    h = conv(x, params["w1"], params["b1"], 4)
    h = conv(h, params["w2"], params["b2"], 2)
    h = conv(h, params["w3"], params["b3"], 1)
    h = h.reshape(h.shape[0], -1)
    h = jax.nn.relu(h @ params["w4"].T + params["b4"])
    return h @ params["w5"].T + params["b5"]


# ---------------------------------------------------------------------------
# Deterministic synthetic parameters (PyTorch shapes)
# ---------------------------------------------------------------------------
def init_params(key, action_count=6):
    ks = jax.random.split(key, 10)

    def w(k, shape, fan_in):
        return jax.random.normal(k, shape, jnp.float32) / jnp.sqrt(fan_in)

    return {
        "w1": w(ks[0], (32, 4, 8, 8), 4 * 8 * 8),
        "b1": 0.01 * jax.random.normal(ks[1], (32,), jnp.float32),
        "w2": w(ks[2], (64, 32, 4, 4), 32 * 4 * 4),
        "b2": 0.01 * jax.random.normal(ks[3], (64,), jnp.float32),
        "w3": w(ks[4], (64, 64, 3, 3), 64 * 3 * 3),
        "b3": 0.01 * jax.random.normal(ks[5], (64,), jnp.float32),
        "w4": w(ks[6], (512, 3136), 3136),
        "b4": 0.01 * jax.random.normal(ks[7], (512,), jnp.float32),
        "w5": w(ks[8], (action_count, 512), 512),
        "b5": 0.01 * jax.random.normal(ks[9], (action_count,), jnp.float32),
    }


if __name__ == "__main__":
    key = jax.random.PRNGKey(0)
    k_params, k_x = jax.random.split(key)

    params = init_params(k_params, action_count=6)
    prepped = prepare_params(params)   # one-time, outside the per-step path

    # Spatial size must be 84x84 so the flatten yields 3136 (Linear input).
    x = jax.random.uniform(k_x, (2, 4, 84, 84), jnp.float32,
                           minval=0.0, maxval=255.0)

    out = jax.block_until_ready(deep_q_forward(x, prepped, n_actions=6))
    ref = jax.block_until_ready(deep_q_reference(x, params))

    assert out.shape == (2, 6), out.shape
    err = float(jnp.max(jnp.abs(out - ref)))
    # bf16 MXU inputs (f32 accumulation/epilogue) -> slightly looser tolerance.
    assert jnp.allclose(out, ref, rtol=3e-2, atol=3e-2), (
        "mismatch vs f32 reference: max abs err = %f" % err)

    print("KERNEL_OK")
</pallas_src>

<mosaic_0001>
module attributes {stable_mosaic.version = 11 : i64} {
  func.func @_gemm_bias_act_kernel(%arg0: i32, %arg1: i32, %arg2: memref<256x256xbf16, #tpu.memory_space<vmem>>, %arg3: memref<256x128xbf16, #tpu.memory_space<vmem>>, %arg4: memref<1x128xf32, #tpu.memory_space<vmem>>, %arg5: memref<256x128xbf16, #tpu.memory_space<vmem>>) attributes {dimension_semantics = [#tpu.dimension_semantics<parallel>, #tpu.dimension_semantics<arbitrary>], iteration_bounds = array<i64: 4, 1>, scalar_prefetch = 0 : i64, scratch_operands = 0 : i64, tpu.core_type = #tpu.core_type<tc>, window_params = [{transform_indices = @transform_0, window_bounds = array<i64: 256, 256>}, {transform_indices = @transform_1, window_bounds = array<i64: 256, 128>}, {pipeline_mode = #tpu.pipeline_mode<synchronous>, transform_indices = @transform_2, window_bounds = array<i64: 1, 128>}, {transform_indices = @transform_3, window_bounds = array<i64: 256, 128>}]} {
    %c0 = arith.constant 0 : index
    %c0_0 = arith.constant 0 : index
    %0 = vector.load %arg2[%c0, %c0_0] : memref<256x256xbf16, #tpu.memory_space<vmem>>, vector<256x256xbf16>
    %c0_1 = arith.constant 0 : index
    %c0_2 = arith.constant 0 : index
    %1 = vector.load %arg3[%c0_1, %c0_2] : memref<256x128xbf16, #tpu.memory_space<vmem>>, vector<256x128xbf16>
    %cst = arith.constant dense<0.000000e+00> : vector<256x128xf32>
    %2 = tpu.matmul %0, %1, %cst {dimension_numbers = #tpu.dot_dimension_numbers<[1], [0], [0], [1], [0, 0, 1, 1], [], []>} : vector<256x256xbf16>, vector<256x128xbf16>, vector<256x128xf32> -> vector<256x128xf32>
    %c0_3 = arith.constant 0 : index
    %c0_4 = arith.constant 0 : index
    %3 = vector.load %arg4[%c0_3, %c0_4] : memref<1x128xf32, #tpu.memory_space<vmem>>, vector<1x128xf32>
    %4 = vector.broadcast %3 : vector<1x128xf32> to vector<256x128xf32>
    %5 = arith.addf %2, %4 : vector<256x128xf32>
    %cst_5 = arith.constant 0.000000e+00 : f32
    %6 = vector.broadcast %cst_5 : f32 to vector<256x128xf32>
    %7 = arith.maximumf %5, %6 : vector<256x128xf32>
    %8 = arith.truncf %7 : vector<256x128xf32> to vector<256x128xbf16>
    %c0_6 = arith.constant 0 : index
    %c0_7 = arith.constant 0 : index
    %9 = vector.load %arg5[%c0_6, %c0_7] : memref<256x128xbf16, #tpu.memory_space<vmem>>, vector<256x128xbf16>
    tpu.vector_store %arg5[%c0_6, %c0_7], %8 {strides = array<i32>} : memref<256x128xbf16, #tpu.memory_space<vmem>>, vector<256x128xbf16>,
    return
  }
  func.func @transform_0(%arg0: i32, %arg1: i32) -> (i32, i32) {
    %c0_i32 = arith.constant 0 : i32
    return %arg0, %arg1 : i32, i32
  }
  func.func @transform_1(%arg0: i32, %arg1: i32) -> (i32, i32) {
    %c0_i32 = arith.constant 0 : i32
    %c0_i32_0 = arith.constant 0 : i32
    return %arg1, %c0_i32 : i32, i32
  }
  func.func @transform_2(%arg0: i32, %arg1: i32) -> (i32, i32) {
    %c0_i32 = arith.constant 0 : i32
    %c0_i32_0 = arith.constant 0 : i32
    %c0_i32_1 = arith.constant 0 : i32
    return %c0_i32, %c0_i32_0 : i32, i32
  }
  func.func @transform_3(%arg0: i32, %arg1: i32) -> (i32, i32) {
    %c0_i32 = arith.constant 0 : i32
    %c0_i32_0 = arith.constant 0 : i32
    return %arg0, %c0_i32 : i32, i32
  }
}

module attributes {stable_mosaic.version = 11 : i64} {
  func.func @_gemm_bias_act_kernel(%arg0: i32, %arg1: i32, %arg2: memref<128x512xbf16, #tpu.memory_space<vmem>>, %arg3: memref<512x128xbf16, #tpu.memory_space<vmem>>, %arg4: memref<1x128xf32, #tpu.memory_space<vmem>>, %arg5: memref<128x128xbf16, #tpu.memory_space<vmem>>) attributes {dimension_semantics = [#tpu.dimension_semantics<parallel>, #tpu.dimension_semantics<arbitrary>], iteration_bounds = array<i64: 2, 1>, scalar_prefetch = 0 : i64, scratch_operands = 0 : i64, tpu.core_type = #tpu.core_type<tc>, window_params = [{transform_indices = @transform_0, window_bounds = array<i64: 128, 512>}, {transform_indices = @transform_1, window_bounds = array<i64: 512, 128>}, {pipeline_mode = #tpu.pipeline_mode<synchronous>, transform_indices = @transform_2, window_bounds = array<i64: 1, 128>}, {transform_indices = @transform_3, window_bounds = array<i64: 128, 128>}]} {
    %c0 = arith.constant 0 : index
    %c0_0 = arith.constant 0 : index
    %0 = vector.load %arg2[%c0, %c0_0] : memref<128x512xbf16, #tpu.memory_space<vmem>>, vector<128x512xbf16>
    %c0_1 = arith.constant 0 : index
    %c0_2 = arith.constant 0 : index
    %1 = vector.load %arg3[%c0_1, %c0_2] : memref<512x128xbf16, #tpu.memory_space<vmem>>, vector<512x128xbf16>
    %cst = arith.constant dense<0.000000e+00> : vector<128x128xf32>
    %2 = tpu.matmul %0, %1, %cst {dimension_numbers = #tpu.dot_dimension_numbers<[1], [0], [0], [1], [0, 0, 1, 1], [], []>} : vector<128x512xbf16>, vector<512x128xbf16>, vector<128x128xf32> -> vector<128x128xf32>
    %c0_3 = arith.constant 0 : index
    %c0_4 = arith.constant 0 : index
    %3 = vector.load %arg4[%c0_3, %c0_4] : memref<1x128xf32, #tpu.memory_space<vmem>>, vector<1x128xf32>
    %4 = vector.broadcast %3 : vector<1x128xf32> to vector<128x128xf32>
    %5 = arith.addf %2, %4 : vector<128x128xf32>
    %cst_5 = arith.constant 0.000000e+00 : f32
    %6 = vector.broadcast %cst_5 : f32 to vector<128x128xf32>
    %7 = arith.maximumf %5, %6 : vector<128x128xf32>
    %8 = arith.truncf %7 : vector<128x128xf32> to vector<128x128xbf16>
    %c0_6 = arith.constant 0 : index
    %c0_7 = arith.constant 0 : index
    %9 = vector.load %arg5[%c0_6, %c0_7] : memref<128x128xbf16, #tpu.memory_space<vmem>>, vector<128x128xbf16>
    tpu.vector_store %arg5[%c0_6, %c0_7], %8 {strides = array<i32>} : memref<128x128xbf16, #tpu.memory_space<vmem>>, vector<128x128xbf16>,
    return
  }
  func.func @transform_0(%arg0: i32, %arg1: i32) -> (i32, i32) {
    %c0_i32 = arith.constant 0 : i32
    return %arg0, %arg1 : i32, i32
  }
  func.func @transform_1(%arg0: i32, %arg1: i32) -> (i32, i32) {
    %c0_i32 = arith.constant 0 : i32
    %c0_i32_0 = arith.constant 0 : i32
    return %arg1, %c0_i32 : i32, i32
  }
  func.func @transform_2(%arg0: i32, %arg1: i32) -> (i32, i32) {
    %c0_i32 = arith.constant 0 : i32
    %c0_i32_0 = arith.constant 0 : i32
    %c0_i32_1 = arith.constant 0 : i32
    return %c0_i32, %c0_i32_0 : i32, i32
  }
  func.func @transform_3(%arg0: i32, %arg1: i32) -> (i32, i32) {
    %c0_i32 = arith.constant 0 : i32
    %c0_i32_0 = arith.constant 0 : i32
    return %arg0, %c0_i32 : i32, i32
  }
}

module attributes {stable_mosaic.version = 11 : i64} {
  func.func @_gemm_bias_act_kernel(%arg0: i32, %arg1: i32, %arg2: memref<96x640xbf16, #tpu.memory_space<vmem>>, %arg3: memref<640x128xbf16, #tpu.memory_space<vmem>>, %arg4: memref<1x128xf32, #tpu.memory_space<vmem>>, %arg5: memref<96x128xbf16, #tpu.memory_space<vmem>>) attributes {dimension_semantics = [#tpu.dimension_semantics<parallel>, #tpu.dimension_semantics<arbitrary>], iteration_bounds = array<i64: 2, 1>, scalar_prefetch = 0 : i64, scratch_operands = 0 : i64, tpu.core_type = #tpu.core_type<tc>, window_params = [{transform_indices = @transform_0, window_bounds = array<i64: 96, 640>}, {transform_indices = @transform_1, window_bounds = array<i64: 640, 128>}, {pipeline_mode = #tpu.pipeline_mode<synchronous>, transform_indices = @transform_2, window_bounds = array<i64: 1, 128>}, {transform_indices = @transform_3, window_bounds = array<i64: 96, 128>}]} {
    %c0 = arith.constant 0 : index
    %c0_0 = arith.constant 0 : index
    %0 = vector.load %arg2[%c0, %c0_0] : memref<96x640xbf16, #tpu.memory_space<vmem>>, vector<96x640xbf16>
    %c0_1 = arith.constant 0 : index
    %c0_2 = arith.constant 0 : index
    %1 = vector.load %arg3[%c0_1, %c0_2] : memref<640x128xbf16, #tpu.memory_space<vmem>>, vector<640x128xbf16>
    %cst = arith.constant dense<0.000000e+00> : vector<96x128xf32>
    %2 = tpu.matmul %0, %1, %cst {dimension_numbers = #tpu.dot_dimension_numbers<[1], [0], [0], [1], [0, 0, 1, 1], [], []>} : vector<96x640xbf16>, vector<640x128xbf16>, vector<96x128xf32> -> vector<96x128xf32>
    %c0_3 = arith.constant 0 : index
    %c0_4 = arith.constant 0 : index
    %3 = vector.load %arg4[%c0_3, %c0_4] : memref<1x128xf32, #tpu.memory_space<vmem>>, vector<1x128xf32>
    %4 = vector.broadcast %3 : vector<1x128xf32> to vector<96x128xf32>
    %5 = arith.addf %2, %4 : vector<96x128xf32>
    %cst_5 = arith.constant 0.000000e+00 : f32
    %6 = vector.broadcast %cst_5 : f32 to vector<96x128xf32>
    %7 = arith.maximumf %5, %6 : vector<96x128xf32>
    %8 = arith.truncf %7 : vector<96x128xf32> to vector<96x128xbf16>
    %c0_6 = arith.constant 0 : index
    %c0_7 = arith.constant 0 : index
    %9 = vector.load %arg5[%c0_6, %c0_7] : memref<96x128xbf16, #tpu.memory_space<vmem>>, vector<96x128xbf16>
    tpu.vector_store %arg5[%c0_6, %c0_7], %8 {strides = array<i32>} : memref<96x128xbf16, #tpu.memory_space<vmem>>, vector<96x128xbf16>,
    return
  }
  func.func @transform_0(%arg0: i32, %arg1: i32) -> (i32, i32) {
    %c0_i32 = arith.constant 0 : i32
    return %arg0, %arg1 : i32, i32
  }
  func.func @transform_1(%arg0: i32, %arg1: i32) -> (i32, i32) {
    %c0_i32 = arith.constant 0 : i32
    %c0_i32_0 = arith.constant 0 : i32
    return %arg1, %c0_i32 : i32, i32
  }
  func.func @transform_2(%arg0: i32, %arg1: i32) -> (i32, i32) {
    %c0_i32 = arith.constant 0 : i32
    %c0_i32_0 = arith.constant 0 : i32
    %c0_i32_1 = arith.constant 0 : i32
    return %c0_i32, %c0_i32_0 : i32, i32
  }
  func.func @transform_3(%arg0: i32, %arg1: i32) -> (i32, i32) {
    %c0_i32 = arith.constant 0 : i32
    %c0_i32_0 = arith.constant 0 : i32
    return %arg0, %c0_i32 : i32, i32
  }
}

module attributes {stable_mosaic.version = 11 : i64} {
  func.func @_fc_head_kernel(%arg0: i32, %arg1: i32, %arg2: memref<8x640xbf16, #tpu.memory_space<vmem>>, %arg3: memref<640x512xbf16, #tpu.memory_space<vmem>>, %arg4: memref<1x512xf32, #tpu.memory_space<vmem>>, %arg5: memref<512x128xbf16, #tpu.memory_space<vmem>>, %arg6: memref<1x128xf32, #tpu.memory_space<vmem>>, %arg7: memref<8x128xf32, #tpu.memory_space<vmem>>, %arg8: memref<8x512xf32, #tpu.memory_space<vmem>>) attributes {dimension_semantics = [#tpu.dimension_semantics<parallel>, #tpu.dimension_semantics<arbitrary>], iteration_bounds = array<i64: 1, 5>, scalar_prefetch = 0 : i64, scratch_operands = 1 : i64, tpu.core_type = #tpu.core_type<tc>, window_params = [{transform_indices = @transform_0, window_bounds = array<i64: 8, 640>}, {transform_indices = @transform_1, window_bounds = array<i64: 640, 512>}, {pipeline_mode = #tpu.pipeline_mode<synchronous>, transform_indices = @transform_2, window_bounds = array<i64: 1, 512>}, {pipeline_mode = #tpu.pipeline_mode<synchronous>, transform_indices = @transform_3, window_bounds = array<i64: 512, 128>}, {pipeline_mode = #tpu.pipeline_mode<synchronous>, transform_indices = @transform_4, window_bounds = array<i64: 1, 128>}, {transform_indices = @transform_5, window_bounds = array<i64: 8, 128>}]} {
    %c0 = arith.constant 0 : index
    %c0_0 = arith.constant 0 : index
    %0 = vector.load %arg2[%c0, %c0_0] : memref<8x640xbf16, #tpu.memory_space<vmem>>, vector<8x640xbf16>
    %c0_1 = arith.constant 0 : index
    %c0_2 = arith.constant 0 : index
    %1 = vector.load %arg3[%c0_1, %c0_2] : memref<640x512xbf16, #tpu.memory_space<vmem>>, vector<640x512xbf16>
    %cst = arith.constant dense<0.000000e+00> : vector<8x512xf32>
    %2 = tpu.matmul %0, %1, %cst {dimension_numbers = #tpu.dot_dimension_numbers<[1], [0], [0], [1], [0, 0, 1, 1], [], []>} : vector<8x640xbf16>, vector<640x512xbf16>, vector<8x512xf32> -> vector<8x512xf32>
    %c0_i32 = arith.constant 0 : i32
    %3 = arith.cmpi eq, %arg1, %c0_i32 : i32
    %4 = arith.extui %3 : i1 to i32
    %c0_i32_3 = arith.constant 0 : i32
    %5 = arith.cmpi ne, %4, %c0_i32_3 : i32
    scf.if %5 {
      %c0_8 = arith.constant 0 : index
      %c0_9 = arith.constant 0 : index
      %14 = vector.load %arg8[%c0_8, %c0_9] : memref<8x512xf32, #tpu.memory_space<vmem>>, vector<8x512xf32>
      tpu.vector_store %arg8[%c0_8, %c0_9], %2 {strides = array<i32>} : memref<8x512xf32, #tpu.memory_space<vmem>>, vector<8x512xf32>,
    } else {
    }
    %c0_i32_4 = arith.constant 0 : i32
    %6 = arith.cmpi sgt, %arg1, %c0_i32_4 : i32
    %c4_i32 = arith.constant 4 : i32
    %7 = arith.cmpi slt, %arg1, %c4_i32 : i32
    %8 = arith.andi %6, %7 : i1
    %9 = arith.extui %8 : i1 to i32
    %c0_i32_5 = arith.constant 0 : i32
    %10 = arith.cmpi ne, %9, %c0_i32_5 : i32
    scf.if %10 {
      %c0_8 = arith.constant 0 : index
      %c0_9 = arith.constant 0 : index
      %14 = vector.load %arg8[%c0_8, %c0_9] : memref<8x512xf32, #tpu.memory_space<vmem>>, vector<8x512xf32>
      %15 = arith.addf %14, %2 : vector<8x512xf32>
      %c0_10 = arith.constant 0 : index
      %c0_11 = arith.constant 0 : index
      %16 = vector.load %arg8[%c0_10, %c0_11] : memref<8x512xf32, #tpu.memory_space<vmem>>, vector<8x512xf32>
      tpu.vector_store %arg8[%c0_10, %c0_11], %15 {strides = array<i32>} : memref<8x512xf32, #tpu.memory_space<vmem>>, vector<8x512xf32>,
    } else {
    }
    %c4_i32_6 = arith.constant 4 : i32
    %11 = arith.cmpi eq, %arg1, %c4_i32_6 : i32
    %12 = arith.extui %11 : i1 to i32
    %c0_i32_7 = arith.constant 0 : i32
    %13 = arith.cmpi ne, %12, %c0_i32_7 : i32
    scf.if %13 {
      %c0_8 = arith.constant 0 : index
      %c0_9 = arith.constant 0 : index
      %14 = vector.load %arg8[%c0_8, %c0_9] : memref<8x512xf32, #tpu.memory_space<vmem>>, vector<8x512xf32>
      %15 = arith.addf %14, %2 : vector<8x512xf32>
      %c0_10 = arith.constant 0 : index
      %c0_11 = arith.constant 0 : index
      %16 = vector.load %arg4[%c0_10, %c0_11] : memref<1x512xf32, #tpu.memory_space<vmem>>, vector<1x512xf32>
      %17 = vector.broadcast %16 : vector<1x512xf32> to vector<8x512xf32>
      %18 = arith.addf %15, %17 : vector<8x512xf32>
      %cst_12 = arith.constant 0.000000e+00 : f32
      %19 = vector.broadcast %cst_12 : f32 to vector<8x512xf32>
      %20 = arith.maximumf %18, %19 : vector<8x512xf32>
      %21 = arith.truncf %20 : vector<8x512xf32> to vector<8x512xbf16>
      %c0_13 = arith.constant 0 : index
      %c0_14 = arith.constant 0 : index
      %22 = vector.load %arg5[%c0_13, %c0_14] : memref<512x128xbf16, #tpu.memory_space<vmem>>, vector<512x128xbf16>
      %cst_15 = arith.constant dense<0.000000e+00> : vector<8x128xf32>
      %23 = tpu.matmul %21, %22, %cst_15 {dimension_numbers = #tpu.dot_dimension_numbers<[1], [0], [0], [1], [0, 0, 1, 1], [], []>} : vector<8x512xbf16>, vector<512x128xbf16>, vector<8x128xf32> -> vector<8x128xf32>
      %c0_16 = arith.constant 0 : index
      %c0_17 = arith.constant 0 : index
      %24 = vector.load %arg6[%c0_16, %c0_17] : memref<1x128xf32, #tpu.memory_space<vmem>>, vector<1x128xf32>
      %25 = vector.broadcast %24 : vector<1x128xf32> to vector<8x128xf32>
      %26 = arith.addf %23, %25 : vector<8x128xf32>
      %c0_18 = arith.constant 0 : index
      %c0_19 = arith.constant 0 : index
      %27 = vector.load %arg7[%c0_18, %c0_19] : memref<8x128xf32, #tpu.memory_space<vmem>>, vector<8x128xf32>
      tpu.vector_store %arg7[%c0_18, %c0_19], %26 {strides = array<i32>} : memref<8x128xf32, #tpu.memory_space<vmem>>, vector<8x128xf32>,
    } else {
    }
    return
  }
  func.func @transform_0(%arg0: i32, %arg1: i32) -> (i32, i32) {
    %c0_i32 = arith.constant 0 : i32
    return %arg0, %arg1 : i32, i32
  }
  func.func @transform_1(%arg0: i32, %arg1: i32) -> (i32, i32) {
    %c0_i32 = arith.constant 0 : i32
    %c0_i32_0 = arith.constant 0 : i32
    return %arg1, %c0_i32 : i32, i32
  }
  func.func @transform_2(%arg0: i32, %arg1: i32) -> (i32, i32) {
    %c0_i32 = arith.constant 0 : i32
    %c0_i32_0 = arith.constant 0 : i32
    %c0_i32_1 = arith.constant 0 : i32
    return %c0_i32, %c0_i32_0 : i32, i32
  }
  func.func @transform_3(%arg0: i32, %arg1: i32) -> (i32, i32) {
    %c0_i32 = arith.constant 0 : i32
    %c0_i32_0 = arith.constant 0 : i32
    %c0_i32_1 = arith.constant 0 : i32
    return %c0_i32, %c0_i32_0 : i32, i32
  }
  func.func @transform_4(%arg0: i32, %arg1: i32) -> (i32, i32) {
    %c0_i32 = arith.constant 0 : i32
    %c0_i32_0 = arith.constant 0 : i32
    %c0_i32_1 = arith.constant 0 : i32
    return %c0_i32, %c0_i32_0 : i32, i32
  }
  func.func @transform_5(%arg0: i32, %arg1: i32) -> (i32, i32) {
    %c0_i32 = arith.constant 0 : i32
    %c0_i32_0 = arith.constant 0 : i32
    return %arg0, %c0_i32 : i32, i32
  }
}

</mosaic_0001>

<bundles_post_ra>
// kernel: deep_q_forward.4
= control target key start
LH: loop header
LB: loop body
LE: loop exit
PB: predicated region body
PF: predicated region fallthrough
CT: control target
= control target key end

     0   :  { %s1959_s12 = smov 0   ;;  %s1961_s13 = smov 0   ;;  %s2288_s0 = inlined_call_operand.vmem [shape: bf16[800,256], index: 0, kind: input, shape index: {}]   ;;  %s2289_s1 = inlined_call_operand.vmem [shape: bf16[256,128], index: 1, kind: input, shape index: {}]   ;;  %s2290_s2 = inlined_call_operand.vmem [shape: f32[1,128], index: 2, kind: input, shape index: {}]   ;;  %s2291_s3 = inlined_call_operand.vmem [shape: bf16[800,128], index: 3, kind: output, shape index: {}]  }
   0x1   :  { %s1963_s14 = smov 0   ;;  %s1965_s15 = smov 0  }
   0x2   :  { %s1967_s16 = smov 0  }
   0x3 LB: > { %s1300_s17 = sadd.s32 4294967295, %s1905_s16   ;;  %s25_s18 = sadd.s32 1, %s1901_s15  ;;  %s1905_s16 = sphi %s1967_s16, %s13_s16   ;;  %s1901_s15 = sphi %s1965_s15, %s2299_s15   ;;  %s1897_s14 = sphi %s1963_s14, %s2298_s14   ;;  %s1893_s13 = sphi %s1961_s13, %s2297_s13   ;;  %s1889_s12 = sphi %s1959_s12, %s2296_s12  }
   0x4   : > { %p27_p0 = scmp.ge.s32.totalorder %s25_s18, 4  ;;  %s107_s19 = sadd.s32 1, %s1893_s13 }
   0x5   : > { %p117_p1 = scmp.ne.s32.totalorder %s1893_s13, %s1889_s12  ;;  %p118_p2 = scmp.eq.s32.totalorder %s1300_s17, 3 }
   0x6   : > { %s2301_s18 = smov (%p27_p0, %s25_s18), 0  ;;  %p1305_p4 = scmp.ge.s32.totalorder %s1905_s16, 1 }
   0x7   : > { %p1991_p3 = por %p118_p2, %p117_p1  ;;  %s104_s21 = ssub.s32 %s1901_s15, %s2301_s18 }
   0x8   : > { %p179_p5 = scmp.lt.s32.totalorder %s1905_s16, 5  ;;  %p105_p6 = scmp.eq.s32.totalorder %s104_s21, 0 }
   0xa   : > { %p180_p7 = pnand %p1305_p4, %p179_p5 }
   0xb   : > { %s2000_s22 = scalar_select %p105_p6, %s1893_s13, %s107_s19  }
   0xc   : > { %183 = sbr.rel (%p180_p7) target bundleno = 374 (0x176), region = 32  ;;  %s2006_s25 = sshll.u32 (!%p180_p7), %s1897_s14, 5 }
   0xd   : > { %p224_p8 = scmp.lt.s32.totalorder (!%p180_p7), %s2006_s25, 99  ;;  %s214_s27 = sand.u32 (!%p180_p7), 1, %s1889_s12  }
  0x11   : > { %v1771_v0 = vld [vmem:[%s2289_s1 + $0x78] sm:$0xff]   ;;  %v1773_v2 = vld [vmem:[%s2289_s1 + $0x70] sm:$0xff]   ;;  %v1775_v4 = vld [vmem:[%s2289_s1 + $0x68] sm:$0xff]   ;;  %s225_s9 = scalar_select %p224_p8, %s2006_s25, 99 }
  0x12   : > { %v1772_v1 = vld [vmem:[%s2289_s1 + $0x38] sm:$0xff]   ;;  %1539 = vmatprep.subr.bf16.mxu0 %v1771_v0  ;;  %1651 = vmatprep.subr.bf16.mxu1 %v1771_v0  ;;  %v1774_v3 = vld [vmem:[%s2289_s1 + $0x30] sm:$0xff]   ;;  %v1776_v5 = vld [vmem:[%s2289_s1 + $0x28] sm:$0xff]   ;;  %s939_s29 = ssub.s32 (%p1991_p3), 100, %s2006_s25  ;;  %s1441_s30 = sshll.u32 (%p1991_p3), %s1897_s14, 7 }
  0x13   : > { %1540 = vmatpush3.bf16.msra.mxu0 %v1772_v1  ;;  %1659 = vmatpush3.bf16.msra.mxu1 %v1772_v1  ;;  %v1777_v6 = vld [vmem:[%s2289_s1 + $0x60] sm:$0xff]   ;;  %s1408_s21 = sshll.u32 %s225_s9, 3  ;;  %v1779_v8 = vld [vmem:[%s2289_s1 + $0x58] sm:$0xff]   ;;  %v1781_v10 = vld [vmem:[%s2289_s1 + $0x50] sm:$0xff]   ;;  %p940_p9 = scmp.lt.s32.totalorder (%p1991_p3), %s939_s29, 32 }
  0x14   : > { %1541 = vmatprep.subr.bf16.mxu0 %v1773_v2  ;;  %1652 = vmatprep.subr.bf16.mxu1 %v1773_v2  ;;  %v1778_v7 = vld [vmem:[%s2289_s1 + $0x20] sm:$0xff]   ;;  %s2037_s28 = scalar_lea.vmem %s2288_s0, %s1408_s21  ;;  %v1780_v9 = vld [vmem:[%s2289_s1 + $0x18] sm:$0xff]   ;;  %v1782_v13 = vld [vmem:[%s2289_s1 + $0x10] sm:$0xff]   ;;  %s2155_s6 = scalar_lea.vmem (%p1991_p3), %s2291_s3, %s1441_s30  }
  0x15   : > { %v1789_v11 = vld [vmem:[%s2037_s28 + $0x4] ss:$8 sps:$4 sm:$0xff]   ;;  %v1787_v18 = vld [vmem:[%s2037_s28] ss:$8 sps:$4 sm:$0xff]   ;;  %v1793_v20 = vld [vmem:[%s2037_s28 + $0x14] ss:$8 sps:$4 sm:$0xff]  }
  0x16   : > { %v1792_v12 = vld [vmem:[%s2037_s28 + $0x84] ss:$8 sps:$4 sm:$0xff]   ;;  %610 = vmatprep.mubr.bf16.mxu0 %v1789_v11  ;;  %v1790_v19 = vld [vmem:[%s2037_s28 + $0x80] ss:$8 sps:$4 sm:$0xff]   ;;  %v1795_v21 = vld [vmem:[%s2037_s28 + $0x94] ss:$8 sps:$4 sm:$0xff]  }
  0x17   : > { %1542 = vmatpush3.bf16.msra.mxu0 %v1774_v3  ;;  %1660 = vmatpush3.bf16.msra.mxu1 %v1774_v3  ;;  %v1783_v14 = vld [vmem:[%s2289_s1 + $0x48] sm:$0xff]   ;;  %v1785_v16 = vld [vmem:[%s2289_s1 + $0x40] sm:$0xff]   ;;  %v1797_v22 = vld [vmem:[%s2037_s28 + $0x10] ss:$8 sps:$4 sm:$0xff]  }
  0x18   : > { %1543 = vmatprep.subr.bf16.mxu0 %v1775_v4  ;;  %1653 = vmatprep.subr.bf16.mxu1 %v1775_v4  ;;  %v1784_v15 = vld [vmem:[%s2289_s1 + $0x8] sm:$0xff]   ;;  %v1786_v17 = vld [vmem:[%s2289_s1] sm:$0xff]   ;;  %v1798_v23 = vld [vmem:[%s2037_s28 + $0x90] ss:$8 sps:$4 sm:$0xff]  }
  0x19   : > { %674 = vmatprep.mubr.bf16.mxu1 %v1792_v12  ;;  %v1799_v24 = vld [vmem:[%s2037_s28 + $0x24] ss:$8 sps:$4 sm:$0xff]   ;;  %v1803_v26 = vld [vmem:[%s2037_s28 + $0x20] ss:$8 sps:$4 sm:$0xff]   ;;  %v1805_v28 = vld [vmem:[%s2037_s28 + $0x34] ss:$8 sps:$4 sm:$0xff]  }
  0x1a   : > { %v1801_v25 = vld [vmem:[%s2037_s28 + $0xa4] ss:$8 sps:$4 sm:$0xff]   ;;  %v1804_v27 = vld [vmem:[%s2037_s28 + $0xa0] ss:$8 sps:$4 sm:$0xff]   ;;  %v1807_v29 = vld [vmem:[%s2037_s28 + $0xb4] ss:$8 sps:$4 sm:$0xff]  }
  0x1b   : > { %1544 = vmatpush3.bf16.msra.mxu0 %v1776_v5  ;;  %1661 = vmatpush3.bf16.msra.mxu1 %v1776_v5  ;;  %v1809_v30 = vld [vmem:[%s2037_s28 + $0x30] ss:$8 sps:$4 sm:$0xff]   ;;  %v1811_v32 = vld [vmem:[%s2037_s28 + $0x44] ss:$8 sps:$4 sm:$0xff]   ;;  %v1815_v34 = vld [vmem:[%s2037_s28 + $0x40] ss:$8 sps:$4 sm:$0xff]  }
  0x1c   : > { %1545 = vmatprep.subr.bf16.mxu0 %v1777_v6  ;;  %1654 = vmatprep.subr.bf16.mxu1 %v1777_v6  ;;  %v1810_v31 = vld [vmem:[%s2037_s28 + $0xb0] ss:$8 sps:$4 sm:$0xff]   ;;  %v1813_v33 = vld [vmem:[%s2037_s28 + $0xc4] ss:$8 sps:$4 sm:$0xff]   ;;  %v1816_v35 = vld [vmem:[%s2037_s28 + $0xc0] ss:$8 sps:$4 sm:$0xff]  }
  0x1d   : > { %v1817_v36 = vld [vmem:[%s2037_s28 + $0x54] ss:$8 sps:$4 sm:$0xff]   ;;  %v1821_v38 = vld [vmem:[%s2037_s28 + $0x50] ss:$8 sps:$4 sm:$0xff]   ;;  %v1823_v40 = vld [vmem:[%s2037_s28 + $0x64] ss:$8 sps:$4 sm:$0xff]  }
  0x1e   : > { %v1819_v37 = vld [vmem:[%s2037_s28 + $0xd4] ss:$8 sps:$4 sm:$0xff]   ;;  %v1822_v39 = vld [vmem:[%s2037_s28 + $0xd0] ss:$8 sps:$4 sm:$0xff]   ;;  %v1825_v41 = vld [vmem:[%s2037_s28 + $0xe4] ss:$8 sps:$4 sm:$0xff]  }
  0x1f   : > { %1546 = vmatpush3.bf16.msra.mxu0 %v1778_v7  ;;  %1662 = vmatpush3.bf16.msra.mxu1 %v1778_v7  ;;  %v1827_v42 = vld [vmem:[%s2037_s28 + $0x60] ss:$8 sps:$4 sm:$0xff]   ;;  %v1829_v44 = vld [vmem:[%s2037_s28 + $0x74] ss:$8 sps:$4 sm:$0xff]   ;;  %v1833_v46 = vld [vmem:[%s2037_s28 + $0x70] ss:$8 sps:$4 sm:$0xff]  }
  0x20   : > { %1547 = vmatprep.subr.bf16.mxu0 %v1779_v8  ;;  %1655 = vmatprep.subr.bf16.mxu1 %v1779_v8  ;;  %v1828_v43 = vld [vmem:[%s2037_s28 + $0xe0] ss:$8 sps:$4 sm:$0xff]   ;;  %v1831_v45 = vld [vmem:[%s2037_s28 + $0xf4] ss:$8 sps:$4 sm:$0xff]   ;;  %v1834_v47 = vld [vmem:[%s2037_s28 + $0xf0] ss:$8 sps:$4 sm:$0xff]  }
  0x21   : > { %v2095_v52 = vld [vmem:[%s2290_s2] ss:$0 sm:$0xff]  ;;  %s1306_s28 = sshll.u32 %s214_s27, 7 }
  0x22   : > { %s2104_s12 = scalar_lea.vmem [#allocation2], %s1306_s28  }
  0x23   : > { %1548 = vmatpush3.bf16.msra.mxu0 %v1780_v9  ;;  %1663 = vmatpush3.bf16.msra.mxu1 %v1780_v9 }
  0x24   : > { %1549 = vmatprep.subr.bf16.mxu0 %v1781_v10  ;;  %1656 = vmatprep.subr.bf16.mxu1 %v1781_v10 }
  0x27   : > { %1550 = vmatpush3.bf16.msra.mxu0 %v1782_v13  ;;  %1664 = vmatpush3.bf16.msra.mxu1 %v1782_v13 }
  0x28   : > { %1551 = vmatprep.subr.bf16.mxu0 %v1783_v14  ;;  %1657 = vmatprep.subr.bf16.mxu1 %v1783_v14 }
  0x2b   : > { %1552 = vmatpush3.bf16.msra.mxu0 %v1784_v15  ;;  %1665 = vmatpush3.bf16.msra.mxu1 %v1784_v15 }
  0x2c   : > { %1553 = vmatprep.subr.bf16.mxu0 %v1785_v16  ;;  %1658 = vmatprep.subr.bf16.mxu1 %v1785_v16 }
  0x2f   : > { %1554 = vmatpush3.bf16.msra.mxu0 %v1786_v17  ;;  %1666 = vmatpush3.bf16.msra.mxu1 %v1786_v17 }
  0x32   : > { %611 = vmatmul.mubr.bf16.vlgmr.msra.gmra.mxu0 %v1787_v18  ;;  %675 = vmatmul.mubr.bf16.vlgmr.msra.gmra.mxu1 %v1790_v19 }
  0x33   : > { %618 = vmatprep.mubr.bf16.mxu0 %v1793_v20  ;;  %682 = vmatprep.mubr.bf16.mxu1 %v1795_v21 }
  0x3a   : > { %619 = vmatmul.mubr.bf16.gmra.mxu0 %v1797_v22  ;;  %683 = vmatmul.mubr.bf16.gmra.mxu1 %v1798_v23 }
  0x3b   : > { %626 = vmatprep.mubr.bf16.mxu0 %v1799_v24  ;;  %690 = vmatprep.mubr.bf16.mxu1 %v1801_v25 }
  0x42   : > { %627 = vmatmul.mubr.bf16.gmra.mxu0 %v1803_v26  ;;  %691 = vmatmul.mubr.bf16.gmra.mxu1 %v1804_v27 }
  0x43   : > { %634 = vmatprep.mubr.bf16.mxu0 %v1805_v28  ;;  %698 = vmatprep.mubr.bf16.mxu1 %v1807_v29 }
  0x4a   : > { %635 = vmatmul.mubr.bf16.gmra.mxu0 %v1809_v30  ;;  %699 = vmatmul.mubr.bf16.gmra.mxu1 %v1810_v31 }
  0x4b   : > { %642 = vmatprep.mubr.bf16.mxu0 %v1811_v32  ;;  %706 = vmatprep.mubr.bf16.mxu1 %v1813_v33 }
  0x52   : > { %643 = vmatmul.mubr.bf16.gmra.mxu0 %v1815_v34  ;;  %707 = vmatmul.mubr.bf16.gmra.mxu1 %v1816_v35 }
  0x53   : > { %650 = vmatprep.mubr.bf16.mxu0 %v1817_v36  ;;  %714 = vmatprep.mubr.bf16.mxu1 %v1819_v37 }
  0x5a   : > { %651 = vmatmul.mubr.bf16.gmra.mxu0 %v1821_v38  ;;  %715 = vmatmul.mubr.bf16.gmra.mxu1 %v1822_v39 }
  0x5b   : > { %658 = vmatprep.mubr.bf16.mxu0 %v1823_v40  ;;  %722 = vmatprep.mubr.bf16.mxu1 %v1825_v41 }
  0x62   : > { %659 = vmatmul.mubr.bf16.gmra.mxu0 %v1827_v42  ;;  %723 = vmatmul.mubr.bf16.gmra.mxu1 %v1828_v43 }
  0x63   : > { %666 = vmatprep.mubr.bf16.mxu0 %v1829_v44  ;;  %730 = vmatprep.mubr.bf16.mxu1 %v1831_v45 }
  0x6a   : > { %667 = vmatmul.mubr.bf16.gmra.mxu0 %v1833_v46  ;;  %731 = vmatmul.mubr.bf16.gmra.mxu1 %v1834_v47 }
  0xf2   : > { %v1555_v48 = vpop.f32.mrf.mxu0  ;;  %v1603_v49 = vpop.f32.mrf.mxu1 }
  0xf4   : > { %v1556_v50 = vpop.f32.mrf.mxu0  ;;  %v1604_v51 = vpop.f32.mrf.mxu1 }
  0xf5   : > { %v1557_v53 = vadd.f32 %v1556_v50, %v1555_v48  ;;  %v1605_v54 = vadd.f32 %v1604_v51, %v1603_v49 }
  0xf6   : > { %v1558_v55 = vpop.f32.mrf.mxu0  ;;  %v1606_v56 = vpop.f32.mrf.mxu1 }
  0xf7   : > { %v613_v57 = vadd.f32 %v1557_v53, %v2095_v52  ;;  %v677_v58 = vadd.f32 %v1605_v54, %v2095_v52 }
  0xf8   : > { %v1559_v59 = vpop.f32.mrf.mxu0  ;;  %v1607_v60 = vpop.f32.mrf.mxu1 }
  0xf9   : > { %v1560_v61 = vadd.f32 %v1559_v59, %v1558_v55  ;;  %v1608_v62 = vadd.f32 %v1607_v60, %v1606_v56  ;;  %v739_v3 = vmax.f32 %v613_v57, 0.0  ;;  %v755_v4 = vmax.f32 %v677_v58, 0.0 }
  0xfa   : > { %v1561_v63 = vpop.f32.mrf.mxu0  ;;  %v1609_v0 = vpop.f32.mrf.mxu1 }
  0xfb   : > { %v616_v1 = vadd.f32 %v1560_v61, %v2095_v52  ;;  %v680_v2 = vadd.f32 %v1608_v62, %v2095_v52 }
  0xfc   : > { %v1562_v5 = vpop.f32.mrf.mxu0  ;;  %v1610_v6 = vpop.f32.mrf.mxu1 }
  0xfd   : > { %v740_v7 = vmax.f32 %v616_v1, 0.0  ;;  %v756_v8 = vmax.f32 %v680_v2, 0.0  ;;  %v1563_v9 = vadd.f32 %v1562_v5, %v1561_v63  ;;  %v1611_v10 = vadd.f32 %v1610_v6, %v1609_v0 }
  0xfe   : > { %v1564_v11 = vpop.f32.mrf.mxu0  ;;  %v1612_v12 = vpop.f32.mrf.mxu1 }
  0xff   : > { %v1447_v13 = vpack.c.bf16 %v740_v7, %v739_v3  ;;  %v1487_v14 = vpack.c.bf16 %v756_v8, %v755_v4  ;;  %v621_v15 = vadd.f32 %v1563_v9, %v2095_v52  ;;  %v685_v16 = vadd.f32 %v1611_v10, %v2095_v52 }
 0x100   : > { %v1565_v17 = vpop.f32.mrf.mxu0  ;;  %v1613_v18 = vpop.f32.mrf.mxu1 }
 0x101   : > { %1448 = vst [vmem:[%s2104_s12] sm:$0xff] %v1447_v13   ;;  %1531 = vst [vmem:[%s2104_s12 + $0x40] sm:$0xff] %v1487_v14   ;;  %v1566_v19 = vadd.f32 %v1565_v17, %v1564_v11  ;;  %v1614_v20 = vadd.f32 %v1613_v18, %v1612_v12  ;;  %v741_v25 = vmax.f32 %v621_v15, 0.0  ;;  %v757_v26 = vmax.f32 %v685_v16, 0.0 }
 0x102   : > { %v1567_v21 = vpop.f32.mrf.mxu0  ;;  %v1615_v22 = vpop.f32.mrf.mxu1 }
 0x103   : > { %v624_v23 = vadd.f32 %v1566_v19, %v2095_v52  ;;  %v688_v24 = vadd.f32 %v1614_v20, %v2095_v52 }
 0x104   : > { %v1568_v27 = vpop.f32.mrf.mxu0  ;;  %v1616_v28 = vpop.f32.mrf.mxu1 }
 0x105   : > { %v742_v29 = vmax.f32 %v624_v23, 0.0  ;;  %v758_v30 = vmax.f32 %v688_v24, 0.0  ;;  %v1569_v31 = vadd.f32 %v1568_v27, %v1567_v21  ;;  %v1617_v32 = vadd.f32 %v1616_v28, %v1615_v22 }
 0x106   : > { %v1570_v33 = vpop.f32.mrf.mxu0  ;;  %v1618_v34 = vpop.f32.mrf.mxu1 }
 0x107   : > { %v1452_v35 = vpack.c.bf16 %v742_v29, %v741_v25  ;;  %v1492_v36 = vpack.c.bf16 %v758_v30, %v757_v26  ;;  %v629_v37 = vadd.f32 %v1569_v31, %v2095_v52  ;;  %v693_v38 = vadd.f32 %v1617_v32, %v2095_v52 }
 0x108   : > { %v1571_v39 = vpop.f32.mrf.mxu0  ;;  %v1619_v40 = vpop.f32.mrf.mxu1 }
 0x109   : > { %1524 = vst [vmem:[%s2104_s12 + $0x8] sm:$0xff] %v1452_v35   ;;  %1532 = vst [vmem:[%s2104_s12 + $0x48] sm:$0xff] %v1492_v36   ;;  %v1572_v41 = vadd.f32 %v1571_v39, %v1570_v33  ;;  %v1620_v42 = vadd.f32 %v1619_v40, %v1618_v34  ;;  %v743_v47 = vmax.f32 %v629_v37, 0.0  ;;  %v759_v48 = vmax.f32 %v693_v38, 0.0 }
 0x10a   : > { %v1573_v43 = vpop.f32.mrf.mxu0  ;;  %v1621_v44 = vpop.f32.mrf.mxu1 }
 0x10b   : > { %v632_v45 = vadd.f32 %v1572_v41, %v2095_v52  ;;  %v696_v46 = vadd.f32 %v1620_v42, %v2095_v52 }
 0x10c   : > { %v1574_v49 = vpop.f32.mrf.mxu0  ;;  %v1622_v50 = vpop.f32.mrf.mxu1 }
 0x10d   : > { %v744_v51 = vmax.f32 %v632_v45, 0.0  ;;  %v760_v53 = vmax.f32 %v696_v46, 0.0  ;;  %v1575_v54 = vadd.f32 %v1574_v49, %v1573_v43  ;;  %v1623_v55 = vadd.f32 %v1622_v50, %v1621_v44 }
 0x10e   : > { %v1576_v56 = vpop.f32.mrf.mxu0  ;;  %v1624_v57 = vpop.f32.mrf.mxu1 }
 0x10f   : > { %v1457_v58 = vpack.c.bf16 %v744_v51, %v743_v47  ;;  %v1497_v59 = vpack.c.bf16 %v760_v53, %v759_v48  ;;  %v637_v60 = vadd.f32 %v1575_v54, %v2095_v52  ;;  %v701_v61 = vadd.f32 %v1623_v55, %v2095_v52 }
 0x110   : > { %v1577_v62 = vpop.f32.mrf.mxu0  ;;  %v1625_v63 = vpop.f32.mrf.mxu1 }
 0x111   : > { %1525 = vst [vmem:[%s2104_s12 + $0x10] sm:$0xff] %v1457_v58   ;;  %1533 = vst [vmem:[%s2104_s12 + $0x50] sm:$0xff] %v1497_v59   ;;  %v1578_v0 = vadd.f32 %v1577_v62, %v1576_v56  ;;  %v1626_v1 = vadd.f32 %v1625_v63, %v1624_v57  ;;  %v745_v6 = vmax.f32 %v637_v60, 0.0  ;;  %v761_v7 = vmax.f32 %v701_v61, 0.0 }
 0x112   : > { %v1579_v2 = vpop.f32.mrf.mxu0  ;;  %v1627_v3 = vpop.f32.mrf.mxu1 }
 0x113   : > { %v640_v4 = vadd.f32 %v1578_v0, %v2095_v52  ;;  %v704_v5 = vadd.f32 %v1626_v1, %v2095_v52 }
 0x114   : > { %v1580_v8 = vpop.f32.mrf.mxu0  ;;  %v1628_v9 = vpop.f32.mrf.mxu1 }
 0x115   : > { %v746_v10 = vmax.f32 %v640_v4, 0.0  ;;  %v762_v11 = vmax.f32 %v704_v5, 0.0  ;;  %v1581_v12 = vadd.f32 %v1580_v8, %v1579_v2  ;;  %v1629_v13 = vadd.f32 %v1628_v9, %v1627_v3 }
 0x116   : > { %v1582_v14 = vpop.f32.mrf.mxu0  ;;  %v1630_v15 = vpop.f32.mrf.mxu1 }
 0x117   : > { %v1462_v16 = vpack.c.bf16 %v746_v10, %v745_v6  ;;  %v1502_v17 = vpack.c.bf16 %v762_v11, %v761_v7  ;;  %v645_v18 = vadd.f32 %v1581_v12, %v2095_v52  ;;  %v709_v19 = vadd.f32 %v1629_v13, %v2095_v52 }
 0x118   : > { %v1583_v20 = vpop.f32.mrf.mxu0  ;;  %v1631_v21 = vpop.f32.mrf.mxu1 }
 0x119   : > { %1526 = vst [vmem:[%s2104_s12 + $0x18] sm:$0xff] %v1462_v16   ;;  %1534 = vst [vmem:[%s2104_s12 + $0x58] sm:$0xff] %v1502_v17   ;;  %v1584_v22 = vadd.f32 %v1583_v20, %v1582_v14  ;;  %v1632_v23 = vadd.f32 %v1631_v21, %v1630_v15  ;;  %v747_v28 = vmax.f32 %v645_v18, 0.0  ;;  %v763_v29 = vmax.f32 %v709_v19, 0.0 }
 0x11a   : > { %v1585_v24 = vpop.f32.mrf.mxu0  ;;  %v1633_v25 = vpop.f32.mrf.mxu1 }
 0x11b   : > { %v648_v26 = vadd.f32 %v1584_v22, %v2095_v52  ;;  %v712_v27 = vadd.f32 %v1632_v23, %v2095_v52 }
 0x11c   : > { %v1586_v30 = vpop.f32.mrf.mxu0  ;;  %v1634_v31 = vpop.f32.mrf.mxu1 }
 0x11d   : > { %v748_v32 = vmax.f32 %v648_v26, 0.0  ;;  %v764_v33 = vmax.f32 %v712_v27, 0.0  ;;  %v1587_v34 = vadd.f32 %v1586_v30, %v1585_v24  ;;  %v1635_v35 = vadd.f32 %v1634_v31, %v1633_v25 }
 0x11e   : > { %v1588_v36 = vpop.f32.mrf.mxu0  ;;  %v1636_v37 = vpop.f32.mrf.mxu1 }
 0x11f   : > { %v1467_v38 = vpack.c.bf16 %v748_v32, %v747_v28  ;;  %v1507_v39 = vpack.c.bf16 %v764_v33, %v763_v29  ;;  %v653_v40 = vadd.f32 %v1587_v34, %v2095_v52  ;;  %v717_v41 = vadd.f32 %v1635_v35, %v2095_v52 }
 0x120   : > { %v1589_v42 = vpop.f32.mrf.mxu0  ;;  %v1637_v43 = vpop.f32.mrf.mxu1 }
 0x121   : > { %1527 = vst [vmem:[%s2104_s12 + $0x20] sm:$0xff] %v1467_v38   ;;  %1535 = vst [vmem:[%s2104_s12 + $0x60] sm:$0xff] %v1507_v39   ;;  %v1590_v44 = vadd.f32 %v1589_v42, %v1588_v36  ;;  %v1638_v45 = vadd.f32 %v1637_v43, %v1636_v37  ;;  %v749_v50 = vmax.f32 %v653_v40, 0.0  ;;  %v765_v51 = vmax.f32 %v717_v41, 0.0 }
 0x122   : > { %v1591_v46 = vpop.f32.mrf.mxu0  ;;  %v1639_v47 = vpop.f32.mrf.mxu1 }
 0x123   : > { %v656_v48 = vadd.f32 %v1590_v44, %v2095_v52  ;;  %v720_v49 = vadd.f32 %v1638_v45, %v2095_v52 }
 0x124   : > { %v1592_v53 = vpop.f32.mrf.mxu0  ;;  %v1640_v54 = vpop.f32.mrf.mxu1 }
 0x125   : > { %v750_v55 = vmax.f32 %v656_v48, 0.0  ;;  %v766_v56 = vmax.f32 %v720_v49, 0.0  ;;  %v1593_v57 = vadd.f32 %v1592_v53, %v1591_v46  ;;  %v1641_v58 = vadd.f32 %v1640_v54, %v1639_v47 }
 0x126   : > { %v1594_v59 = vpop.f32.mrf.mxu0  ;;  %v1642_v60 = vpop.f32.mrf.mxu1 }
 0x127   : > { %v1472_v61 = vpack.c.bf16 %v750_v55, %v749_v50  ;;  %v1512_v62 = vpack.c.bf16 %v766_v56, %v765_v51  ;;  %v661_v63 = vadd.f32 %v1593_v57, %v2095_v52  ;;  %v725_v0 = vadd.f32 %v1641_v58, %v2095_v52 }
 0x128   : > { %v1595_v1 = vpop.f32.mrf.mxu0  ;;  %v1643_v2 = vpop.f32.mrf.mxu1 }
 0x129   : > { %1528 = vst [vmem:[%s2104_s12 + $0x28] sm:$0xff] %v1472_v61   ;;  %1536 = vst [vmem:[%s2104_s12 + $0x68] sm:$0xff] %v1512_v62   ;;  %v1596_v3 = vadd.f32 %v1595_v1, %v1594_v59  ;;  %v1644_v4 = vadd.f32 %v1643_v2, %v1642_v60  ;;  %v751_v9 = vmax.f32 %v661_v63, 0.0  ;;  %v767_v10 = vmax.f32 %v725_v0, 0.0 }
 0x12a   : > { %v1597_v5 = vpop.f32.mrf.mxu0  ;;  %v1645_v6 = vpop.f32.mrf.mxu1 }
 0x12b   : > { %v664_v7 = vadd.f32 %v1596_v3, %v2095_v52  ;;  %v728_v8 = vadd.f32 %v1644_v4, %v2095_v52 }
 0x12c   : > { %v1598_v11 = vpop.f32.mrf.mxu0  ;;  %v1646_v12 = vpop.f32.mrf.mxu1 }
 0x12d   : > { %v752_v13 = vmax.f32 %v664_v7, 0.0  ;;  %v768_v14 = vmax.f32 %v728_v8, 0.0  ;;  %v1599_v15 = vadd.f32 %v1598_v11, %v1597_v5  ;;  %v1647_v16 = vadd.f32 %v1646_v12, %v1645_v6 }
 0x12e   : > { %v1600_v17 = vpop.f32.mrf.mxu0  ;;  %v1648_v18 = vpop.f32.mrf.mxu1 }
 0x12f   : > { %v1477_v19 = vpack.c.bf16 %v752_v13, %v751_v9  ;;  %v1517_v20 = vpack.c.bf16 %v768_v14, %v767_v10  ;;  %v669_v23 = vadd.f32 %v1599_v15, %v2095_v52  ;;  %v733_v24 = vadd.f32 %v1647_v16, %v2095_v52 }
 0x130   : > { %v1601_v21 = vpop.f32.mrf.mxu0  ;;  %v1649_v22 = vpop.f32.mrf.mxu1 }
 0x131   : > { %1529 = vst [vmem:[%s2104_s12 + $0x30] sm:$0xff] %v1477_v19   ;;  %1537 = vst [vmem:[%s2104_s12 + $0x70] sm:$0xff] %v1517_v20   ;;  %v1602_v25 = vadd.f32 %v1601_v21, %v1600_v17  ;;  %v1650_v26 = vadd.f32 %v1649_v22, %v1648_v18  ;;  %v753_v29 = vmax.f32 %v669_v23, 0.0  ;;  %v769_v30 = vmax.f32 %v733_v24, 0.0 }
 0x133   : > { %v672_v27 = vadd.f32 %v1602_v25, %v2095_v52  ;;  %v736_v28 = vadd.f32 %v1650_v26, %v2095_v52 }
 0x135   : > { %v754_v31 = vmax.f32 %v672_v27, 0.0  ;;  %v770_v32 = vmax.f32 %v736_v28, 0.0  ;;  %937 = sbr.rel (!%p1991_p3) target bundleno = 374 (0x176), region = 36 }
 0x137   : > { %v1482_v33 = vpack.c.bf16 %v754_v31, %v753_v29  ;;  %v1522_v34 = vpack.c.bf16 %v770_v32, %v769_v30 }
 0x139   : > { %1530 = vst [vmem:[%s2104_s12 + $0x38] sm:$0xff] %v1482_v33   ;;  %1538 = vst [vmem:[%s2104_s12 + $0x78] sm:$0xff] %v1522_v34  }
 0x13a   : > { %s2303_s29 = smov (!%p940_p9, %s939_s29), 32 }
 0x13b   : > { %s1393_s7 = sshll.u32 %s2303_s29, 6 }
 0x13c   : > { %p1396_p10 = scmp.eq.s32.totalorder %s1393_s7, 0 }
 0x13d   : > { %s2161_s8 = sshrl.u32 (!%p1396_p10), %s2303_s29, 5 }
 0x13e   : > { %948 = sbr.rel (%p1396_p10) target bundleno = 374 (0x176), region = 40  ;;  %p1397_p11 = scmp.le.s32.totalorder (!%p1396_p10), %s2161_s8, 0 }
 0x143   : > { %1239 = sbr.rel (%p1397_p11) target bundleno = 357 (0x165), region = 115  ;;  %s2293_s14 = smov (!%p1397_p11), %s2155_s6 }
 0x144   : > { %s2294_s20 = smov (!%p1397_p11), %s2104_s12  ;;  %s2170_s25 = smov (!%p1397_p11), 0  }
 0x145   : > { %s2172_s9 = smov (!%p1397_p11), 0  }
 0x148 LB: >> { %v965_v52 = vld [vmem:[%s1913_s20] sm:$0xf]  ;;  %v967_v35 = vld [vmem:[%s1913_s20 + $0x4] sm:$0xf]  ;;  %v969_v36 = vld [vmem:[%s1913_s20 + $0x8] sm:$0xf]  ;;  %s1921_s9 = sphi %s2172_s9, %s959_s9   ;;  %s1917_s25 = sphi %s2170_s25, %s2295_s25   ;;  %s1913_s20 = sphi %s2294_s20, %s1034_s20   ;;  %s1909_s14 = sphi %s2293_s14, %s1035_s14  }
 0x149   : >> { %966 = vst [vmem:[%s1909_s14] sm:$0xf] %v965_v52  ;;  %968 = vst [vmem:[%s1909_s14 + $0x4] sm:$0xf] %v967_v35  ;;  %v971_v37 = vld [vmem:[%s1913_s20 + $0xc] sm:$0xf]  ;;  %s1029_s10 = sadd.s32 1, %s1917_s25 }
 0x14a   : >> { %970 = vst [vmem:[%s1909_s14 + $0x8] sm:$0xf] %v969_v36  ;;  %v973_v38 = vld [vmem:[%s1913_s20 + $0x10] sm:$0xf]  ;;  %v975_v39 = vld [vmem:[%s1913_s20 + $0x14] sm:$0xf]  ;;  %p1030_p12 = scmp.ge.s32.totalorder %s1029_s10, %s2161_s8 }
 0x14b   : >> { %972 = vst [vmem:[%s1909_s14 + $0xc] sm:$0xf] %v971_v37  ;;  %974 = vst [vmem:[%s1909_s14 + $0x10] sm:$0xf] %v973_v38  ;;  %v977_v40 = vld [vmem:[%s1913_s20 + $0x18] sm:$0xf] }
 0x14c   : >> { %976 = vst [vmem:[%s1909_s14 + $0x14] sm:$0xf] %v975_v39  ;;  %v979_v41 = vld [vmem:[%s1913_s20 + $0x1c] sm:$0xf]  ;;  %v981_v42 = vld [vmem:[%s1913_s20 + $0x20] sm:$0xf] }
 0x14d   : >> { %978 = vst [vmem:[%s1909_s14 + $0x18] sm:$0xf] %v977_v40  ;;  %980 = vst [vmem:[%s1909_s14 + $0x1c] sm:$0xf] %v979_v41  ;;  %v983_v43 = vld [vmem:[%s1913_s20 + $0x24] sm:$0xf] }
 0x14e   : >> { %982 = vst [vmem:[%s1909_s14 + $0x20] sm:$0xf] %v981_v42  ;;  %v985_v44 = vld [vmem:[%s1913_s20 + $0x28] sm:$0xf]  ;;  %v987_v45 = vld [vmem:[%s1913_s20 + $0x2c] sm:$0xf] }
 0x14f   : >> { %984 = vst [vmem:[%s1909_s14 + $0x24] sm:$0xf] %v983_v43  ;;  %986 = vst [vmem:[%s1909_s14 + $0x28] sm:$0xf] %v985_v44  ;;  %v989_v46 = vld [vmem:[%s1913_s20 + $0x30] sm:$0xf] }
 0x150   : >> { %988 = vst [vmem:[%s1909_s14 + $0x2c] sm:$0xf] %v987_v45  ;;  %v991_v47 = vld [vmem:[%s1913_s20 + $0x34] sm:$0xf]  ;;  %v993_v48 = vld [vmem:[%s1913_s20 + $0x38] sm:$0xf] }
 0x151   : >> { %990 = vst [vmem:[%s1909_s14 + $0x30] sm:$0xf] %v989_v46  ;;  %992 = vst [vmem:[%s1909_s14 + $0x34] sm:$0xf] %v991_v47  ;;  %v995_v49 = vld [vmem:[%s1913_s20 + $0x3c] sm:$0xf] }
 0x152   : >> { %994 = vst [vmem:[%s1909_s14 + $0x38] sm:$0xf] %v993_v48  ;;  %v997_v50 = vld [vmem:[%s1913_s20 + $0x40] sm:$0xf]  ;;  %v999_v51 = vld [vmem:[%s1913_s20 + $0x44] sm:$0xf] }
 0x153   : >> { %996 = vst [vmem:[%s1909_s14 + $0x3c] sm:$0xf] %v995_v49  ;;  %998 = vst [vmem:[%s1909_s14 + $0x40] sm:$0xf] %v997_v50  ;;  %v1001_v53 = vld [vmem:[%s1913_s20 + $0x48] sm:$0xf] }
 0x154   : >> { %1000 = vst [vmem:[%s1909_s14 + $0x44] sm:$0xf] %v999_v51  ;;  %v1003_v54 = vld [vmem:[%s1913_s20 + $0x4c] sm:$0xf]  ;;  %v1005_v55 = vld [vmem:[%s1913_s20 + $0x50] sm:$0xf] }
 0x155   : >> { %1002 = vst [vmem:[%s1909_s14 + $0x48] sm:$0xf] %v1001_v53  ;;  %1004 = vst [vmem:[%s1909_s14 + $0x4c] sm:$0xf] %v1003_v54  ;;  %v1007_v56 = vld [vmem:[%s1913_s20 + $0x54] sm:$0xf] }
 0x156   : >> { %1006 = vst [vmem:[%s1909_s14 + $0x50] sm:$0xf] %v1005_v55  ;;  %v1009_v57 = vld [vmem:[%s1913_s20 + $0x58] sm:$0xf]  ;;  %v1011_v58 = vld [vmem:[%s1913_s20 + $0x5c] sm:$0xf] }
 0x157   : >> { %1008 = vst [vmem:[%s1909_s14 + $0x54] sm:$0xf] %v1007_v56  ;;  %1010 = vst [vmem:[%s1909_s14 + $0x58] sm:$0xf] %v1009_v57  ;;  %v1013_v59 = vld [vmem:[%s1913_s20 + $0x60] sm:$0xf] }
 0x158   : >> { %1012 = vst [vmem:[%s1909_s14 + $0x5c] sm:$0xf] %v1011_v58  ;;  %v1015_v60 = vld [vmem:[%s1913_s20 + $0x64] sm:$0xf]  ;;  %v1017_v61 = vld [vmem:[%s1913_s20 + $0x68] sm:$0xf] }
 0x159   : >> { %1014 = vst [vmem:[%s1909_s14 + $0x60] sm:$0xf] %v1013_v59  ;;  %1016 = vst [vmem:[%s1909_s14 + $0x64] sm:$0xf] %v1015_v60  ;;  %v1019_v62 = vld [vmem:[%s1913_s20 + $0x6c] sm:$0xf] }
 0x15a   : >> { %1018 = vst [vmem:[%s1909_s14 + $0x68] sm:$0xf] %v1017_v61  ;;  %v1021_v63 = vld [vmem:[%s1913_s20 + $0x70] sm:$0xf]  ;;  %v1023_v0 = vld [vmem:[%s1913_s20 + $0x74] sm:$0xf] }
 0x15b   : >> { %1020 = vst [vmem:[%s1909_s14 + $0x6c] sm:$0xf] %v1019_v62  ;;  %1022 = vst [vmem:[%s1909_s14 + $0x70] sm:$0xf] %v1021_v63  ;;  %v1025_v1 = vld [vmem:[%s1913_s20 + $0x78] sm:$0xf] }
 0x15c   : >> { %1024 = vst [vmem:[%s1909_s14 + $0x74] sm:$0xf] %v1023_v0  ;;  %v1027_v2 = vld [vmem:[%s1913_s20 + $0x7c] sm:$0xf]  ;;  %1026 = vst [vmem:[%s1909_s14 + $0x78] sm:$0xf] %v1025_v1 }
 0x15d   : >> { %1028 = vst [vmem:[%s1909_s14 + $0x7c] sm:$0xf] %v1027_v2  ;;  %s2305_s10 = smov (%p1030_p12, %s1029_s10), 0  ;;  %s959_s9 = sadd.s32 1, %s1921_s9  }
 0x15e   : >> { %s1398_s11 = sshll.u32 %s2305_s10, 7  ;;  %p958_p13 = scmp.ge.s32.totalorder %s959_s9, %s2161_s8 }
 0x15f   : >> { %s1034_s20 = scalar_lea.vmem %s2104_s12, %s1398_s11 [#allocation2]   ;;  %s1035_s14 = scalar_lea.vmem %s2155_s6, %s1398_s11  }
 0x160   : >> { %s2295_s25 = smov %s2305_s10  ;;  %961 = sbr.rel (!%p958_p13) target bundleno = 328 (0x148), region = 121 }
 0x165 PF: > { %s2265_s17 = sand.u32 31, %s2303_s29   ;;  %s1442_s19 = sshll.u32 %s2161_s8, 7 }
 0x166   : > { %s1040_s21 = scalar_lea.vmem %s2104_s12, %s1442_s19 [#allocation2]   ;;  %s1042_s23 = scalar_lea.vmem %s2155_s6, %s1442_s19  }
 0x167   : > { %p1403_p0 = scmp.le.s32.totalorder %s2265_s17, 0 }
 0x168   : > { %s1923_s24 = smov (!%p1403_p0), %s1042_s23   ;;  %s1927_s26 = smov (!%p1403_p0), %s1040_s21  }
 0x169   : > { %1253 = sbr.rel (%p1403_p0) target bundleno = 374 (0x176), region = 126  ;;  %s1931_s27 = smov (!%p1403_p0), 0  }
 0x16a   : > { %s1935_s28 = smov (!%p1403_p0), 0  }
 0x16e LB: >> { %v1052_v3 = vld [vmem:[%s1929_s26] sm:$0xf]  ;;  %s1054_s29 = sadd.s32 1, %s1933_s27  ;;  %s1046_s28 = sadd.s32 1, %s1937_s28   ;;  %s1937_s28 = sphi %s1935_s28, %s1046_s28   ;;  %s1933_s27 = sphi %s1931_s27, %s1932_s27   ;;  %s1929_s26 = sphi %s1927_s26, %s1059_s26   ;;  %s1925_s24 = sphi %s1923_s24, %s1060_s24  }
 0x16f   : >> { %1053 = vst [vmem:[%s1925_s24] sm:$0xf] %v1052_v3  ;;  %p1055_p1 = scmp.ge.s32.totalorder %s1054_s29, %s2265_s17  ;;  %p1045_p2 = scmp.ge.s32.totalorder %s1046_s28, %s2265_s17 }
 0x171   : >> { %s2307_s29 = smov (%p1055_p1, %s1054_s29), 0  ;;  %1048 = sbr.rel (!%p1045_p2) target bundleno = 366 (0x16e), region = 132 }
 0x172   : >> { %s1404_s12 = sshll.u32 %s2307_s29, 2  ;;  %s1932_s27 = smov %s2307_s29  }
 0x173   : >> { %s1059_s26 = scalar_lea.vmem %s1040_s21, %s1404_s12 [#allocation2]   ;;  %s1060_s24 = scalar_lea.vmem %s1042_s23, %s1404_s12  }
 0x176 PF: > { %s13_s16 = sadd.s32 1, %s1905_s16   ;;  %s2296_s12 = smov %s1893_s13 }
 0x177   : > { %p10_p3 = scmp.ge.s32.totalorder %s13_s16, 6   ;;  %s2297_s13 = smov %s2000_s22 }
 0x178   : > { %s2298_s14 = smov %s1901_s15  ;;  %s2299_s15 = smov %s2301_s18 }
 0x179   :  { %12 = sbr.rel (!%p10_p3) target bundleno = 3 (0x3), region = 143 }

// kernel: deep_q_forward.5
= control target key start
LH: loop header
LB: loop body
LE: loop exit
PB: predicated region body
PF: predicated region fallthrough
CT: control target
= control target key end

     0   :  { %s1912_s12 = smov 0   ;;  %s1914_s13 = smov 0   ;;  %s2233_s0 = inlined_call_operand.vmem [shape: bf16[162,512], index: 0, kind: input, shape index: {}]   ;;  %s2234_s1 = inlined_call_operand.vmem [shape: bf16[512,128], index: 1, kind: input, shape index: {}]   ;;  %s2235_s2 = inlined_call_operand.vmem [shape: f32[1,128], index: 2, kind: input, shape index: {}]   ;;  %s2236_s3 = inlined_call_operand.vmem [shape: bf16[162,128], index: 3, kind: output, shape index: {}]  }
   0x1   :  { %s1916_s14 = smov 0   ;;  %s1918_s15 = smov 0  }
   0x2   :  { %s1920_s16 = smov 0  }
   0x3 LB: > { %s1301_s17 = sadd.s32 4294967295, %s1858_s16   ;;  %s25_s18 = sadd.s32 1, %s1854_s15  ;;  %s1858_s16 = sphi %s1920_s16, %s13_s16   ;;  %s1854_s15 = sphi %s1918_s15, %s2244_s15   ;;  %s1850_s14 = sphi %s1916_s14, %s2243_s14   ;;  %s1846_s13 = sphi %s1914_s13, %s2242_s13   ;;  %s1842_s12 = sphi %s1912_s12, %s2241_s12  }
   0x4   : > { %p27_p0 = scmp.ge.s32.totalorder %s25_s18, 2  ;;  %s107_s19 = sadd.s32 1, %s1846_s13 }
   0x5   : > { %p117_p1 = scmp.ne.s32.totalorder %s1846_s13, %s1842_s12  ;;  %p118_p2 = scmp.eq.s32.totalorder %s1301_s17, 1 }
   0x6   : > { %s2246_s18 = smov (%p27_p0, %s25_s18), 0  ;;  %p1306_p4 = scmp.ge.s32.totalorder %s1858_s16, 1 }
   0x7   : > { %p1944_p3 = por %p118_p2, %p117_p1  ;;  %s104_s21 = ssub.s32 %s1854_s15, %s2246_s18 }
   0x8   : > { %p179_p5 = scmp.lt.s32.totalorder %s1858_s16, 3  ;;  %p105_p6 = scmp.eq.s32.totalorder %s104_s21, 0 }
   0xa   : > { %p180_p7 = pnand %p1306_p4, %p179_p5 }
   0xb   : > { %s1953_s22 = scalar_select %p105_p6, %s1846_s13, %s107_s19  }
   0xc   : > { %183 = sbr.rel (%p180_p7) target bundleno = 366 (0x16e), region = 32  ;;  %s2004_s9 = sshll.u32 (!%p180_p7), %s1850_s14, 4 }
   0xd   : > { %p224_p8 = scmp.lt.s32.totalorder (!%p180_p7), %s2004_s9, 20  ;;  %s214_s19 = sand.u32 (!%p180_p7), 1, %s1842_s12  }
   0xe   : > { %s1307_s21 = sshll.u32 (!%p180_p7), %s214_s19, 6 }
   0xf   : > { %s2102_s12 = scalar_lea.vmem (!%p180_p7), [#allocation2], %s1307_s21  }
  0x11   : > { %v1708_v0 = vld [vmem:[%s2234_s1 + $0x78] sm:$0xff]   ;;  %v1712_v4 = vld [vmem:[%s2234_s1 + $0x70] sm:$0xff]   ;;  %v1716_v8 = vld [vmem:[%s2234_s1 + $0x68] sm:$0xff]   ;;  %s225_s5 = scalar_select %p224_p8, %s2004_s9, 20 }
  0x12   : > { %v1709_v1 = vld [vmem:[%s2234_s1 + $0xf8] sm:$0xff]   ;;  %1476 = vmatprep.subr.bf16.mxu0 %v1708_v0  ;;  %v1713_v5 = vld [vmem:[%s2234_s1 + $0xf0] sm:$0xff]   ;;  %v1717_v9 = vld [vmem:[%s2234_s1 + $0xe8] sm:$0xff]   ;;  %s1426_s24 = sshll.u32 (%p1944_p3), %s1850_s14, 6 }
  0x13   : > { %v1710_v2 = vld [vmem:[%s2234_s1 + $0x38] sm:$0xff]   ;;  %1540 = vmatprep.subr.bf16.mxu1 %v1709_v1  ;;  %v1714_v6 = vld [vmem:[%s2234_s1 + $0x30] sm:$0xff]   ;;  %v1718_v10 = vld [vmem:[%s2234_s1 + $0x28] sm:$0xff]   ;;  %s1409_s23 = sshll.u32 %s225_s5, 4  ;;  %s2132_s27 = scalar_lea.vmem (%p1944_p3), %s2236_s3, %s1426_s24  }
  0x14   : > { %v1711_v3 = vld [vmem:[%s2234_s1 + $0xb8] sm:$0xff]   ;;  %1477 = vmatpush3.bf16.msra.mxu0 %v1710_v2  ;;  %v1715_v7 = vld [vmem:[%s2234_s1 + $0xb0] sm:$0xff]   ;;  %v1719_v11 = vld [vmem:[%s2234_s1 + $0xa8] sm:$0xff]   ;;  %s2053_s6 = scalar_lea.vmem %s2233_s0, %s1409_s23  ;;  %s1004_s23 = ssub.s32 (%p1944_p3), 21, %s2004_s9 }
  0x15   : > { %1541 = vmatpush3.bf16.msra.mxu1 %v1711_v3  ;;  %1478 = vmatprep.subr.bf16.mxu0 %v1712_v4  ;;  %v1720_v12 = vld [vmem:[%s2234_s1 + $0x60] sm:$0xff]   ;;  %v1724_v16 = vld [vmem:[%s2234_s1 + $0x58] sm:$0xff]   ;;  %v1728_v20 = vld [vmem:[%s2234_s1 + $0x50] sm:$0xff]   ;;  %p1005_p9 = scmp.lt.s32.totalorder (%p1944_p3), %s1004_s23, 16 }
  0x16   : > { %1542 = vmatprep.subr.bf16.mxu1 %v1713_v5  ;;  %v1721_v13 = vld [vmem:[%s2234_s1 + $0xe0] sm:$0xff]   ;;  %v1725_v17 = vld [vmem:[%s2234_s1 + $0xd8] sm:$0xff]   ;;  %v1729_v21 = vld [vmem:[%s2234_s1 + $0xd0] sm:$0xff]  }
  0x17   : > { %v1722_v14 = vld [vmem:[%s2234_s1 + $0x20] sm:$0xff]   ;;  %v1726_v18 = vld [vmem:[%s2234_s1 + $0x18] sm:$0xff]   ;;  %v1730_v22 = vld [vmem:[%s2234_s1 + $0x10] sm:$0xff]  }
  0x18   : > { %1479 = vmatpush3.bf16.msra.mxu0 %v1714_v6  ;;  %v1723_v15 = vld [vmem:[%s2234_s1 + $0xa0] sm:$0xff]   ;;  %v1727_v19 = vld [vmem:[%s2234_s1 + $0x98] sm:$0xff]   ;;  %v1731_v23 = vld [vmem:[%s2234_s1 + $0x90] sm:$0xff]  }
  0x19   : > { %1543 = vmatpush3.bf16.msra.mxu1 %v1715_v7  ;;  %1480 = vmatprep.subr.bf16.mxu0 %v1716_v8  ;;  %v1732_v24 = vld [vmem:[%s2234_s1 + $0x48] sm:$0xff]   ;;  %v1736_v28 = vld [vmem:[%s2234_s1 + $0x40] sm:$0xff]  }
  0x1a   : > { %1544 = vmatprep.subr.bf16.mxu1 %v1717_v9  ;;  %v1733_v25 = vld [vmem:[%s2234_s1 + $0xc8] sm:$0xff]   ;;  %v1737_v29 = vld [vmem:[%s2234_s1 + $0xc0] sm:$0xff]  }
  0x1b   : > { %v1734_v26 = vld [vmem:[%s2234_s1 + $0x8] sm:$0xff]   ;;  %v1738_v30 = vld [vmem:[%s2234_s1] sm:$0xff]  }
  0x1c   : > { %1481 = vmatpush3.bf16.msra.mxu0 %v1718_v10  ;;  %v1735_v27 = vld [vmem:[%s2234_s1 + $0x88] sm:$0xff]   ;;  %v1739_v31 = vld [vmem:[%s2234_s1 + $0x80] sm:$0xff]  }
  0x1d   : > { %1545 = vmatpush3.bf16.msra.mxu1 %v1719_v11  ;;  %1482 = vmatprep.subr.bf16.mxu0 %v1720_v12  ;;  %v1740_v32 = vld [vmem:[%s2053_s6] ss:$16 sps:$4 sm:$0xff]   ;;  %v1742_v33 = vld [vmem:[%s2053_s6 + $0x4] ss:$16 sps:$4 sm:$0xff]   ;;  %v1743_v34 = vld [vmem:[%s2053_s6 + $0x8] ss:$16 sps:$4 sm:$0xff]  }
  0x1e   : > { %1546 = vmatprep.subr.bf16.mxu1 %v1721_v13  ;;  %v1745_v35 = vld [vmem:[%s2053_s6 + $0xc] ss:$16 sps:$4 sm:$0xff]   ;;  %738 = vmatprep.mubr.bf16.mxu0 %v1742_v33  ;;  %v1746_v36 = vld [vmem:[%s2053_s6 + $0x24] ss:$16 sps:$4 sm:$0xff]   ;;  %v1750_v38 = vld [vmem:[%s2053_s6 + $0x20] ss:$16 sps:$4 sm:$0xff]  }
  0x1f   : > { %835 = vmatprep.mubr.bf16.mxu1 %v1745_v35  ;;  %v1748_v37 = vld [vmem:[%s2053_s6 + $0x2c] ss:$16 sps:$4 sm:$0xff]   ;;  %v1751_v39 = vld [vmem:[%s2053_s6 + $0x28] ss:$16 sps:$4 sm:$0xff]   ;;  %v1752_v40 = vld [vmem:[%s2053_s6 + $0x44] ss:$16 sps:$4 sm:$0xff]  }
  0x20   : > { %1483 = vmatpush3.bf16.msra.mxu0 %v1722_v14  ;;  %v1754_v41 = vld [vmem:[%s2053_s6 + $0x4c] ss:$16 sps:$4 sm:$0xff]   ;;  %v1756_v42 = vld [vmem:[%s2053_s6 + $0x40] ss:$16 sps:$4 sm:$0xff]   ;;  %v1757_v43 = vld [vmem:[%s2053_s6 + $0x48] ss:$16 sps:$4 sm:$0xff]  }
  0x21   : > { %1547 = vmatpush3.bf16.msra.mxu1 %v1723_v15  ;;  %1484 = vmatprep.subr.bf16.mxu0 %v1724_v16  ;;  %v1758_v44 = vld [vmem:[%s2053_s6 + $0x64] ss:$16 sps:$4 sm:$0xff]   ;;  %v1760_v45 = vld [vmem:[%s2053_s6 + $0x6c] ss:$16 sps:$4 sm:$0xff]   ;;  %v1762_v46 = vld [vmem:[%s2053_s6 + $0x60] ss:$16 sps:$4 sm:$0xff]  }
  0x22   : > { %1548 = vmatprep.subr.bf16.mxu1 %v1725_v17  ;;  %v1763_v47 = vld [vmem:[%s2053_s6 + $0x68] ss:$16 sps:$4 sm:$0xff]   ;;  %v1764_v48 = vld [vmem:[%s2053_s6 + $0x84] ss:$16 sps:$4 sm:$0xff]   ;;  %v1766_v49 = vld [vmem:[%s2053_s6 + $0x8c] ss:$16 sps:$4 sm:$0xff]  }
  0x23   : > { %v1768_v50 = vld [vmem:[%s2053_s6 + $0x80] ss:$16 sps:$4 sm:$0xff]   ;;  %v1769_v51 = vld [vmem:[%s2053_s6 + $0x88] ss:$16 sps:$4 sm:$0xff]   ;;  %v1770_v52 = vld [vmem:[%s2053_s6 + $0xa4] ss:$16 sps:$4 sm:$0xff]  }
  0x24   : > { %1485 = vmatpush3.bf16.msra.mxu0 %v1726_v18  ;;  %v1772_v53 = vld [vmem:[%s2053_s6 + $0xac] ss:$16 sps:$4 sm:$0xff]   ;;  %v1774_v54 = vld [vmem:[%s2053_s6 + $0xa0] ss:$16 sps:$4 sm:$0xff]   ;;  %v1775_v55 = vld [vmem:[%s2053_s6 + $0xa8] ss:$16 sps:$4 sm:$0xff]  }
  0x25   : > { %1549 = vmatpush3.bf16.msra.mxu1 %v1727_v19  ;;  %1486 = vmatprep.subr.bf16.mxu0 %v1728_v20  ;;  %v1776_v56 = vld [vmem:[%s2053_s6 + $0xc4] ss:$16 sps:$4 sm:$0xff]   ;;  %v1778_v57 = vld [vmem:[%s2053_s6 + $0xcc] ss:$16 sps:$4 sm:$0xff]   ;;  %v1780_v58 = vld [vmem:[%s2053_s6 + $0xc0] ss:$16 sps:$4 sm:$0xff]  }
  0x26   : > { %1550 = vmatprep.subr.bf16.mxu1 %v1729_v21  ;;  %v1781_v59 = vld [vmem:[%s2053_s6 + $0xc8] ss:$16 sps:$4 sm:$0xff]   ;;  %v1782_v60 = vld [vmem:[%s2053_s6 + $0xe4] ss:$16 sps:$4 sm:$0xff]   ;;  %v1784_v61 = vld [vmem:[%s2053_s6 + $0xec] ss:$16 sps:$4 sm:$0xff]  }
  0x27   : > { %v1786_v62 = vld [vmem:[%s2053_s6 + $0xe0] ss:$16 sps:$4 sm:$0xff]   ;;  %v1787_v63 = vld [vmem:[%s2053_s6 + $0xe8] ss:$16 sps:$4 sm:$0xff]  }
  0x28   : > { %1487 = vmatpush3.bf16.msra.mxu0 %v1730_v22  ;;  %v2096_v2 = vld [vmem:[%s2235_s2] ss:$0 sm:$0xff] }
  0x29   : > { %1551 = vmatpush3.bf16.msra.mxu1 %v1731_v23  ;;  %1488 = vmatprep.subr.bf16.mxu0 %v1732_v24 }
  0x2a   : > { %1552 = vmatprep.subr.bf16.mxu1 %v1733_v25 }
  0x2c   : > { %1489 = vmatpush3.bf16.msra.mxu0 %v1734_v26 }
  0x2d   : > { %1553 = vmatpush3.bf16.msra.mxu1 %v1735_v27  ;;  %1490 = vmatprep.subr.bf16.mxu0 %v1736_v28 }
  0x2e   : > { %1554 = vmatprep.subr.bf16.mxu1 %v1737_v29 }
  0x30   : > { %1491 = vmatpush3.bf16.msra.mxu0 %v1738_v30 }
  0x31   : > { %1555 = vmatpush3.bf16.msra.mxu1 %v1739_v31 }
  0x33   : > { %739 = vmatmul.mubr.bf16.vlgmr.msra.gmra.mxu0 %v1740_v32 }
  0x34   : > { %836 = vmatmul.mubr.bf16.vlgmr.msra.gmra.mxu1 %v1743_v34  ;;  %746 = vmatprep.mubr.bf16.mxu0 %v1746_v36 }
  0x35   : > { %843 = vmatprep.mubr.bf16.mxu1 %v1748_v37 }
  0x3b   : > { %747 = vmatmul.mubr.bf16.gmra.mxu0 %v1750_v38 }
  0x3c   : > { %844 = vmatmul.mubr.bf16.gmra.mxu1 %v1751_v39  ;;  %754 = vmatprep.mubr.bf16.mxu0 %v1752_v40 }
  0x3d   : > { %851 = vmatprep.mubr.bf16.mxu1 %v1754_v41 }
  0x43   : > { %755 = vmatmul.mubr.bf16.gmra.mxu0 %v1756_v42 }
  0x44   : > { %852 = vmatmul.mubr.bf16.gmra.mxu1 %v1757_v43  ;;  %762 = vmatprep.mubr.bf16.mxu0 %v1758_v44 }
  0x45   : > { %859 = vmatprep.mubr.bf16.mxu1 %v1760_v45 }
  0x4b   : > { %763 = vmatmul.mubr.bf16.gmra.mxu0 %v1762_v46 }
  0x4c   : > { %860 = vmatmul.mubr.bf16.gmra.mxu1 %v1763_v47  ;;  %770 = vmatprep.mubr.bf16.mxu0 %v1764_v48 }
  0x4d   : > { %867 = vmatprep.mubr.bf16.mxu1 %v1766_v49 }
  0x53   : > { %771 = vmatmul.mubr.bf16.gmra.mxu0 %v1768_v50 }
  0x54   : > { %868 = vmatmul.mubr.bf16.gmra.mxu1 %v1769_v51  ;;  %778 = vmatprep.mubr.bf16.mxu0 %v1770_v52 }
  0x55   : > { %875 = vmatprep.mubr.bf16.mxu1 %v1772_v53 }
  0x5b   : > { %779 = vmatmul.mubr.bf16.gmra.mxu0 %v1774_v54 }
  0x5c   : > { %876 = vmatmul.mubr.bf16.gmra.mxu1 %v1775_v55  ;;  %786 = vmatprep.mubr.bf16.mxu0 %v1776_v56 }
  0x5d   : > { %883 = vmatprep.mubr.bf16.mxu1 %v1778_v57 }
  0x63   : > { %787 = vmatmul.mubr.bf16.gmra.mxu0 %v1780_v58 }
  0x64   : > { %884 = vmatmul.mubr.bf16.gmra.mxu1 %v1781_v59  ;;  %794 = vmatprep.mubr.bf16.mxu0 %v1782_v60 }
  0x65   : > { %891 = vmatprep.mubr.bf16.mxu1 %v1784_v61 }
  0x6b   : > { %795 = vmatmul.mubr.bf16.gmra.mxu0 %v1786_v62 }
  0x6c   : > { %892 = vmatmul.mubr.bf16.gmra.mxu1 %v1787_v63 }
  0xf3   : > { %v1492_v0 = vpop.f32.mrf.mxu0 }
  0xf4   : > { %v1556_v1 = vpop.f32.mrf.mxu1 }
  0xf5   : > { %v1493_v3 = vpop.f32.mrf.mxu0 }
  0xf6   : > { %v1494_v4 = vadd.f32 %v1493_v3, %v1492_v0  ;;  %v1557_v5 = vpop.f32.mrf.mxu1 }
  0xf7   : > { %v1495_v6 = vpop.f32.mrf.mxu0  ;;  %v1558_v10 = vadd.f32 %v1557_v5, %v1556_v1 }
  0xf8   : > { %v741_v7 = vadd.f32 %v1494_v4, %v2096_v2  ;;  %v1559_v8 = vpop.f32.mrf.mxu1 }
  0xf9   : > { %v1496_v9 = vpop.f32.mrf.mxu0 }
  0xfa   : > { %v1497_v11 = vadd.f32 %v1496_v9, %v1495_v6  ;;  %v1560_v12 = vpop.f32.mrf.mxu1  ;;  %v838_v14 = vadd.f32 %v1558_v10, %v741_v7 }
  0xfb   : > { %v1498_v13 = vpop.f32.mrf.mxu0  ;;  %v1561_v16 = vadd.f32 %v1560_v12, %v1559_v8 }
  0xfc   : > { %v744_v15 = vadd.f32 %v1497_v11, %v2096_v2  ;;  %v1562_v17 = vpop.f32.mrf.mxu1  ;;  %v900_v23 = vmax.f32 %v838_v14, 0.0 }
  0xfd   : > { %v1499_v18 = vpop.f32.mrf.mxu0 }
  0xfe   : > { %v841_v19 = vadd.f32 %v1561_v16, %v744_v15  ;;  %v1500_v20 = vadd.f32 %v1499_v18, %v1498_v13  ;;  %v1563_v21 = vpop.f32.mrf.mxu1 }
  0xff   : > { %v1501_v22 = vpop.f32.mrf.mxu0  ;;  %v1564_v29 = vadd.f32 %v1563_v21, %v1562_v17 }
 0x100   : > { %v901_v24 = vmax.f32 %v841_v19, 0.0  ;;  %v749_v25 = vadd.f32 %v1500_v20, %v2096_v2  ;;  %v1565_v26 = vpop.f32.mrf.mxu1 }
 0x101   : > { %v1502_v27 = vpop.f32.mrf.mxu0 }
 0x102   : > { %v1432_v28 = vpack.c.bf16 %v901_v24, %v900_v23  ;;  %v1503_v30 = vadd.f32 %v1502_v27, %v1501_v22  ;;  %v1566_v31 = vpop.f32.mrf.mxu1  ;;  %v846_v33 = vadd.f32 %v1564_v29, %v749_v25 }
 0x103   : > { %v1504_v32 = vpop.f32.mrf.mxu0  ;;  %v1567_v35 = vadd.f32 %v1566_v31, %v1565_v26 }
 0x104   : > { %1433 = vst [vmem:[%s2102_s12] sm:$0xff] %v1432_v28   ;;  %v752_v34 = vadd.f32 %v1503_v30, %v2096_v2  ;;  %v1568_v36 = vpop.f32.mrf.mxu1  ;;  %v902_v42 = vmax.f32 %v846_v33, 0.0 }
 0x105   : > { %v1505_v37 = vpop.f32.mrf.mxu0 }
 0x106   : > { %v849_v38 = vadd.f32 %v1567_v35, %v752_v34  ;;  %v1506_v39 = vadd.f32 %v1505_v37, %v1504_v32  ;;  %v1569_v40 = vpop.f32.mrf.mxu1 }
 0x107   : > { %v1507_v41 = vpop.f32.mrf.mxu0  ;;  %v1570_v48 = vadd.f32 %v1569_v40, %v1568_v36 }
 0x108   : > { %v903_v43 = vmax.f32 %v849_v38, 0.0  ;;  %v757_v44 = vadd.f32 %v1506_v39, %v2096_v2  ;;  %v1571_v45 = vpop.f32.mrf.mxu1 }
 0x109   : > { %v1508_v46 = vpop.f32.mrf.mxu0 }
 0x10a   : > { %v1437_v47 = vpack.c.bf16 %v903_v43, %v902_v42  ;;  %v1509_v49 = vadd.f32 %v1508_v46, %v1507_v41  ;;  %v1572_v50 = vpop.f32.mrf.mxu1  ;;  %v854_v52 = vadd.f32 %v1570_v48, %v757_v44 }
 0x10b   : > { %v1510_v51 = vpop.f32.mrf.mxu0  ;;  %v1573_v54 = vadd.f32 %v1572_v50, %v1571_v45 }
 0x10c   : > { %1469 = vst [vmem:[%s2102_s12 + $0x8] sm:$0xff] %v1437_v47   ;;  %v760_v53 = vadd.f32 %v1509_v49, %v2096_v2  ;;  %v1574_v55 = vpop.f32.mrf.mxu1  ;;  %v904_v61 = vmax.f32 %v854_v52, 0.0 }
 0x10d   : > { %v1511_v56 = vpop.f32.mrf.mxu0 }
 0x10e   : > { %v857_v57 = vadd.f32 %v1573_v54, %v760_v53  ;;  %v1512_v58 = vadd.f32 %v1511_v56, %v1510_v51  ;;  %v1575_v59 = vpop.f32.mrf.mxu1 }
 0x10f   : > { %v1513_v60 = vpop.f32.mrf.mxu0  ;;  %v1576_v4 = vadd.f32 %v1575_v59, %v1574_v55 }
 0x110   : > { %v905_v62 = vmax.f32 %v857_v57, 0.0  ;;  %v765_v63 = vadd.f32 %v1512_v58, %v2096_v2  ;;  %v1577_v0 = vpop.f32.mrf.mxu1 }
 0x111   : > { %v1514_v1 = vpop.f32.mrf.mxu0 }
 0x112   : > { %v1442_v3 = vpack.c.bf16 %v905_v62, %v904_v61  ;;  %v1515_v5 = vadd.f32 %v1514_v1, %v1513_v60  ;;  %v1578_v6 = vpop.f32.mrf.mxu1  ;;  %v862_v8 = vadd.f32 %v1576_v4, %v765_v63 }
 0x113   : > { %v1516_v7 = vpop.f32.mrf.mxu0  ;;  %v1579_v10 = vadd.f32 %v1578_v6, %v1577_v0 }
 0x114   : > { %1470 = vst [vmem:[%s2102_s12 + $0x10] sm:$0xff] %v1442_v3   ;;  %v768_v9 = vadd.f32 %v1515_v5, %v2096_v2  ;;  %v1580_v11 = vpop.f32.mrf.mxu1  ;;  %v906_v17 = vmax.f32 %v862_v8, 0.0 }
 0x115   : > { %v1517_v12 = vpop.f32.mrf.mxu0 }
 0x116   : > { %v865_v13 = vadd.f32 %v1579_v10, %v768_v9  ;;  %v1518_v14 = vadd.f32 %v1517_v12, %v1516_v7  ;;  %v1581_v15 = vpop.f32.mrf.mxu1 }
 0x117   : > { %v1519_v16 = vpop.f32.mrf.mxu0  ;;  %v1582_v23 = vadd.f32 %v1581_v15, %v1580_v11 }
 0x118   : > { %v907_v18 = vmax.f32 %v865_v13, 0.0  ;;  %v773_v19 = vadd.f32 %v1518_v14, %v2096_v2  ;;  %v1583_v20 = vpop.f32.mrf.mxu1 }
 0x119   : > { %v1520_v21 = vpop.f32.mrf.mxu0 }
 0x11a   : > { %v1447_v22 = vpack.c.bf16 %v907_v18, %v906_v17  ;;  %v1521_v24 = vadd.f32 %v1520_v21, %v1519_v16  ;;  %v1584_v25 = vpop.f32.mrf.mxu1  ;;  %v870_v27 = vadd.f32 %v1582_v23, %v773_v19 }
 0x11b   : > { %v1522_v26 = vpop.f32.mrf.mxu0  ;;  %v1585_v29 = vadd.f32 %v1584_v25, %v1583_v20 }
 0x11c   : > { %1471 = vst [vmem:[%s2102_s12 + $0x18] sm:$0xff] %v1447_v22   ;;  %v776_v28 = vadd.f32 %v1521_v24, %v2096_v2  ;;  %v1586_v30 = vpop.f32.mrf.mxu1  ;;  %v908_v36 = vmax.f32 %v870_v27, 0.0 }
 0x11d   : > { %v1523_v31 = vpop.f32.mrf.mxu0 }
 0x11e   : > { %v873_v32 = vadd.f32 %v1585_v29, %v776_v28  ;;  %v1524_v33 = vadd.f32 %v1523_v31, %v1522_v26  ;;  %v1587_v34 = vpop.f32.mrf.mxu1 }
 0x11f   : > { %v1525_v35 = vpop.f32.mrf.mxu0  ;;  %v1588_v42 = vadd.f32 %v1587_v34, %v1586_v30 }
 0x120   : > { %v909_v37 = vmax.f32 %v873_v32, 0.0  ;;  %v781_v38 = vadd.f32 %v1524_v33, %v2096_v2  ;;  %v1589_v39 = vpop.f32.mrf.mxu1 }
 0x121   : > { %v1526_v40 = vpop.f32.mrf.mxu0 }
 0x122   : > { %v1452_v41 = vpack.c.bf16 %v909_v37, %v908_v36  ;;  %v1527_v43 = vadd.f32 %v1526_v40, %v1525_v35  ;;  %v1590_v44 = vpop.f32.mrf.mxu1  ;;  %v878_v46 = vadd.f32 %v1588_v42, %v781_v38 }
 0x123   : > { %v1528_v45 = vpop.f32.mrf.mxu0  ;;  %v1591_v48 = vadd.f32 %v1590_v44, %v1589_v39 }
 0x124   : > { %1472 = vst [vmem:[%s2102_s12 + $0x20] sm:$0xff] %v1452_v41   ;;  %v784_v47 = vadd.f32 %v1527_v43, %v2096_v2  ;;  %v1592_v49 = vpop.f32.mrf.mxu1  ;;  %v910_v55 = vmax.f32 %v878_v46, 0.0 }
 0x125   : > { %v1529_v50 = vpop.f32.mrf.mxu0 }
 0x126   : > { %v881_v51 = vadd.f32 %v1591_v48, %v784_v47  ;;  %v1530_v52 = vadd.f32 %v1529_v50, %v1528_v45  ;;  %v1593_v53 = vpop.f32.mrf.mxu1 }
 0x127   : > { %v1531_v54 = vpop.f32.mrf.mxu0  ;;  %v1594_v61 = vadd.f32 %v1593_v53, %v1592_v49 }
 0x128   : > { %v911_v56 = vmax.f32 %v881_v51, 0.0  ;;  %v789_v57 = vadd.f32 %v1530_v52, %v2096_v2  ;;  %v1595_v58 = vpop.f32.mrf.mxu1 }
 0x129   : > { %v1532_v59 = vpop.f32.mrf.mxu0 }
 0x12a   : > { %v1457_v60 = vpack.c.bf16 %v911_v56, %v910_v55  ;;  %v1533_v62 = vadd.f32 %v1532_v59, %v1531_v54  ;;  %v1596_v63 = vpop.f32.mrf.mxu1  ;;  %v886_v1 = vadd.f32 %v1594_v61, %v789_v57 }
 0x12b   : > { %v1534_v0 = vpop.f32.mrf.mxu0  ;;  %v1597_v4 = vadd.f32 %v1596_v63, %v1595_v58 }
 0x12c   : > { %1473 = vst [vmem:[%s2102_s12 + $0x28] sm:$0xff] %v1457_v60   ;;  %v792_v3 = vadd.f32 %v1533_v62, %v2096_v2  ;;  %v1598_v5 = vpop.f32.mrf.mxu1  ;;  %v912_v11 = vmax.f32 %v886_v1, 0.0 }
 0x12d   : > { %v1535_v6 = vpop.f32.mrf.mxu0 }
 0x12e   : > { %v889_v7 = vadd.f32 %v1597_v4, %v792_v3  ;;  %v1536_v8 = vadd.f32 %v1535_v6, %v1534_v0  ;;  %v1599_v9 = vpop.f32.mrf.mxu1 }
 0x12f   : > { %v1537_v10 = vpop.f32.mrf.mxu0  ;;  %v1600_v17 = vadd.f32 %v1599_v9, %v1598_v5 }
 0x130   : > { %v913_v12 = vmax.f32 %v889_v7, 0.0  ;;  %v797_v13 = vadd.f32 %v1536_v8, %v2096_v2  ;;  %v1601_v14 = vpop.f32.mrf.mxu1 }
 0x131   : > { %v1538_v15 = vpop.f32.mrf.mxu0 }
 0x132   : > { %v1462_v16 = vpack.c.bf16 %v913_v12, %v912_v11  ;;  %v1539_v18 = vadd.f32 %v1538_v15, %v1537_v10  ;;  %v1602_v19 = vpop.f32.mrf.mxu1  ;;  %v894_v20 = vadd.f32 %v1600_v17, %v797_v13 }
 0x133   : > { %v1603_v22 = vadd.f32 %v1602_v19, %v1601_v14 }
 0x134   : > { %1474 = vst [vmem:[%s2102_s12 + $0x30] sm:$0xff] %v1462_v16   ;;  %v800_v21 = vadd.f32 %v1539_v18, %v2096_v2  ;;  %v914_v24 = vmax.f32 %v894_v20, 0.0 }
 0x136   : > { %v897_v23 = vadd.f32 %v1603_v22, %v800_v21 }
 0x138   : > { %v915_v25 = vmax.f32 %v897_v23, 0.0  ;;  %1002 = sbr.rel (!%p1944_p3) target bundleno = 366 (0x16e), region = 36 }
 0x13a   : > { %v1467_v26 = vpack.c.bf16 %v915_v25, %v914_v24 }
 0x13c   : > { %1475 = vst [vmem:[%s2102_s12 + $0x38] sm:$0xff] %v1467_v26  }
 0x13d   : > { %s2248_s23 = smov (!%p1005_p9, %s1004_s23), 16 }
 0x13e   : > { %s1394_s28 = sshll.u32 %s2248_s23, 6 }
 0x13f   : > { %p1397_p10 = scmp.eq.s32.totalorder %s1394_s28, 0 }
 0x140   : > { %s2138_s29 = sshrl.u32 (!%p1397_p10), %s2248_s23, 4 }
 0x141   : > { %1013 = sbr.rel (%p1397_p10) target bundleno = 366 (0x16e), region = 40  ;;  %p1398_p11 = scmp.le.s32.totalorder (!%p1397_p10), %s2138_s29, 0 }
 0x146   : > { %1240 = sbr.rel (%p1398_p11) target bundleno = 349 (0x15d), region = 115  ;;  %s2238_s14 = smov (!%p1398_p11), %s2132_s27 }
 0x147   : > { %s2239_s20 = smov (!%p1398_p11), %s2102_s12  ;;  %s2147_s9 = smov (!%p1398_p11), 0  }
 0x148   : > { %s2149_s30 = smov (!%p1398_p11), 0  }
 0x14b LB: >> { %v1030_v2 = vld [vmem:[%s1866_s20] sm:$0xf]  ;;  %v1032_v27 = vld [vmem:[%s1866_s20 + $0x4] sm:$0xf]  ;;  %v1034_v28 = vld [vmem:[%s1866_s20 + $0x8] sm:$0xf]  ;;  %s1874_s30 = sphi %s2149_s30, %s1024_s30   ;;  %s1870_s9 = sphi %s2147_s9, %s2240_s9   ;;  %s1866_s20 = sphi %s2239_s20, %s1067_s20   ;;  %s1862_s14 = sphi %s2238_s14, %s1068_s14  }
 0x14c   : >> { %1031 = vst [vmem:[%s1862_s14] sm:$0xf] %v1030_v2  ;;  %1033 = vst [vmem:[%s1862_s14 + $0x4] sm:$0xf] %v1032_v27  ;;  %v1036_v29 = vld [vmem:[%s1866_s20 + $0xc] sm:$0xf]  ;;  %s1062_s4 = sadd.s32 1, %s1870_s9 }
 0x14d   : >> { %1035 = vst [vmem:[%s1862_s14 + $0x8] sm:$0xf] %v1034_v28  ;;  %v1038_v30 = vld [vmem:[%s1866_s20 + $0x10] sm:$0xf]  ;;  %v1040_v31 = vld [vmem:[%s1866_s20 + $0x14] sm:$0xf]  ;;  %p1063_p12 = scmp.ge.s32.totalorder %s1062_s4, %s2138_s29 }
 0x14e   : >> { %1037 = vst [vmem:[%s1862_s14 + $0xc] sm:$0xf] %v1036_v29  ;;  %1039 = vst [vmem:[%s1862_s14 + $0x10] sm:$0xf] %v1038_v30  ;;  %v1042_v32 = vld [vmem:[%s1866_s20 + $0x18] sm:$0xf] }
 0x14f   : >> { %1041 = vst [vmem:[%s1862_s14 + $0x14] sm:$0xf] %v1040_v31  ;;  %v1044_v33 = vld [vmem:[%s1866_s20 + $0x1c] sm:$0xf]  ;;  %v1046_v34 = vld [vmem:[%s1866_s20 + $0x20] sm:$0xf] }
 0x150   : >> { %1043 = vst [vmem:[%s1862_s14 + $0x18] sm:$0xf] %v1042_v32  ;;  %1045 = vst [vmem:[%s1862_s14 + $0x1c] sm:$0xf] %v1044_v33  ;;  %v1048_v35 = vld [vmem:[%s1866_s20 + $0x24] sm:$0xf] }
 0x151   : >> { %1047 = vst [vmem:[%s1862_s14 + $0x20] sm:$0xf] %v1046_v34  ;;  %v1050_v36 = vld [vmem:[%s1866_s20 + $0x28] sm:$0xf]  ;;  %v1052_v37 = vld [vmem:[%s1866_s20 + $0x2c] sm:$0xf] }
 0x152   : >> { %1049 = vst [vmem:[%s1862_s14 + $0x24] sm:$0xf] %v1048_v35  ;;  %1051 = vst [vmem:[%s1862_s14 + $0x28] sm:$0xf] %v1050_v36  ;;  %v1054_v38 = vld [vmem:[%s1866_s20 + $0x30] sm:$0xf] }
 0x153   : >> { %1053 = vst [vmem:[%s1862_s14 + $0x2c] sm:$0xf] %v1052_v37  ;;  %v1056_v39 = vld [vmem:[%s1866_s20 + $0x34] sm:$0xf]  ;;  %v1058_v40 = vld [vmem:[%s1866_s20 + $0x38] sm:$0xf] }
 0x154   : >> { %1055 = vst [vmem:[%s1862_s14 + $0x30] sm:$0xf] %v1054_v38  ;;  %1057 = vst [vmem:[%s1862_s14 + $0x34] sm:$0xf] %v1056_v39  ;;  %v1060_v41 = vld [vmem:[%s1866_s20 + $0x3c] sm:$0xf] }
 0x155   : >> { %1059 = vst [vmem:[%s1862_s14 + $0x38] sm:$0xf] %v1058_v40  ;;  %1061 = vst [vmem:[%s1862_s14 + $0x3c] sm:$0xf] %v1060_v41  ;;  %s2250_s4 = smov (%p1063_p12, %s1062_s4), 0  ;;  %s1024_s30 = sadd.s32 1, %s1874_s30  }
 0x156   : >> { %s1399_s6 = sshll.u32 %s2250_s4, 6  ;;  %p1023_p13 = scmp.ge.s32.totalorder %s1024_s30, %s2138_s29 }
 0x157   : >> { %s1067_s20 = scalar_lea.vmem %s2102_s12, %s1399_s6 [#allocation2]   ;;  %s1068_s14 = scalar_lea.vmem %s2132_s27, %s1399_s6  }
 0x158   : >> { %s2240_s9 = smov %s2250_s4  ;;  %1026 = sbr.rel (!%p1023_p13) target bundleno = 331 (0x14b), region = 121 }
 0x15d PF: > { %s2210_s5 = sand.u32 15, %s2248_s23   ;;  %s1427_s7 = sshll.u32 %s2138_s29, 6 }
 0x15e   : > { %s1073_s8 = scalar_lea.vmem %s2102_s12, %s1427_s7 [#allocation2]   ;;  %s1075_s10 = scalar_lea.vmem %s2132_s27, %s1427_s7  }
 0x15f   : > { %p1404_p0 = scmp.le.s32.totalorder %s2210_s5, 0 }
 0x160   : > { %s1876_s11 = smov (!%p1404_p0), %s1075_s10   ;;  %s1880_s17 = smov (!%p1404_p0), %s1073_s8  }
 0x161   : > { %1254 = sbr.rel (%p1404_p0) target bundleno = 366 (0x16e), region = 126  ;;  %s1884_s19 = smov (!%p1404_p0), 0  }
 0x162   : > { %s1888_s21 = smov (!%p1404_p0), 0  }
 0x166 LB: >> { %v1085_v42 = vld [vmem:[%s1882_s17] sm:$0xf]  ;;  %s1087_s23 = sadd.s32 1, %s1886_s19  ;;  %s1079_s21 = sadd.s32 1, %s1890_s21   ;;  %s1890_s21 = sphi %s1888_s21, %s1079_s21   ;;  %s1886_s19 = sphi %s1884_s19, %s1885_s19   ;;  %s1882_s17 = sphi %s1880_s17, %s1092_s17   ;;  %s1878_s11 = sphi %s1876_s11, %s1093_s11  }
 0x167   : >> { %1086 = vst [vmem:[%s1878_s11] sm:$0xf] %v1085_v42  ;;  %p1088_p1 = scmp.ge.s32.totalorder %s1087_s23, %s2210_s5  ;;  %p1078_p2 = scmp.ge.s32.totalorder %s1079_s21, %s2210_s5 }
 0x169   : >> { %s2252_s23 = smov (%p1088_p1, %s1087_s23), 0  ;;  %1081 = sbr.rel (!%p1078_p2) target bundleno = 358 (0x166), region = 132 }
 0x16a   : >> { %s1405_s12 = sshll.u32 %s2252_s23, 2  ;;  %s1885_s19 = smov %s2252_s23  }
 0x16b   : >> { %s1092_s17 = scalar_lea.vmem %s1073_s8, %s1405_s12 [#allocation2]   ;;  %s1093_s11 = scalar_lea.vmem %s1075_s10, %s1405_s12  }
 0x16e PF: > { %s13_s16 = sadd.s32 1, %s1858_s16   ;;  %s2241_s12 = smov %s1846_s13 }
 0x16f   : > { %p10_p3 = scmp.ge.s32.totalorder %s13_s16, 4   ;;  %s2242_s13 = smov %s1953_s22 }
 0x170   : > { %s2243_s14 = smov %s1854_s15  ;;  %s2244_s15 = smov %s2246_s18 }
 0x171   :  { %12 = sbr.rel (!%p10_p3) target bundleno = 3 (0x3), region = 143 }

// kernel: deep_q_forward.6
= control target key start
LH: loop header
LB: loop body
LE: loop exit
PB: predicated region body
PF: predicated region fallthrough
CT: control target
= control target key end

     0   :  { %s2005_s12 = smov 0   ;;  %s2007_s13 = smov 0   ;;  %s2307_s0 = inlined_call_operand.vmem [shape: bf16[98,640], index: 0, kind: input, shape index: {}]   ;;  %s2308_s1 = inlined_call_operand.vmem [shape: bf16[640,128], index: 1, kind: input, shape index: {}]   ;;  %s2309_s2 = inlined_call_operand.vmem [shape: f32[1,128], index: 2, kind: input, shape index: {}]   ;;  %s2310_s3 = inlined_call_operand.vmem [shape: bf16[98,128], index: 3, kind: output, shape index: {}]  }
   0x1   :  { %s2009_s14 = smov 0   ;;  %s2011_s15 = smov 0  }
   0x2   :  { %s2013_s16 = smov 0  }
   0x3 LB: > { %s1376_s17 = sadd.s32 4294967295, %s1951_s16   ;;  %s25_s18 = sadd.s32 1, %s1947_s15  ;;  %s1951_s16 = sphi %s2013_s16, %s13_s16   ;;  %s1947_s15 = sphi %s2011_s15, %s2318_s15   ;;  %s1943_s14 = sphi %s2009_s14, %s2317_s14   ;;  %s1939_s13 = sphi %s2007_s13, %s2316_s13   ;;  %s1935_s12 = sphi %s2005_s12, %s2315_s12  }
   0x4   : > { %p27_p0 = scmp.ge.s32.totalorder %s25_s18, 2  ;;  %s107_s19 = sadd.s32 1, %s1939_s13 }
   0x5   : > { %p117_p1 = scmp.ne.s32.totalorder %s1939_s13, %s1935_s12  ;;  %p118_p2 = scmp.eq.s32.totalorder %s1376_s17, 1 }
   0x6   : > { %s2320_s18 = smov (%p27_p0, %s25_s18), 0  ;;  %p1381_p4 = scmp.ge.s32.totalorder %s1951_s16, 1 }
   0x7   : > { %p2037_p3 = por %p118_p2, %p117_p1  ;;  %s104_s21 = ssub.s32 %s1947_s15, %s2320_s18 }
   0x8   : > { %p179_p5 = scmp.lt.s32.totalorder %s1951_s16, 3  ;;  %p105_p6 = scmp.eq.s32.totalorder %s104_s21, 0 }
   0xa   : > { %p180_p7 = pnand %p1381_p4, %p179_p5 }
   0xb   : > { %s2046_s22 = scalar_select %p105_p6, %s1939_s13, %s107_s19  }
   0xc   : > { %183 = sbr.rel (%p180_p7) target bundleno = 375 (0x177), region = 32  ;;  %s214_s11 = sand.u32 (!%p180_p7), 1, %s1935_s12  }
   0xd   : > { %s2091_s5 = smul.u32 (!%p180_p7), 12, %s1943_s14 }
   0xe   : > { %s2226_s17 = smul.u32 (!%p180_p7), 48, %s214_s11 }
   0xf   : > { %p224_p8 = scmp.lt.s32.totalorder (!%p180_p7), %s2091_s5, 12 }
  0x10   : > { %s2233_s12 = scalar_lea.vmem (!%p180_p7), [#allocation2], %s2226_s17  }
  0x11   : > { %v1795_v0 = vld [vmem:[%s2308_s1 + $0x78] sm:$0xff]   ;;  %v1799_v4 = vld [vmem:[%s2308_s1 + $0x70] sm:$0xff]   ;;  %v1803_v8 = vld [vmem:[%s2308_s1 + $0x68] sm:$0xff]   ;;  %s225_s30 = scalar_select %p224_p8, %s2091_s5, 12 }
  0x12   : > { %v1796_v1 = vld [vmem:[%s2308_s1 + $0xf8] sm:$0xff]   ;;  %1526 = vmatprep.subr.bf16.mxu0 %v1795_v0  ;;  %v1800_v5 = vld [vmem:[%s2308_s1 + $0xf0] sm:$0xff]   ;;  %v1804_v9 = vld [vmem:[%s2308_s1 + $0xe8] sm:$0xff]   ;;  %s1490_s21 = smul.u32 (%p2037_p3), 48, %s1943_s14 }
  0x13   : > { %v1797_v2 = vld [vmem:[%s2308_s1 + $0x38] sm:$0xff]   ;;  %1578 = vmatprep.subr.bf16.mxu1 %v1796_v1  ;;  %v1801_v6 = vld [vmem:[%s2308_s1 + $0x30] sm:$0xff]   ;;  %v1805_v10 = vld [vmem:[%s2308_s1 + $0x28] sm:$0xff]   ;;  %s1689_s19 = smul.u32 20, %s225_s30 }
  0x14   : > { %v1798_v3 = vld [vmem:[%s2308_s1 + $0xb8] sm:$0xff]   ;;  %1527 = vmatpush3.bf16.msra.mxu0 %v1797_v2  ;;  %v1802_v7 = vld [vmem:[%s2308_s1 + $0xb0] sm:$0xff]   ;;  %v1806_v11 = vld [vmem:[%s2308_s1 + $0xa8] sm:$0xff]   ;;  %s2250_s25 = scalar_lea.vmem (%p2037_p3), %s2310_s3, %s1490_s21  }
  0x15   : > { %1579 = vmatpush3.bf16.msra.mxu1 %v1798_v3  ;;  %1528 = vmatprep.subr.bf16.mxu0 %v1799_v4  ;;  %v1807_v12 = vld [vmem:[%s2308_s1 + $0x60] sm:$0xff]   ;;  %v1811_v16 = vld [vmem:[%s2308_s1 + $0x58] sm:$0xff]   ;;  %v1815_v20 = vld [vmem:[%s2308_s1 + $0x50] sm:$0xff]   ;;  %s2146_s6 = scalar_lea.vmem %s2307_s0, %s1689_s19  ;;  %s1093_s19 = ssub.s32 (%p2037_p3), 13, %s2091_s5 }
  0x16   : > { %1580 = vmatprep.subr.bf16.mxu1 %v1800_v5  ;;  %v1808_v13 = vld [vmem:[%s2308_s1 + $0xe0] sm:$0xff]   ;;  %v1812_v17 = vld [vmem:[%s2308_s1 + $0xd8] sm:$0xff]   ;;  %v1816_v21 = vld [vmem:[%s2308_s1 + $0xd0] sm:$0xff]   ;;  %p1094_p9 = scmp.lt.s32.totalorder (%p2037_p3), %s1093_s19, 12 }
  0x17   : > { %v1809_v14 = vld [vmem:[%s2308_s1 + $0x20] sm:$0xff]   ;;  %v1813_v18 = vld [vmem:[%s2308_s1 + $0x18] sm:$0xff]   ;;  %v1817_v22 = vld [vmem:[%s2308_s1 + $0x10] sm:$0xff]  }
  0x18   : > { %1529 = vmatpush3.bf16.msra.mxu0 %v1801_v6  ;;  %v1810_v15 = vld [vmem:[%s2308_s1 + $0xa0] sm:$0xff]   ;;  %v1814_v19 = vld [vmem:[%s2308_s1 + $0x98] sm:$0xff]   ;;  %v1818_v23 = vld [vmem:[%s2308_s1 + $0x90] sm:$0xff]  }
  0x19   : > { %1581 = vmatpush3.bf16.msra.mxu1 %v1802_v7  ;;  %1530 = vmatprep.subr.bf16.mxu0 %v1803_v8  ;;  %v1819_v24 = vld [vmem:[%s2308_s1 + $0x48] sm:$0xff]   ;;  %v1823_v28 = vld [vmem:[%s2308_s1 + $0x40] sm:$0xff]   ;;  %v1833_v36 = vld [vmem:[%s2308_s1 + $0x138] sm:$0xff]  }
  0x1a   : > { %1582 = vmatprep.subr.bf16.mxu1 %v1804_v9  ;;  %v1820_v25 = vld [vmem:[%s2308_s1 + $0xc8] sm:$0xff]   ;;  %v1824_v29 = vld [vmem:[%s2308_s1 + $0xc0] sm:$0xff]   ;;  %v1834_v37 = vld [vmem:[%s2308_s1 + $0x130] sm:$0xff]  }
  0x1b   : > { %v1821_v26 = vld [vmem:[%s2308_s1 + $0x8] sm:$0xff]   ;;  %v1825_v30 = vld [vmem:[%s2308_s1] sm:$0xff]   ;;  %v1844_v44 = vld [vmem:[%s2146_s6 + $0x5c] ss:$20 sps:$4 sm:$0xff]  }
  0x1c   : > { %1531 = vmatpush3.bf16.msra.mxu0 %v1805_v10  ;;  %v1822_v27 = vld [vmem:[%s2308_s1 + $0x88] sm:$0xff]   ;;  %v1826_v31 = vld [vmem:[%s2308_s1 + $0x80] sm:$0xff]   ;;  %v1855_v47 = vld [vmem:[%s2308_s1 + $0x118] sm:$0xff]  }
  0x1d   : > { %1583 = vmatpush3.bf16.msra.mxu1 %v1806_v11  ;;  %1532 = vmatprep.subr.bf16.mxu0 %v1807_v12  ;;  %v1827_v32 = vld [vmem:[%s2146_s6] ss:$20 sps:$4 sm:$0xff]   ;;  %v1829_v33 = vld [vmem:[%s2146_s6 + $0x4] ss:$20 sps:$4 sm:$0xff]   ;;  %v1830_v34 = vld [vmem:[%s2146_s6 + $0x8] ss:$20 sps:$4 sm:$0xff]  }
  0x1e   : > { %1584 = vmatprep.subr.bf16.mxu1 %v1808_v13  ;;  %v1832_v35 = vld [vmem:[%s2146_s6 + $0xc] ss:$20 sps:$4 sm:$0xff]   ;;  %802 = vmatprep.mubr.bf16.mxu0 %v1829_v33  ;;  %v1837_v39 = vld [vmem:[%s2146_s6 + $0x34] ss:$20 sps:$4 sm:$0xff]   ;;  %v1840_v41 = vld [vmem:[%s2146_s6 + $0x30] ss:$20 sps:$4 sm:$0xff]  }
  0x1f   : > { %883 = vmatprep.mubr.bf16.mxu1 %v1832_v35  ;;  %v1835_v38 = vld [vmem:[%s2146_s6 + $0x2c] ss:$20 sps:$4 sm:$0xff]   ;;  %v1839_v40 = vld [vmem:[%s2146_s6 + $0x28] ss:$20 sps:$4 sm:$0xff]   ;;  %v1846_v46 = vld [vmem:[%s2146_s6 + $0x50] ss:$20 sps:$4 sm:$0xff]  }
  0x20   : > { %1533 = vmatpush3.bf16.msra.mxu0 %v1809_v14  ;;  %v1841_v42 = vld [vmem:[%s2308_s1 + $0x128] sm:$0xff]   ;;  %v1848_v45 = vld [vmem:[%s2308_s1 + $0x120] sm:$0xff]   ;;  %v1849_v49 = vld [vmem:[%s2146_s6 + $0x7c] ss:$20 sps:$4 sm:$0xff]  }
  0x21   : > { %1585 = vmatpush3.bf16.msra.mxu1 %v1810_v15  ;;  %1534 = vmatprep.subr.bf16.mxu0 %v1811_v16  ;;  %v1842_v43 = vld [vmem:[%s2146_s6 + $0x54] ss:$20 sps:$4 sm:$0xff]   ;;  %v1847_v48 = vld [vmem:[%s2146_s6 + $0x58] ss:$20 sps:$4 sm:$0xff]   ;;  %v1870_v57 = vld [vmem:[%s2308_s1 + $0x100] sm:$0xff]  }
  0x22   : > { %1586 = vmatprep.subr.bf16.mxu1 %v1812_v17  ;;  %v1851_v50 = vld [vmem:[%s2146_s6 + $0x84] ss:$20 sps:$4 sm:$0xff]   ;;  %v1856_v51 = vld [vmem:[%s2308_s1 + $0x110] sm:$0xff]   ;;  %v1863_v53 = vld [vmem:[%s2308_s1 + $0x108] sm:$0xff]  }
  0x23   : > { %v1853_v52 = vld [vmem:[%s2146_s6 + $0x78] ss:$20 sps:$4 sm:$0xff]   ;;  %v1854_v54 = vld [vmem:[%s2146_s6 + $0x80] ss:$20 sps:$4 sm:$0xff]   ;;  %v1862_v59 = vld [vmem:[%s2146_s6 + $0xa8] ss:$20 sps:$4 sm:$0xff]  }
  0x24   : > { %1535 = vmatpush3.bf16.msra.mxu0 %v1813_v18  ;;  %v1857_v55 = vld [vmem:[%s2146_s6 + $0xa4] ss:$20 sps:$4 sm:$0xff]   ;;  %v1859_v56 = vld [vmem:[%s2146_s6 + $0xac] ss:$20 sps:$4 sm:$0xff]   ;;  %v1866_v61 = vld [vmem:[%s2146_s6 + $0xd4] ss:$20 sps:$4 sm:$0xff]  }
  0x25   : > { %1587 = vmatpush3.bf16.msra.mxu1 %v1814_v19  ;;  %1536 = vmatprep.subr.bf16.mxu0 %v1815_v20  ;;  %v1861_v58 = vld [vmem:[%s2146_s6 + $0xa0] ss:$20 sps:$4 sm:$0xff]   ;;  %v1868_v62 = vld [vmem:[%s2146_s6 + $0xc8] ss:$20 sps:$4 sm:$0xff]   ;;  %v1869_v63 = vld [vmem:[%s2146_s6 + $0xd0] ss:$20 sps:$4 sm:$0xff]  }
  0x26   : > { %1588 = vmatprep.subr.bf16.mxu1 %v1816_v21  ;;  %v1864_v60 = vld [vmem:[%s2146_s6 + $0xcc] ss:$20 sps:$4 sm:$0xff]   ;;  %v1871_v0 = vld [vmem:[%s2146_s6 + $0x10] ss:$20 sps:$4 sm:$0xff]   ;;  %v1874_v3 = vld [vmem:[%s2146_s6 + $0x88] ss:$20 sps:$4 sm:$0xff]  }
  0x27   : > { %v1872_v1 = vld [vmem:[%s2146_s6 + $0x60] ss:$20 sps:$4 sm:$0xff]   ;;  %v1873_v2 = vld [vmem:[%s2146_s6 + $0x38] ss:$20 sps:$4 sm:$0xff]   ;;  %v1875_v4 = vld [vmem:[%s2146_s6 + $0xb0] ss:$20 sps:$4 sm:$0xff]  }
  0x28   : > { %1537 = vmatpush3.bf16.msra.mxu0 %v1817_v22  ;;  %v1876_v5 = vld [vmem:[%s2146_s6 + $0xd8] ss:$20 sps:$4 sm:$0xff]  }
  0x29   : > { %1589 = vmatpush3.bf16.msra.mxu1 %v1818_v23  ;;  %1538 = vmatprep.subr.bf16.mxu0 %v1819_v24 }
  0x2a   : > { %1590 = vmatprep.subr.bf16.mxu1 %v1820_v25 }
  0x2c   : > { %1539 = vmatpush3.bf16.msra.mxu0 %v1821_v26 }
  0x2d   : > { %1591 = vmatpush3.bf16.msra.mxu1 %v1822_v27  ;;  %1540 = vmatprep.subr.bf16.mxu0 %v1823_v28 }
  0x2e   : > { %1592 = vmatprep.subr.bf16.mxu1 %v1824_v29 }
  0x30   : > { %1541 = vmatpush3.bf16.msra.mxu0 %v1825_v30 }
  0x31   : > { %1593 = vmatpush3.bf16.msra.mxu1 %v1826_v31  ;;  %1644 = vmatprep.subr.bf16.mxu0 %v1833_v36 }
  0x32   : > { %1672 = vmatprep.subr.bf16.mxu1 %v1833_v36 }
  0x33   : > { %803 = vmatmul.mubr.bf16.vlgmr.msra.gmra.mxu0 %v1827_v32 }
  0x34   : > { %884 = vmatmul.mubr.bf16.vlgmr.msra.gmra.mxu1 %v1830_v34  ;;  %810 = vmatprep.mubr.bf16.mxu0 %v1835_v38 }
  0x35   : > { %1680 = vmatpush3.bf16.msra.mxu1 %v1833_v36  ;;  %891 = vmatprep.mubr.bf16.mxu1 %v1837_v39 }
  0x36   : > { %1673 = vmatprep.subr.bf16.mxu1 %v1834_v37  ;;  %1645 = vmatpush3.bf16.msra.mxu0 %v1833_v36 }
  0x37   : > { %1646 = vmatprep.subr.bf16.mxu0 %v1834_v37 }
  0x39   : > { %1681 = vmatpush3.bf16.msra.mxu1 %v1834_v37 }
  0x3a   : > { %1674 = vmatprep.subr.bf16.mxu1 %v1841_v42  ;;  %1647 = vmatpush3.bf16.msra.mxu0 %v1834_v37 }
  0x3b   : > { %811 = vmatmul.mubr.bf16.gmra.mxu0 %v1839_v40  ;;  %1648 = vmatprep.subr.bf16.mxu0 %v1841_v42 }
  0x3c   : > { %892 = vmatmul.mubr.bf16.gmra.mxu1 %v1840_v41  ;;  %818 = vmatprep.mubr.bf16.mxu0 %v1842_v43 }
  0x3d   : > { %1682 = vmatpush3.bf16.msra.mxu1 %v1841_v42  ;;  %899 = vmatprep.mubr.bf16.mxu1 %v1844_v44 }
  0x3e   : > { %1675 = vmatprep.subr.bf16.mxu1 %v1848_v45  ;;  %1649 = vmatpush3.bf16.msra.mxu0 %v1841_v42 }
  0x3f   : > { %1650 = vmatprep.subr.bf16.mxu0 %v1848_v45 }
  0x41   : > { %1683 = vmatpush3.bf16.msra.mxu1 %v1848_v45 }
  0x42   : > { %1676 = vmatprep.subr.bf16.mxu1 %v1855_v47  ;;  %1651 = vmatpush3.bf16.msra.mxu0 %v1848_v45 }
  0x43   : > { %819 = vmatmul.mubr.bf16.gmra.mxu0 %v1846_v46  ;;  %1652 = vmatprep.subr.bf16.mxu0 %v1855_v47  ;;  %v2213_v46 = vld [vmem:[%s2309_s2] ss:$0 sm:$0xff] }
  0x44   : > { %900 = vmatmul.mubr.bf16.gmra.mxu1 %v1847_v48  ;;  %826 = vmatprep.mubr.bf16.mxu0 %v1849_v49 }
  0x45   : > { %907 = vmatprep.mubr.bf16.mxu1 %v1851_v50  ;;  %1684 = vmatpush3.bf16.msra.mxu1 %v1855_v47 }
  0x46   : > { %1677 = vmatprep.subr.bf16.mxu1 %v1856_v51  ;;  %1653 = vmatpush3.bf16.msra.mxu0 %v1855_v47 }
  0x47   : > { %1654 = vmatprep.subr.bf16.mxu0 %v1856_v51 }
  0x49   : > { %1685 = vmatpush3.bf16.msra.mxu1 %v1856_v51 }
  0x4a   : > { %1678 = vmatprep.subr.bf16.mxu1 %v1863_v53  ;;  %1655 = vmatpush3.bf16.msra.mxu0 %v1856_v51 }
  0x4b   : > { %827 = vmatmul.mubr.bf16.gmra.mxu0 %v1853_v52  ;;  %1656 = vmatprep.subr.bf16.mxu0 %v1863_v53 }
  0x4c   : > { %908 = vmatmul.mubr.bf16.gmra.mxu1 %v1854_v54  ;;  %834 = vmatprep.mubr.bf16.mxu0 %v1857_v55 }
  0x4d   : > { %915 = vmatprep.mubr.bf16.mxu1 %v1859_v56  ;;  %1686 = vmatpush3.bf16.msra.mxu1 %v1863_v53 }
  0x4e   : > { %1679 = vmatprep.subr.bf16.mxu1 %v1870_v57  ;;  %1657 = vmatpush3.bf16.msra.mxu0 %v1863_v53 }
  0x4f   : > { %1658 = vmatprep.subr.bf16.mxu0 %v1870_v57 }
  0x51   : > { %1687 = vmatpush3.bf16.msra.mxu1 %v1870_v57 }
  0x52   : > { %1659 = vmatpush3.bf16.msra.mxu0 %v1870_v57 }
  0x53   : > { %835 = vmatmul.mubr.bf16.gmra.mxu0 %v1861_v58 }
  0x54   : > { %916 = vmatmul.mubr.bf16.gmra.mxu1 %v1862_v59  ;;  %842 = vmatprep.mubr.bf16.mxu0 %v1864_v60 }
  0x55   : > { %923 = vmatprep.mubr.bf16.mxu1 %v1866_v61 }
  0x5b   : > { %843 = vmatmul.mubr.bf16.gmra.mxu0 %v1868_v62 }
  0x5c   : > { %924 = vmatmul.mubr.bf16.gmra.mxu1 %v1869_v63  ;;  %1660 = vmatprep.mubr.bf16.mxu0 %v1871_v0 }
  0x5d   : > { %1664 = vmatprep.mubr.bf16.mxu1 %v1872_v1 }
  0x63   : > { %1661 = vmatmul.mubr.bf16.vlgmr.msra.gmra.mxu0 %v1873_v2 }
  0x64   : > { %1665 = vmatmul.mubr.bf16.vlgmr.msra.gmra.mxu1 %v1874_v3 }
  0x65   : > { %1668 = vmatprep.mubr.bf16.mxu1 %v1875_v4 }
  0x6c   : > { %1669 = vmatmul.mubr.bf16.gmra.mxu1 %v1876_v5 }
  0xf3   : > { %v1542_v6 = vpop.f32.mrf.mxu0 }
  0xf4   : > { %v1594_v7 = vpop.f32.mrf.mxu1 }
  0xf5   : > { %v1543_v8 = vpop.f32.mrf.mxu0 }
  0xf6   : > { %v1595_v9 = vpop.f32.mrf.mxu1  ;;  %v1544_v44 = vadd.f32 %v1543_v8, %v1542_v6 }
  0xf7   : > { %v1545_v10 = vpop.f32.mrf.mxu0  ;;  %v1596_v58 = vadd.f32 %v1595_v9, %v1594_v7 }
  0xf8   : > { %v1597_v11 = vpop.f32.mrf.mxu1  ;;  %v805_v51 = vadd.f32 %v1544_v44, %v2213_v46 }
  0xf9   : > { %v1546_v12 = vpop.f32.mrf.mxu0 }
  0xfa   : > { %v1598_v13 = vpop.f32.mrf.mxu1  ;;  %v1547_v54 = vadd.f32 %v1546_v12, %v1545_v10  ;;  %v886_v3 = vadd.f32 %v1596_v58, %v805_v51 }
  0xfb   : > { %v1548_v14 = vpop.f32.mrf.mxu0  ;;  %v1599_v5 = vadd.f32 %v1598_v13, %v1597_v11 }
  0xfc   : > { %v1600_v15 = vpop.f32.mrf.mxu1  ;;  %v808_v4 = vadd.f32 %v1547_v54, %v2213_v46 }
  0xfd   : > { %v1549_v16 = vpop.f32.mrf.mxu0 }
  0xfe   : > { %v1601_v17 = vpop.f32.mrf.mxu1  ;;  %v1550_v48 = vadd.f32 %v1549_v16, %v1548_v14 }
  0xff   : > { %v1551_v18 = vpop.f32.mrf.mxu0  ;;  %v1602_v0 = vadd.f32 %v1601_v17, %v1600_v15 }
 0x100   : > { %v1603_v19 = vpop.f32.mrf.mxu1  ;;  %v813_v59 = vadd.f32 %v1550_v48, %v2213_v46 }
 0x101   : > { %v1552_v20 = vpop.f32.mrf.mxu0 }
 0x102   : > { %v1604_v21 = vpop.f32.mrf.mxu1  ;;  %v1553_v55 = vadd.f32 %v1552_v20, %v1551_v18  ;;  %v894_v14 = vadd.f32 %v1602_v0, %v813_v59 }
 0x103   : > { %v1554_v22 = vpop.f32.mrf.mxu0  ;;  %v1605_v16 = vadd.f32 %v1604_v21, %v1603_v19 }
 0x104   : > { %v1606_v23 = vpop.f32.mrf.mxu1  ;;  %v816_v6 = vadd.f32 %v1553_v55, %v2213_v46 }
 0x105   : > { %v1555_v24 = vpop.f32.mrf.mxu0 }
 0x106   : > { %v1607_v25 = vpop.f32.mrf.mxu1  ;;  %v1556_v56 = vadd.f32 %v1555_v24, %v1554_v22 }
 0x107   : > { %v1557_v26 = vpop.f32.mrf.mxu0  ;;  %v1608_v17 = vadd.f32 %v1607_v25, %v1606_v23 }
 0x108   : > { %v1609_v27 = vpop.f32.mrf.mxu1  ;;  %v821_v8 = vadd.f32 %v1556_v56, %v2213_v46 }
 0x109   : > { %v1558_v28 = vpop.f32.mrf.mxu0 }
 0x10a   : > { %v1610_v29 = vpop.f32.mrf.mxu1  ;;  %v1559_v60 = vadd.f32 %v1558_v28, %v1557_v26 }
 0x10b   : > { %v1560_v30 = vpop.f32.mrf.mxu0  ;;  %v1611_v18 = vadd.f32 %v1610_v29, %v1609_v27 }
 0x10c   : > { %v1612_v31 = vpop.f32.mrf.mxu1  ;;  %v824_v9 = vadd.f32 %v1559_v60, %v2213_v46 }
 0x10d   : > { %v1561_v32 = vpop.f32.mrf.mxu0 }
 0x10e   : > { %v1613_v33 = vpop.f32.mrf.mxu1  ;;  %v1562_v52 = vadd.f32 %v1561_v32, %v1560_v30  ;;  %v902_v32 = vadd.f32 %v1608_v17, %v821_v8  ;;  %v905_v23 = vadd.f32 %v1611_v18, %v824_v9 }
 0x10f   : > { %v1563_v34 = vpop.f32.mrf.mxu0  ;;  %v1614_v10 = vadd.f32 %v1613_v33, %v1612_v31  ;;  %v889_v31 = vadd.f32 %v1599_v5, %v808_v4 }
 0x110   : > { %v1615_v35 = vpop.f32.mrf.mxu1  ;;  %v829_v1 = vadd.f32 %v1562_v52, %v2213_v46 }
 0x111   : > { %v1564_v36 = vpop.f32.mrf.mxu0 }
 0x112   : > { %v1616_v37 = vpop.f32.mrf.mxu1  ;;  %v1565_v61 = vadd.f32 %v1564_v36, %v1563_v34  ;;  %v910_v26 = vadd.f32 %v1614_v10, %v829_v1  ;;  %v897_v36 = vadd.f32 %v1605_v16, %v816_v6 }
 0x113   : > { %v1566_v38 = vpop.f32.mrf.mxu0  ;;  %v1617_v24 = vadd.f32 %v1616_v37, %v1615_v35 }
 0x114   : > { %v1618_v39 = vpop.f32.mrf.mxu1  ;;  %v832_v12 = vadd.f32 %v1565_v61, %v2213_v46 }
 0x115   : > { %v1567_v40 = vpop.f32.mrf.mxu0 }
 0x116   : > { %v1619_v41 = vpop.f32.mrf.mxu1  ;;  %v1568_v11 = vadd.f32 %v1567_v40, %v1566_v38  ;;  %v913_v21 = vadd.f32 %v1617_v24, %v832_v12 }
 0x117   : > { %v1569_v42 = vpop.f32.mrf.mxu0  ;;  %v1620_v25 = vadd.f32 %v1619_v41, %v1618_v39 }
 0x118   : > { %v2208_v43 = vpop.f32.mrf.mxu1  ;;  %v837_v38 = vadd.f32 %v1568_v11, %v2213_v46 }
 0x119   : > { %v1570_v45 = vpop.f32.mrf.mxu0 }
 0x11a   : > { %v2215_v47 = vpop.f32.mrf.mxu1  ;;  %v1571_v13 = vadd.f32 %v1570_v45, %v1569_v42 }
 0x11b   : > { %v1572_v49 = vpop.f32.mrf.mxu0  ;;  %v1623_v4 = vadd.f32 %v2215_v47, %v2208_v43 }
 0x11c   : > { %v1624_v50 = vpop.f32.mrf.mxu1  ;;  %v840_v40 = vadd.f32 %v1571_v13, %v2213_v46 }
 0x11d   : > { %v1573_v53 = vpop.f32.mrf.mxu0 }
 0x11e   : > { %v1625_v57 = vpop.f32.mrf.mxu1  ;;  %v1574_v20 = vadd.f32 %v1573_v53, %v1572_v49  ;;  %v921_v10 = vadd.f32 %v1623_v4, %v840_v40 }
 0x11f   : > { %v1575_v62 = vpop.f32.mrf.mxu0  ;;  %v1626_v49 = vadd.f32 %v1625_v57, %v1624_v50  ;;  %v918_v50 = vadd.f32 %v1620_v25, %v837_v38 }
 0x120   : > { %v1627_v63 = vpop.f32.mrf.mxu1  ;;  %v845_v27 = vadd.f32 %v1574_v20, %v2213_v46 }
 0x121   : > { %v1576_v2 = vpop.f32.mrf.mxu0 }
 0x122   : > { %v1628_v7 = vpop.f32.mrf.mxu1  ;;  %v1577_v33 = vadd.f32 %v1576_v2, %v1575_v62  ;;  %v926_v61 = vadd.f32 %v1626_v49, %v845_v27 }
 0x123   : > { %v1662_v15 = vpop.f32.mrf.mxu0  ;;  %v1629_v0 = vadd.f32 %v1628_v7, %v1627_v63 }
 0x124   : > { %v1666_v22 = vpop.f32.mrf.mxu1  ;;  %v975_v30 = vadd.f32 %v1662_v15, %v894_v14  ;;  %v848_v39 = vadd.f32 %v1577_v33, %v2213_v46 }
 0x125   : > { %v966_v28 = vpop.f32.mrf.mxu0  ;;  %v991_v44 = vadd.f32 %v1666_v22, %v910_v26 }
 0x126   : > { %v982_v34 = vpop.f32.mrf.mxu1  ;;  %v967_v29 = vadd.f32 %v966_v28, %v886_v3  ;;  %v1015_v51 = vmax.f32 %v975_v30, 0.0  ;;  %v929_v6 = vadd.f32 %v1629_v0, %v848_v39 }
 0x127   : > { %v1663_v19 = vpop.f32.mrf.mxu0  ;;  %v983_v42 = vadd.f32 %v982_v34, %v902_v32  ;;  %v1019_v41 = vmax.f32 %v991_v44, 0.0 }
 0x128   : > { %v978_v35 = vadd.f32 %v1663_v19, %v897_v36  ;;  %v1667_v37 = vpop.f32.mrf.mxu1  ;;  %v1013_v58 = vmax.f32 %v967_v29, 0.0 }
 0x129   : > { %v994_v45 = vadd.f32 %v1667_v37, %v913_v21  ;;  %v969_v48 = vpop.f32.mrf.mxu0  ;;  %v1017_v1 = vmax.f32 %v983_v42, 0.0 }
 0x12a   : > { %v1016_v52 = vmax.f32 %v978_v35, 0.0  ;;  %v970_v53 = vadd.f32 %v969_v48, %v889_v31  ;;  %v985_v54 = vpop.f32.mrf.mxu1 }
 0x12b   : > { %v1020_v55 = vmax.f32 %v994_v45, 0.0  ;;  %v986_v56 = vadd.f32 %v985_v54, %v905_v23 }
 0x12c   : > { %v1499_v59 = vpack.c.bf16 %v1016_v52, %v1015_v51  ;;  %v1014_v60 = vmax.f32 %v970_v53, 0.0  ;;  %v1670_v62 = vpop.f32.mrf.mxu1 }
 0x12d   : > { %v1509_v2 = vpack.c.bf16 %v1020_v55, %v1019_v41  ;;  %v1018_v3 = vmax.f32 %v986_v56, 0.0  ;;  %v1007_v63 = vadd.f32 %v1670_v62, %v926_v61 }
 0x12e   : > { %1521 = vst [vmem:[%s2233_s12 + $0x8] sm:$0xff] %v1499_v59   ;;  %v1494_v46 = vpack.c.bf16 %v1014_v60, %v1013_v58  ;;  %v998_v57 = vpop.f32.mrf.mxu1 }
 0x12f   : > { %1523 = vst [vmem:[%s2233_s12 + $0x18] sm:$0xff] %v1509_v2   ;;  %v1504_v5 = vpack.c.bf16 %v1018_v3, %v1017_v1  ;;  %v999_v7 = vadd.f32 %v998_v57, %v918_v50  ;;  %v1023_v14 = vmax.f32 %v1007_v63, 0.0 }
 0x130   : > { %1495 = vst [vmem:[%s2233_s12] sm:$0xff] %v1494_v46   ;;  %v1671_v8 = vpop.f32.mrf.mxu1 }
 0x131   : > { %1522 = vst [vmem:[%s2233_s12 + $0x10] sm:$0xff] %v1504_v5   ;;  %v1010_v9 = vadd.f32 %v1671_v8, %v929_v6  ;;  %v1021_v17 = vmax.f32 %v999_v7, 0.0 }
 0x132   : > { %v1001_v12 = vpop.f32.mrf.mxu1 }
 0x133   : > { %v1024_v15 = vmax.f32 %v1010_v9, 0.0  ;;  %v1002_v16 = vadd.f32 %v1001_v12, %v921_v10 }
 0x135   : > { %v1519_v18 = vpack.c.bf16 %v1024_v15, %v1023_v14  ;;  %v1022_v20 = vmax.f32 %v1002_v16, 0.0  ;;  %1091 = sbr.rel (!%p2037_p3) target bundleno = 375 (0x177), region = 36 }
 0x137   : > { %1525 = vst [vmem:[%s2233_s12 + $0x28] sm:$0xff] %v1519_v18   ;;  %v1514_v43 = vpack.c.bf16 %v1022_v20, %v1021_v17 }
 0x139   : > { %1524 = vst [vmem:[%s2233_s12 + $0x20] sm:$0xff] %v1514_v43  }
 0x13a   : > { %s2322_s19 = smov (!%p1094_p9, %s1093_s19), 12 }
 0x13b   : > { %s1466_s26 = sshll.u32 %s2322_s19, 6 }
 0x13c   : > { %p1469_p10 = scmp.eq.s32.totalorder %s1466_s26, 0 }
 0x13d   : > { %1877 = sdivrem.u32 (!%p1469_p10), %s2322_s19, 12 }
 0x13e   : > { %1102 = sbr.rel (%p1469_p10) target bundleno = 375 (0x177), region = 40 }
 0x146   : > { %s2256_s20 = spop.drf %1877 }
 0x147   : > { %p1470_p11 = scmp.le.s32.totalorder %s2256_s20, 0 }
 0x148   : > { %s2312_s14 = smov (!%p1470_p11), %s2250_s25  ;;  %s2313_s5 = smov (!%p1470_p11), %s2233_s12 }
 0x149   : > { %1315 = sbr.rel (%p1470_p11) target bundleno = 350 (0x15e), region = 115  ;;  %s2265_s27 = smov (!%p1470_p11), 0  }
 0x14a   : > { %s2267_s28 = smov (!%p1470_p11), 0  }
 0x14e LB: >> { %v1120_v47 = vld [vmem:[%s1959_s5] sm:$0xf]  ;;  %v1122_v22 = vld [vmem:[%s1959_s5 + $0x4] sm:$0xf]  ;;  %v1124_v24 = vld [vmem:[%s1959_s5 + $0x8] sm:$0xf]  ;;  %s1967_s28 = sphi %s2267_s28, %s1114_s28   ;;  %s1963_s27 = sphi %s2265_s27, %s2314_s27   ;;  %s1959_s5 = sphi %s2313_s5, %s1149_s5   ;;  %s1955_s14 = sphi %s2312_s14, %s1150_s14  }
 0x14f   : >> { %1121 = vst [vmem:[%s1955_s14] sm:$0xf] %v1120_v47  ;;  %1123 = vst [vmem:[%s1955_s14 + $0x4] sm:$0xf] %v1122_v22  ;;  %v1126_v11 = vld [vmem:[%s1959_s5 + $0xc] sm:$0xf]  ;;  %s1144_s29 = sadd.s32 1, %s1963_s27 }
 0x150   : >> { %1125 = vst [vmem:[%s1955_s14 + $0x8] sm:$0xf] %v1124_v24  ;;  %v1128_v13 = vld [vmem:[%s1959_s5 + $0x10] sm:$0xf]  ;;  %v1130_v26 = vld [vmem:[%s1959_s5 + $0x14] sm:$0xf]  ;;  %p1145_p12 = scmp.ge.s32.totalorder %s1144_s29, %s2256_s20 }
 0x151   : >> { %1127 = vst [vmem:[%s1955_s14 + $0xc] sm:$0xf] %v1126_v11  ;;  %1129 = vst [vmem:[%s1955_s14 + $0x10] sm:$0xf] %v1128_v13  ;;  %v1132_v28 = vld [vmem:[%s1959_s5 + $0x18] sm:$0xf] }
 0x152   : >> { %1131 = vst [vmem:[%s1955_s14 + $0x14] sm:$0xf] %v1130_v26  ;;  %v1134_v30 = vld [vmem:[%s1959_s5 + $0x1c] sm:$0xf]  ;;  %v1136_v32 = vld [vmem:[%s1959_s5 + $0x20] sm:$0xf] }
 0x153   : >> { %1133 = vst [vmem:[%s1955_s14 + $0x18] sm:$0xf] %v1132_v28  ;;  %1135 = vst [vmem:[%s1955_s14 + $0x1c] sm:$0xf] %v1134_v30  ;;  %v1138_v34 = vld [vmem:[%s1959_s5 + $0x24] sm:$0xf] }
 0x154   : >> { %1137 = vst [vmem:[%s1955_s14 + $0x20] sm:$0xf] %v1136_v32  ;;  %v1140_v36 = vld [vmem:[%s1959_s5 + $0x28] sm:$0xf]  ;;  %v1142_v31 = vld [vmem:[%s1959_s5 + $0x2c] sm:$0xf] }
 0x155   : >> { %1139 = vst [vmem:[%s1955_s14 + $0x24] sm:$0xf] %v1138_v34  ;;  %1141 = vst [vmem:[%s1955_s14 + $0x28] sm:$0xf] %v1140_v36  ;;  %s2324_s29 = smov (%p1145_p12, %s1144_s29), 0  ;;  %s1114_s28 = sadd.s32 1, %s1967_s28  }
 0x156   : >> { %1143 = vst [vmem:[%s1955_s14 + $0x2c] sm:$0xf] %v1142_v31  ;;  %s1147_s30 = smul.u32 48, %s2324_s29  ;;  %p1113_p13 = scmp.ge.s32.totalorder %s1114_s28, %s2256_s20 }
 0x157   : >> { %s2314_s27 = smov %s2324_s29 }
 0x158   : >> { %s1149_s5 = scalar_lea.vmem %s2233_s12, %s1147_s30 [#allocation2]   ;;  %s1150_s14 = scalar_lea.vmem %s2250_s25, %s1147_s30  }
 0x159   : > { %1116 = sbr.rel (!%p1113_p13) target bundleno = 334 (0x14e), region = 121 }
 0x15e PF: > { %1879 = sdivrem.u32 %s2322_s19, 12 }
 0x15f   : > { %s1471_s4 = smul.u32 48, %s2256_s20 }
 0x161   : > { %s1155_s7 = scalar_lea.vmem %s2233_s12, %s1471_s4 [#allocation2]   ;;  %s1157_s8 = scalar_lea.vmem %s2250_s25, %s1471_s4  }
 0x167   : > { %s1880_s9 = spop.drf %1879 }
 0x168   : > { %p1473_p0 = scmp.le.s32.totalorder %s1880_s9, 0 }
 0x169   : > { %s1969_s6 = smov (!%p1473_p0), %s1157_s8   ;;  %s1973_s10 = smov (!%p1473_p0), %s1155_s7  }
 0x16a   : > { %1329 = sbr.rel (%p1473_p0) target bundleno = 375 (0x177), region = 126  ;;  %s1977_s11 = smov (!%p1473_p0), 0  }
 0x16b   : > { %s1981_s17 = smov (!%p1473_p0), 0  }
 0x16f LB: >> { %v1167_v33 = vld [vmem:[%s1975_s10] sm:$0xf]  ;;  %s1169_s21 = sadd.s32 1, %s1979_s11  ;;  %s1161_s17 = sadd.s32 1, %s1983_s17   ;;  %s1983_s17 = sphi %s1981_s17, %s1161_s17   ;;  %s1979_s11 = sphi %s1977_s11, %s1978_s11   ;;  %s1975_s10 = sphi %s1973_s10, %s1174_s10   ;;  %s1971_s6 = sphi %s1969_s6, %s1175_s6  }
 0x170   : >> { %1168 = vst [vmem:[%s1971_s6] sm:$0xf] %v1167_v33  ;;  %p1170_p1 = scmp.ge.s32.totalorder %s1169_s21, %s1880_s9  ;;  %p1160_p2 = scmp.ge.s32.totalorder %s1161_s17, %s1880_s9 }
 0x172   : >> { %s2326_s21 = smov (%p1170_p1, %s1169_s21), 0  ;;  %1163 = sbr.rel (!%p1160_p2) target bundleno = 367 (0x16f), region = 132 }
 0x173   : >> { %s1474_s12 = sshll.u32 %s2326_s21, 2  ;;  %s1978_s11 = smov %s2326_s21  }
 0x174   : >> { %s1174_s10 = scalar_lea.vmem %s1155_s7, %s1474_s12 [#allocation2]   ;;  %s1175_s6 = scalar_lea.vmem %s1157_s8, %s1474_s12  }
 0x177 PF: > { %s13_s16 = sadd.s32 1, %s1951_s16   ;;  %s2315_s12 = smov %s1939_s13 }
 0x178   : > { %p10_p3 = scmp.ge.s32.totalorder %s13_s16, 4   ;;  %s2316_s13 = smov %s2046_s22 }
 0x179   : > { %s2317_s14 = smov %s1947_s15  ;;  %s2318_s15 = smov %s2320_s18 }
 0x17a   :  { %12 = sbr.rel (!%p10_p3) target bundleno = 3 (0x3), region = 143 }

// kernel: deep_q_forward.7
= control target key start
LH: loop header
LB: loop body
LE: loop exit
PB: predicated region body
PF: predicated region fallthrough
CT: control target
= control target key end

     0   :  { %s2609_s18 = smov 0   ;;  %s2611_s19 = smov 0   ;;  %s2964_s0 = inlined_call_operand.vmem [shape: bf16[8,3200], index: 0, kind: input, shape index: {}]   ;;  %s2965_s1 = inlined_call_operand.vmem [shape: bf16[3200,512], index: 1, kind: input, shape index: {}]   ;;  %s2966_s2 = inlined_call_operand.vmem [shape: f32[1,512], index: 2, kind: input, shape index: {}]   ;;  %s2967_s3 = inlined_call_operand.vmem [shape: bf16[512,128], index: 3, kind: input, shape index: {}]   ;;  %s2968_s4 = inlined_call_operand.vmem [shape: f32[1,128], index: 4, kind: input, shape index: {}]   ;;  %s2969_s5 = inlined_call_operand.vmem [shape: f32[8,128], index: 5, kind: output, shape index: {}]  }
   0x1   :  { %s2613_s20 = smov 0  }
   0x2 LB: > { %s24_s21 = sadd.s32 1, %s2572_s19  ;;  %p2000_p0 = scmp.ge.s32.totalorder %s2576_s20, 1  ;;  %s2576_s20 = sphi %s2613_s20, %s15_s20   ;;  %s2572_s19 = sphi %s2611_s19, %s2971_s19   ;;  %s2568_s18 = sphi %s2609_s18, %s2970_s18  }
   0x3   : > { %p25_p1 = scmp.ge.s32.totalorder %s24_s21, 5  ;;  %p218_p2 = scmp.lt.s32.totalorder %s2576_s20, 6 }
   0x5   : > { %s2973_s21 = smov (%p25_p1, %s24_s21), 0  ;;  %p219_p3 = pnand %p2000_p0, %p218_p2 }
   0x6   : > { %s265_s22 = smul.u32 (!%p219_p3), 80, %s2568_s18  ;;  %p2169_p6 = scmp.ne.s32.totalorder (!%p219_p3), %s2568_s18, 0 }
   0x7   : > { %222 = sbr.rel (%p219_p3) target bundleno = 635 (0x27b), region = 40 }
   0x8   : > { %p266_p4 = scmp.lt.s32.totalorder (!%p219_p3), %s265_s22, 399  ;;  %s255_s27 = smul.u32 (!%p219_p3), 5, %s2568_s18 }
   0xa   : > { %p258_p5 = scmp.lt.s32.totalorder (!%p219_p3), %s255_s27, 24 }
   0xc   : > { %s2975_s22 = smov (!%p266_p4, %s265_s22), 399  ;;  %s2977_s27 = smov (!%p258_p5, %s255_s27), 24 }
   0xd   : > { %s2207_s23 = sshll.u32 %s2975_s22, 4  ;;  %s2001_s28 = sshll.u32 %s2977_s27, 2 }
   0xe   : > { %s2633_s26 = scalar_lea.vmem %s2965_s1, %s2207_s23  ;;  %s2683_s6 = scalar_lea.vmem %s2964_s0, %s2001_s28 }
   0xf   : > { %v2277_v0 = vld [vmem:[%s2633_s26 + $0xe4] ss:$16 sps:$4 sm:$0xff]   ;;  %v2281_v2 = vld [vmem:[%s2633_s26 + $0xe0] ss:$16 sps:$4 sm:$0xff]   ;;  %v278_v50 = vld [vmem:[%s2683_s6 + $0x8] sm:$0xff] }
  0x10   : > { %v2279_v1 = vld [vmem:[%s2633_s26 + $0x2e4] ss:$16 sps:$4 sm:$0xff]   ;;  %1258 = vmatprep.subr.bf16.mxu0 %v2277_v0  ;;  %v2282_v3 = vld [vmem:[%s2633_s26 + $0x2e0] ss:$16 sps:$4 sm:$0xff]   ;;  %v2694_v52 = vcombine.high %v278_v50, %v278_v50 }
  0x11   : > { %1299 = vmatprep.subr.bf16.mxu1 %v2279_v1  ;;  %v2283_v4 = vld [vmem:[%s2633_s26 + $0xc4] ss:$16 sps:$4 sm:$0xff]   ;;  %1259 = vmatpush1.bf16.msra.mxu0 %v2281_v2  ;;  %v2287_v6 = vld [vmem:[%s2633_s26 + $0xc0] ss:$16 sps:$4 sm:$0xff]  }
  0x12   : > { %1300 = vmatpush1.bf16.msra.mxu1 %v2282_v3  ;;  %v2285_v5 = vld [vmem:[%s2633_s26 + $0x2c4] ss:$16 sps:$4 sm:$0xff]   ;;  %1260 = vmatprep.subr.bf16.mxu0 %v2283_v4  ;;  %v2288_v7 = vld [vmem:[%s2633_s26 + $0x2c0] ss:$16 sps:$4 sm:$0xff]  }
  0x13   : > { %1301 = vmatprep.subr.bf16.mxu1 %v2285_v5  ;;  %v2289_v8 = vld [vmem:[%s2633_s26 + $0xa4] ss:$16 sps:$4 sm:$0xff]   ;;  %v2293_v10 = vld [vmem:[%s2633_s26 + $0xa0] ss:$16 sps:$4 sm:$0xff]   ;;  %1331 = vmatprep.mubr.bf16.mxu1 %v2694_v52  ;;  %v2383_v5 = vld [vmem:[%s2633_s26 + $0xec] ss:$16 sps:$4 sm:$0xff]  }
  0x14   : > { %v2291_v9 = vld [vmem:[%s2633_s26 + $0x2a4] ss:$16 sps:$4 sm:$0xff]   ;;  %v2294_v11 = vld [vmem:[%s2633_s26 + $0x2a0] ss:$16 sps:$4 sm:$0xff]  }
  0x15   : > { %1261 = vmatpush1.bf16.msra.mxu0 %v2287_v6  ;;  %v2295_v12 = vld [vmem:[%s2633_s26 + $0x84] ss:$16 sps:$4 sm:$0xff]   ;;  %v2299_v14 = vld [vmem:[%s2633_s26 + $0x80] ss:$16 sps:$4 sm:$0xff]  }
  0x16   : > { %1302 = vmatpush1.bf16.msra.mxu1 %v2288_v7  ;;  %1262 = vmatprep.subr.bf16.mxu0 %v2289_v8  ;;  %v2297_v13 = vld [vmem:[%s2633_s26 + $0x284] ss:$16 sps:$4 sm:$0xff]   ;;  %v2300_v15 = vld [vmem:[%s2633_s26 + $0x280] ss:$16 sps:$4 sm:$0xff]   ;;  %v2717_v7 = vcombine.low %v278_v50, %v278_v50  ;;  %v2438_v50 = vld [vmem:[%s2633_s26 + $0x1a8] ss:$16 sps:$4 sm:$0xff]  }
  0x17   : > { %1303 = vmatprep.subr.bf16.mxu1 %v2291_v9  ;;  %v2301_v16 = vld [vmem:[%s2633_s26 + $0x64] ss:$16 sps:$4 sm:$0xff]   ;;  %v2305_v18 = vld [vmem:[%s2633_s26 + $0x60] ss:$16 sps:$4 sm:$0xff]   ;;  %v2381_v9 = vld [vmem:[%s2633_s26 + $0xe8] ss:$16 sps:$4 sm:$0xff]  }
  0x18   : > { %v2303_v17 = vld [vmem:[%s2633_s26 + $0x264] ss:$16 sps:$4 sm:$0xff]   ;;  %v2306_v19 = vld [vmem:[%s2633_s26 + $0x260] ss:$16 sps:$4 sm:$0xff]  }
  0x19   : > { %1263 = vmatpush1.bf16.msra.mxu0 %v2293_v10  ;;  %v2307_v20 = vld [vmem:[%s2633_s26 + $0x44] ss:$16 sps:$4 sm:$0xff]   ;;  %v2311_v22 = vld [vmem:[%s2633_s26 + $0x40] ss:$16 sps:$4 sm:$0xff]  }
  0x1a   : > { %1304 = vmatpush1.bf16.msra.mxu1 %v2294_v11  ;;  %1264 = vmatprep.subr.bf16.mxu0 %v2295_v12  ;;  %v2309_v21 = vld [vmem:[%s2633_s26 + $0x244] ss:$16 sps:$4 sm:$0xff]   ;;  %v2312_v23 = vld [vmem:[%s2633_s26 + $0x240] ss:$16 sps:$4 sm:$0xff]   ;;  %v2389_v11 = vld [vmem:[%s2633_s26 + $0xcc] ss:$16 sps:$4 sm:$0xff]  }
  0x1b   : > { %1305 = vmatprep.subr.bf16.mxu1 %v2297_v13  ;;  %v2313_v24 = vld [vmem:[%s2633_s26 + $0x24] ss:$16 sps:$4 sm:$0xff]   ;;  %v2317_v26 = vld [vmem:[%s2633_s26 + $0x20] ss:$16 sps:$4 sm:$0xff]   ;;  %v2387_v13 = vld [vmem:[%s2633_s26 + $0xc8] ss:$16 sps:$4 sm:$0xff]  }
  0x1c   : > { %v2315_v25 = vld [vmem:[%s2633_s26 + $0x224] ss:$16 sps:$4 sm:$0xff]   ;;  %v2318_v27 = vld [vmem:[%s2633_s26 + $0x220] ss:$16 sps:$4 sm:$0xff]  }
  0x1d   : > { %1265 = vmatpush1.bf16.msra.mxu0 %v2299_v14  ;;  %v2319_v28 = vld [vmem:[%s2633_s26 + $0x4] ss:$16 sps:$4 sm:$0xff]   ;;  %v2323_v30 = vld [vmem:[%s2633_s26] ss:$16 sps:$4 sm:$0xff]  }
  0x1e   : > { %1306 = vmatpush1.bf16.msra.mxu1 %v2300_v15  ;;  %1266 = vmatprep.subr.bf16.mxu0 %v2301_v16  ;;  %v2321_v29 = vld [vmem:[%s2633_s26 + $0x204] ss:$16 sps:$4 sm:$0xff]   ;;  %v2324_v31 = vld [vmem:[%s2633_s26 + $0x200] ss:$16 sps:$4 sm:$0xff]   ;;  %v2395_v15 = vld [vmem:[%s2633_s26 + $0xac] ss:$16 sps:$4 sm:$0xff]  }
  0x1f   : > { %1307 = vmatprep.subr.bf16.mxu1 %v2303_v17  ;;  %v2325_v32 = vld [vmem:[%s2633_s26 + $0x1e4] ss:$16 sps:$4 sm:$0xff]   ;;  %v2329_v34 = vld [vmem:[%s2633_s26 + $0x1e0] ss:$16 sps:$4 sm:$0xff]   ;;  %v2578_v16 = vmov 0  }
  0x20   : > { %v2327_v33 = vld [vmem:[%s2633_s26 + $0x3e4] ss:$16 sps:$4 sm:$0xff]   ;;  %v2330_v35 = vld [vmem:[%s2633_s26 + $0x3e0] ss:$16 sps:$4 sm:$0xff]  }
  0x21   : > { %1267 = vmatpush1.bf16.msra.mxu0 %v2305_v18  ;;  %v2331_v36 = vld [vmem:[%s2633_s26 + $0x1c4] ss:$16 sps:$4 sm:$0xff]   ;;  %v2335_v38 = vld [vmem:[%s2633_s26 + $0x1c0] ss:$16 sps:$4 sm:$0xff]   ;;  %v2393_v18 = vld [vmem:[%s2633_s26 + $0xa8] ss:$16 sps:$4 sm:$0xff]  }
  0x22   : > { %1308 = vmatpush1.bf16.msra.mxu1 %v2306_v19  ;;  %1268 = vmatprep.subr.bf16.mxu0 %v2307_v20  ;;  %v2333_v37 = vld [vmem:[%s2633_s26 + $0x3c4] ss:$16 sps:$4 sm:$0xff]   ;;  %v2336_v39 = vld [vmem:[%s2633_s26 + $0x3c0] ss:$16 sps:$4 sm:$0xff]   ;;  %v2401_v20 = vld [vmem:[%s2633_s26 + $0x8c] ss:$16 sps:$4 sm:$0xff]  }
  0x23   : > { %1309 = vmatprep.subr.bf16.mxu1 %v2309_v21  ;;  %v2337_v40 = vld [vmem:[%s2633_s26 + $0x1a4] ss:$16 sps:$4 sm:$0xff]   ;;  %v2341_v42 = vld [vmem:[%s2633_s26 + $0x1a0] ss:$16 sps:$4 sm:$0xff]  }
  0x24   : > { %v2339_v41 = vld [vmem:[%s2633_s26 + $0x3a4] ss:$16 sps:$4 sm:$0xff]   ;;  %v2342_v43 = vld [vmem:[%s2633_s26 + $0x3a0] ss:$16 sps:$4 sm:$0xff]  }
  0x25   : > { %1269 = vmatpush1.bf16.msra.mxu0 %v2311_v22  ;;  %v2343_v44 = vld [vmem:[%s2633_s26 + $0x184] ss:$16 sps:$4 sm:$0xff]   ;;  %v2347_v46 = vld [vmem:[%s2633_s26 + $0x180] ss:$16 sps:$4 sm:$0xff]   ;;  %v2399_v22 = vld [vmem:[%s2633_s26 + $0x88] ss:$16 sps:$4 sm:$0xff]  }
  0x26   : > { %1310 = vmatpush1.bf16.msra.mxu1 %v2312_v23  ;;  %1270 = vmatprep.subr.bf16.mxu0 %v2313_v24  ;;  %v2345_v45 = vld [vmem:[%s2633_s26 + $0x384] ss:$16 sps:$4 sm:$0xff]   ;;  %v2348_v48 = vld [vmem:[%s2633_s26 + $0x380] ss:$16 sps:$4 sm:$0xff]   ;;  %v2407_v24 = vld [vmem:[%s2633_s26 + $0x6c] ss:$16 sps:$4 sm:$0xff]  }
  0x27   : > { %1311 = vmatprep.subr.bf16.mxu1 %v2315_v25  ;;  %v277_v47 = vld [vmem:[%s2683_s6] sm:$0xff] }
  0x28   : > { %v2690_v49 = vcombine.high %v277_v47, %v277_v47  ;;  %v2349_v51 = vld [vmem:[%s2633_s26 + $0x164] ss:$16 sps:$4 sm:$0xff]   ;;  %v2353_v54 = vld [vmem:[%s2633_s26 + $0x160] ss:$16 sps:$4 sm:$0xff]   ;;  %v2715_v6 = vcombine.low %v277_v47, %v277_v47  ;;  %v2435_v47 = vld [vmem:[%s2633_s26 + $0x2c8] ss:$16 sps:$4 sm:$0xff]  }
  0x29   : > { %1271 = vmatpush1.bf16.msra.mxu0 %v2317_v26  ;;  %v2351_v53 = vld [vmem:[%s2633_s26 + $0x364] ss:$16 sps:$4 sm:$0xff]   ;;  %v2354_v55 = vld [vmem:[%s2633_s26 + $0x360] ss:$16 sps:$4 sm:$0xff]   ;;  %v2405_v26 = vld [vmem:[%s2633_s26 + $0x68] ss:$16 sps:$4 sm:$0xff]  }
  0x2a   : > { %1312 = vmatpush1.bf16.msra.mxu1 %v2318_v27  ;;  %1272 = vmatprep.subr.bf16.mxu0 %v2319_v28  ;;  %v2355_v56 = vld [vmem:[%s2633_s26 + $0x144] ss:$16 sps:$4 sm:$0xff]   ;;  %v2359_v58 = vld [vmem:[%s2633_s26 + $0x140] ss:$16 sps:$4 sm:$0xff]   ;;  %v2413_v28 = vld [vmem:[%s2633_s26 + $0x4c] ss:$16 sps:$4 sm:$0xff]  }
  0x2b   : > { %1313 = vmatprep.subr.bf16.mxu1 %v2321_v29  ;;  %1290 = vmatprep.mubr.bf16.mxu0 %v2690_v49  ;;  %v2357_v57 = vld [vmem:[%s2633_s26 + $0x344] ss:$16 sps:$4 sm:$0xff]   ;;  %v2360_v59 = vld [vmem:[%s2633_s26 + $0x340] ss:$16 sps:$4 sm:$0xff]  }
  0x2c   : > { %v2361_v60 = vld [vmem:[%s2633_s26 + $0x124] ss:$16 sps:$4 sm:$0xff]   ;;  %v2365_v62 = vld [vmem:[%s2633_s26 + $0x120] ss:$16 sps:$4 sm:$0xff]  }
  0x2d   : > { %1273 = vmatpush1.bf16.msra.mxu0 %v2323_v30  ;;  %v2363_v61 = vld [vmem:[%s2633_s26 + $0x324] ss:$16 sps:$4 sm:$0xff]   ;;  %v2366_v63 = vld [vmem:[%s2633_s26 + $0x320] ss:$16 sps:$4 sm:$0xff]   ;;  %v2411_v30 = vld [vmem:[%s2633_s26 + $0x48] ss:$16 sps:$4 sm:$0xff]  }
  0x2e   : > { %1314 = vmatpush1.bf16.msra.mxu1 %v2324_v31  ;;  %1274 = vmatprep.subr.bf16.mxu0 %v2325_v32  ;;  %v2367_v0 = vld [vmem:[%s2633_s26 + $0x104] ss:$16 sps:$4 sm:$0xff]   ;;  %v2371_v2 = vld [vmem:[%s2633_s26 + $0x100] ss:$16 sps:$4 sm:$0xff]   ;;  %v2419_v32 = vld [vmem:[%s2633_s26 + $0x2c] ss:$16 sps:$4 sm:$0xff]  }
  0x2f   : > { %1315 = vmatprep.subr.bf16.mxu1 %v2327_v33  ;;  %v2369_v1 = vld [vmem:[%s2633_s26 + $0x304] ss:$16 sps:$4 sm:$0xff]   ;;  %v2372_v3 = vld [vmem:[%s2633_s26 + $0x300] ss:$16 sps:$4 sm:$0xff]  }
  0x30   : > { %v2380_v4 = vld [vmem:[%s2633_s26 + $0x4e4] ss:$16 sps:$4 sm:$0xff]   ;;  %v2378_v8 = vld [vmem:[%s2633_s26 + $0x4e0] ss:$16 sps:$4 sm:$0xff]  }
  0x31   : > { %1275 = vmatpush2.bf16.msra.mxu0 %v2329_v34  ;;  %v2386_v10 = vld [vmem:[%s2633_s26 + $0x4c4] ss:$16 sps:$4 sm:$0xff]   ;;  %v2384_v12 = vld [vmem:[%s2633_s26 + $0x4c0] ss:$16 sps:$4 sm:$0xff]   ;;  %v2417_v34 = vld [vmem:[%s2633_s26 + $0x28] ss:$16 sps:$4 sm:$0xff]  }
  0x32   : > { %1316 = vmatpush2.bf16.msra.mxu1 %v2330_v35  ;;  %1276 = vmatprep.subr.bf16.mxu0 %v2331_v36  ;;  %v2392_v14 = vld [vmem:[%s2633_s26 + $0x4a4] ss:$16 sps:$4 sm:$0xff]   ;;  %v2390_v17 = vld [vmem:[%s2633_s26 + $0x4a0] ss:$16 sps:$4 sm:$0xff]   ;;  %v2425_v36 = vld [vmem:[%s2633_s26 + $0xc] ss:$16 sps:$4 sm:$0xff]  }
  0x33   : > { %1317 = vmatprep.subr.bf16.mxu1 %v2333_v37  ;;  %v2398_v19 = vld [vmem:[%s2633_s26 + $0x484] ss:$16 sps:$4 sm:$0xff]   ;;  %v2396_v21 = vld [vmem:[%s2633_s26 + $0x480] ss:$16 sps:$4 sm:$0xff]  }
  0x34   : > { %v2404_v23 = vld [vmem:[%s2633_s26 + $0x464] ss:$16 sps:$4 sm:$0xff]   ;;  %v2402_v25 = vld [vmem:[%s2633_s26 + $0x460] ss:$16 sps:$4 sm:$0xff]  }
  0x35   : > { %1277 = vmatpush2.bf16.msra.mxu0 %v2335_v38  ;;  %v2410_v27 = vld [vmem:[%s2633_s26 + $0x444] ss:$16 sps:$4 sm:$0xff]   ;;  %v2408_v29 = vld [vmem:[%s2633_s26 + $0x440] ss:$16 sps:$4 sm:$0xff]   ;;  %v2423_v38 = vld [vmem:[%s2633_s26 + $0x8] ss:$16 sps:$4 sm:$0xff]  }
  0x36   : > { %1318 = vmatpush2.bf16.msra.mxu1 %v2336_v39  ;;  %1278 = vmatprep.subr.bf16.mxu0 %v2337_v40  ;;  %v2416_v31 = vld [vmem:[%s2633_s26 + $0x424] ss:$16 sps:$4 sm:$0xff]   ;;  %v2414_v33 = vld [vmem:[%s2633_s26 + $0x420] ss:$16 sps:$4 sm:$0xff]   ;;  %v2428_v39 = vld [vmem:[%s2633_s26 + $0x1ec] ss:$16 sps:$4 sm:$0xff]  }
  0x37   : > { %1319 = vmatprep.subr.bf16.mxu1 %v2339_v41  ;;  %v2422_v35 = vld [vmem:[%s2633_s26 + $0x404] ss:$16 sps:$4 sm:$0xff]   ;;  %v2420_v37 = vld [vmem:[%s2633_s26 + $0x400] ss:$16 sps:$4 sm:$0xff]   ;;  %v2431_v40 = vld [vmem:[%s2633_s26 + $0x2ec] ss:$16 sps:$4 sm:$0xff]  }
  0x38   : > { %v2756_v41 = vld [vmem:[%s2683_s6 + $0x10] ss:$0 sps:$4 sm:$0xff]  }
  0x39   : > { %1279 = vmatpush2.bf16.msra.mxu0 %v2341_v42  ;;  %v2426_v42 = vld [vmem:[%s2633_s26 + $0x1e8] ss:$16 sps:$4 sm:$0xff]  }
  0x3a   : > { %1320 = vmatpush2.bf16.msra.mxu1 %v2342_v43  ;;  %1280 = vmatprep.subr.bf16.mxu0 %v2343_v44  ;;  %v2429_v43 = vld [vmem:[%s2633_s26 + $0x2e8] ss:$16 sps:$4 sm:$0xff]   ;;  %v2434_v44 = vld [vmem:[%s2633_s26 + $0x1cc] ss:$16 sps:$4 sm:$0xff]  }
  0x3b   : > { %1321 = vmatprep.subr.bf16.mxu1 %v2345_v45  ;;  %v2437_v45 = vld [vmem:[%s2633_s26 + $0x2cc] ss:$16 sps:$4 sm:$0xff]  }
  0x3d   : > { %1281 = vmatpush2.bf16.msra.mxu0 %v2347_v46  ;;  %v2432_v46 = vld [vmem:[%s2633_s26 + $0x1c8] ss:$16 sps:$4 sm:$0xff]  }
  0x3e   : > { %1322 = vmatpush2.bf16.msra.mxu1 %v2348_v48  ;;  %1282 = vmatprep.subr.bf16.mxu0 %v2349_v51  ;;  %v2440_v48 = vld [vmem:[%s2633_s26 + $0x1ac] ss:$16 sps:$4 sm:$0xff]   ;;  %v2441_v51 = vld [vmem:[%s2633_s26 + $0x2a8] ss:$16 sps:$4 sm:$0xff]  }
  0x3f   : > { %1323 = vmatprep.subr.bf16.mxu1 %v2351_v53  ;;  %v2446_v53 = vld [vmem:[%s2633_s26 + $0x18c] ss:$16 sps:$4 sm:$0xff]  }
  0x41   : > { %1283 = vmatpush2.bf16.msra.mxu0 %v2353_v54  ;;  %v2449_v54 = vld [vmem:[%s2633_s26 + $0x28c] ss:$16 sps:$4 sm:$0xff]  }
  0x42   : > { %1324 = vmatpush2.bf16.msra.mxu1 %v2354_v55  ;;  %1284 = vmatprep.subr.bf16.mxu0 %v2355_v56  ;;  %v2444_v55 = vld [vmem:[%s2633_s26 + $0x188] ss:$16 sps:$4 sm:$0xff]  }
  0x43   : > { %1325 = vmatprep.subr.bf16.mxu1 %v2357_v57  ;;  %v2447_v56 = vld [vmem:[%s2633_s26 + $0x288] ss:$16 sps:$4 sm:$0xff]   ;;  %v2455_v57 = vld [vmem:[%s2633_s26 + $0x26c] ss:$16 sps:$4 sm:$0xff]  }
  0x45   : > { %1285 = vmatpush2.bf16.msra.mxu0 %v2359_v58  ;;  %v2450_v58 = vld [vmem:[%s2633_s26 + $0x168] ss:$16 sps:$4 sm:$0xff]  }
  0x46   : > { %1326 = vmatpush2.bf16.msra.mxu1 %v2360_v59  ;;  %1286 = vmatprep.subr.bf16.mxu0 %v2361_v60  ;;  %v2453_v59 = vld [vmem:[%s2633_s26 + $0x268] ss:$16 sps:$4 sm:$0xff]   ;;  %v2458_v60 = vld [vmem:[%s2633_s26 + $0x14c] ss:$16 sps:$4 sm:$0xff]  }
  0x47   : > { %1327 = vmatprep.subr.bf16.mxu1 %v2363_v61  ;;  %v2461_v61 = vld [vmem:[%s2633_s26 + $0x24c] ss:$16 sps:$4 sm:$0xff]  }
  0x49   : > { %1287 = vmatpush2.bf16.msra.mxu0 %v2365_v62  ;;  %v2456_v62 = vld [vmem:[%s2633_s26 + $0x148] ss:$16 sps:$4 sm:$0xff]  }
  0x4a   : > { %1328 = vmatpush2.bf16.msra.mxu1 %v2366_v63  ;;  %1288 = vmatprep.subr.bf16.mxu0 %v2367_v0  ;;  %v2459_v63 = vld [vmem:[%s2633_s26 + $0x248] ss:$16 sps:$4 sm:$0xff]   ;;  %v2464_v0 = vld [vmem:[%s2633_s26 + $0x12c] ss:$16 sps:$4 sm:$0xff]  }
  0x4b   : > { %1329 = vmatprep.subr.bf16.mxu1 %v2369_v1  ;;  %v2467_v1 = vld [vmem:[%s2633_s26 + $0x22c] ss:$16 sps:$4 sm:$0xff]  }
  0x4d   : > { %1289 = vmatpush2.bf16.msra.mxu0 %v2371_v2  ;;  %v2462_v2 = vld [vmem:[%s2633_s26 + $0x128] ss:$16 sps:$4 sm:$0xff]  }
  0x4e   : > { %1330 = vmatpush2.bf16.msra.mxu1 %v2372_v3  ;;  %1340 = vmatprep.subr.bf16.mxu0 %v2380_v4  ;;  %v2465_v3 = vld [vmem:[%s2633_s26 + $0x228] ss:$16 sps:$4 sm:$0xff]   ;;  %v2470_v4 = vld [vmem:[%s2633_s26 + $0x10c] ss:$16 sps:$4 sm:$0xff]  }
  0x4f   : > { %1381 = vmatprep.subr.bf16.mxu1 %v2383_v5  ;;  %v2473_v5 = vld [vmem:[%s2633_s26 + $0x20c] ss:$16 sps:$4 sm:$0xff]  }
  0x50   : > { %1291 = vmatmul.mubr.bf16.vlgmr.msra.gmra.mxu0 %v2715_v6 }
  0x51   : > { %1332 = vmatmul.mubr.bf16.vlgmr.msra.gmra.mxu1 %v2717_v7  ;;  %1341 = vmatpush1.bf16.msra.mxu0 %v2378_v8  ;;  %v2468_v8 = vld [vmem:[%s2633_s26 + $0x108] ss:$16 sps:$4 sm:$0xff]  }
  0x52   : > { %1382 = vmatpush1.bf16.msra.mxu1 %v2381_v9  ;;  %1342 = vmatprep.subr.bf16.mxu0 %v2386_v10  ;;  %v2471_v9 = vld [vmem:[%s2633_s26 + $0x208] ss:$16 sps:$4 sm:$0xff]   ;;  %v2476_v10 = vld [vmem:[%s2633_s26 + $0x3ec] ss:$16 sps:$4 sm:$0xff]  }
  0x53   : > { %1383 = vmatprep.subr.bf16.mxu1 %v2389_v11  ;;  %1372 = vmatprep.mubr.bf16.mxu0 %v2578_v16  ;;  %v2479_v11 = vld [vmem:[%s2633_s26 + $0x4ec] ss:$16 sps:$4 sm:$0xff]  }
  0x54   : > { %1413 = vmatprep.mubr.bf16.mxu1 %v2690_v49  ;;  %v2443_v49 = vld [vmem:[%s2633_s26 + $0x2ac] ss:$16 sps:$4 sm:$0xff]  }
  0x55   : > { %1343 = vmatpush1.bf16.msra.mxu0 %v2384_v12  ;;  %v2474_v12 = vld [vmem:[%s2633_s26 + $0x3e8] ss:$16 sps:$4 sm:$0xff]  }
  0x56   : > { %1384 = vmatpush1.bf16.msra.mxu1 %v2387_v13  ;;  %1344 = vmatprep.subr.bf16.mxu0 %v2392_v14  ;;  %v2477_v13 = vld [vmem:[%s2633_s26 + $0x4e8] ss:$16 sps:$4 sm:$0xff]   ;;  %v2482_v14 = vld [vmem:[%s2633_s26 + $0x3cc] ss:$16 sps:$4 sm:$0xff]  }
  0x57   : > { %1385 = vmatprep.subr.bf16.mxu1 %v2395_v15  ;;  %v2485_v15 = vld [vmem:[%s2633_s26 + $0x4cc] ss:$16 sps:$4 sm:$0xff]  }
  0x59   : > { %1345 = vmatpush1.bf16.msra.mxu0 %v2390_v17  ;;  %v2480_v17 = vld [vmem:[%s2633_s26 + $0x3c8] ss:$16 sps:$4 sm:$0xff]  }
  0x5a   : > { %1386 = vmatpush1.bf16.msra.mxu1 %v2393_v18  ;;  %1346 = vmatprep.subr.bf16.mxu0 %v2398_v19  ;;  %v2483_v18 = vld [vmem:[%s2633_s26 + $0x4c8] ss:$16 sps:$4 sm:$0xff]   ;;  %v2488_v19 = vld [vmem:[%s2633_s26 + $0x3ac] ss:$16 sps:$4 sm:$0xff]  }
  0x5b   : > { %1387 = vmatprep.subr.bf16.mxu1 %v2401_v20  ;;  %v2491_v20 = vld [vmem:[%s2633_s26 + $0x4ac] ss:$16 sps:$4 sm:$0xff]  }
  0x5d   : > { %1347 = vmatpush1.bf16.msra.mxu0 %v2396_v21  ;;  %v2486_v21 = vld [vmem:[%s2633_s26 + $0x3a8] ss:$16 sps:$4 sm:$0xff]  }
  0x5e   : > { %1388 = vmatpush1.bf16.msra.mxu1 %v2399_v22  ;;  %1348 = vmatprep.subr.bf16.mxu0 %v2404_v23  ;;  %v2494_v22 = vld [vmem:[%s2633_s26 + $0x38c] ss:$16 sps:$4 sm:$0xff]  }
  0x5f   : > { %1389 = vmatprep.subr.bf16.mxu1 %v2407_v24  ;;  %v2497_v23 = vld [vmem:[%s2633_s26 + $0x48c] ss:$16 sps:$4 sm:$0xff]   ;;  %v2492_v24 = vld [vmem:[%s2633_s26 + $0x388] ss:$16 sps:$4 sm:$0xff]  }
  0x61   : > { %1349 = vmatpush1.bf16.msra.mxu0 %v2402_v25  ;;  %v2495_v25 = vld [vmem:[%s2633_s26 + $0x488] ss:$16 sps:$4 sm:$0xff]  }
  0x62   : > { %1390 = vmatpush1.bf16.msra.mxu1 %v2405_v26  ;;  %1350 = vmatprep.subr.bf16.mxu0 %v2410_v27  ;;  %v2503_v26 = vld [vmem:[%s2633_s26 + $0x46c] ss:$16 sps:$4 sm:$0xff]   ;;  %v2498_v27 = vld [vmem:[%s2633_s26 + $0x368] ss:$16 sps:$4 sm:$0xff]  }
  0x63   : > { %1391 = vmatprep.subr.bf16.mxu1 %v2413_v28  ;;  %v2501_v28 = vld [vmem:[%s2633_s26 + $0x468] ss:$16 sps:$4 sm:$0xff]  }
  0x65   : > { %1351 = vmatpush1.bf16.msra.mxu0 %v2408_v29  ;;  %v2506_v29 = vld [vmem:[%s2633_s26 + $0x34c] ss:$16 sps:$4 sm:$0xff]  }
  0x66   : > { %1392 = vmatpush1.bf16.msra.mxu1 %v2411_v30  ;;  %1352 = vmatprep.subr.bf16.mxu0 %v2416_v31  ;;  %v2509_v30 = vld [vmem:[%s2633_s26 + $0x44c] ss:$16 sps:$4 sm:$0xff]   ;;  %v2504_v31 = vld [vmem:[%s2633_s26 + $0x348] ss:$16 sps:$4 sm:$0xff]  }
  0x67   : > { %1393 = vmatprep.subr.bf16.mxu1 %v2419_v32  ;;  %v2507_v32 = vld [vmem:[%s2633_s26 + $0x448] ss:$16 sps:$4 sm:$0xff]  }
  0x69   : > { %1353 = vmatpush1.bf16.msra.mxu0 %v2414_v33  ;;  %v2512_v33 = vld [vmem:[%s2633_s26 + $0x32c] ss:$16 sps:$4 sm:$0xff]  }
  0x6a   : > { %1394 = vmatpush1.bf16.msra.mxu1 %v2417_v34  ;;  %1354 = vmatprep.subr.bf16.mxu0 %v2422_v35  ;;  %v2515_v34 = vld [vmem:[%s2633_s26 + $0x42c] ss:$16 sps:$4 sm:$0xff]   ;;  %v2510_v35 = vld [vmem:[%s2633_s26 + $0x328] ss:$16 sps:$4 sm:$0xff]  }
  0x6b   : > { %1395 = vmatprep.subr.bf16.mxu1 %v2425_v36  ;;  %v2513_v36 = vld [vmem:[%s2633_s26 + $0x428] ss:$16 sps:$4 sm:$0xff]  }
  0x6d   : > { %1355 = vmatpush1.bf16.msra.mxu0 %v2420_v37  ;;  %v2518_v37 = vld [vmem:[%s2633_s26 + $0x30c] ss:$16 sps:$4 sm:$0xff]  }
  0x6e   : > { %1396 = vmatpush1.bf16.msra.mxu1 %v2423_v38  ;;  %1422 = vmatprep.subr.bf16.mxu0 %v2431_v40  ;;  %v2521_v38 = vld [vmem:[%s2633_s26 + $0x40c] ss:$16 sps:$4 sm:$0xff]   ;;  %v2519_v40 = vld [vmem:[%s2633_s26 + $0x408] ss:$16 sps:$4 sm:$0xff]  }
  0x6f   : > { %1397 = vmatprep.subr.bf16.mxu1 %v2428_v39  ;;  %v2516_v39 = vld [vmem:[%s2633_s26 + $0x308] ss:$16 sps:$4 sm:$0xff]  }
  0x70   : > { %1373 = vmatmul.mubr.bf16.vlgmr.msra.gmra.mxu0 %v2756_v41 }
  0x71   : > { %1423 = vmatpush1.bf16.msra.mxu0 %v2429_v43  ;;  %1454 = vmatprep.mubr.bf16.mxu0 %v2694_v52  ;;  %v2452_v52 = vld [vmem:[%s2633_s26 + $0x16c] ss:$16 sps:$4 sm:$0xff]  }
  0x72   : > { %1398 = vmatpush2.bf16.msra.mxu1 %v2426_v42  ;;  %1424 = vmatprep.subr.bf16.mxu0 %v2437_v45 }
  0x73   : > { %1399 = vmatprep.subr.bf16.mxu1 %v2434_v44 }
  0x75   : > { %1425 = vmatpush1.bf16.msra.mxu0 %v2435_v47 }
  0x76   : > { %1400 = vmatpush2.bf16.msra.mxu1 %v2432_v46  ;;  %1426 = vmatprep.subr.bf16.mxu0 %v2443_v49 }
  0x77   : > { %1401 = vmatprep.subr.bf16.mxu1 %v2440_v48 }
  0x79   : > { %1427 = vmatpush1.bf16.msra.mxu0 %v2441_v51 }
  0x7a   : > { %1402 = vmatpush2.bf16.msra.mxu1 %v2438_v50  ;;  %1428 = vmatprep.subr.bf16.mxu0 %v2449_v54 }
  0x7b   : > { %1403 = vmatprep.subr.bf16.mxu1 %v2446_v53 }
  0x7d   : > { %1429 = vmatpush1.bf16.msra.mxu0 %v2447_v56 }
  0x7e   : > { %1404 = vmatpush2.bf16.msra.mxu1 %v2444_v55  ;;  %1430 = vmatprep.subr.bf16.mxu0 %v2455_v57 }
  0x7f   : > { %1405 = vmatprep.subr.bf16.mxu1 %v2452_v52 }
  0x81   : > { %1431 = vmatpush1.bf16.msra.mxu0 %v2453_v59 }
  0x82   : > { %1406 = vmatpush2.bf16.msra.mxu1 %v2450_v58  ;;  %1432 = vmatprep.subr.bf16.mxu0 %v2461_v61 }
  0x83   : > { %1407 = vmatprep.subr.bf16.mxu1 %v2458_v60 }
  0x85   : > { %1433 = vmatpush1.bf16.msra.mxu0 %v2459_v63 }
  0x86   : > { %1408 = vmatpush2.bf16.msra.mxu1 %v2456_v62  ;;  %1434 = vmatprep.subr.bf16.mxu0 %v2467_v1 }
  0x87   : > { %1409 = vmatprep.subr.bf16.mxu1 %v2464_v0 }
  0x89   : > { %1435 = vmatpush1.bf16.msra.mxu0 %v2465_v3 }
  0x8a   : > { %1410 = vmatpush2.bf16.msra.mxu1 %v2462_v2  ;;  %1436 = vmatprep.subr.bf16.mxu0 %v2473_v5 }
  0x8b   : > { %1411 = vmatprep.subr.bf16.mxu1 %v2470_v4 }
  0x8d   : > { %1437 = vmatpush1.bf16.msra.mxu0 %v2471_v9 }
  0x8e   : > { %1412 = vmatpush2.bf16.msra.mxu1 %v2468_v8  ;;  %1438 = vmatprep.subr.bf16.mxu0 %v2476_v10 }
  0x8f   : > { %1463 = vmatprep.subr.bf16.mxu1 %v2479_v11 }
  0x91   : > { %1414 = vmatmul.mubr.bf16.vlgmr.msra.gmra.mxu1 %v2715_v6  ;;  %1439 = vmatpush2.bf16.msra.mxu0 %v2474_v12  ;;  %v2489_v6 = vld [vmem:[%s2633_s26 + $0x4a8] ss:$16 sps:$4 sm:$0xff]  }
  0x92   : > { %1464 = vmatpush1.bf16.msra.mxu1 %v2477_v13  ;;  %1440 = vmatprep.subr.bf16.mxu0 %v2482_v14 }
  0x93   : > { %1465 = vmatprep.subr.bf16.mxu1 %v2485_v15  ;;  %1495 = vmatprep.mubr.bf16.mxu1 %v2578_v16  ;;  %v2500_v16 = vld [vmem:[%s2633_s26 + $0x36c] ss:$16 sps:$4 sm:$0xff]  }
  0x95   : > { %1441 = vmatpush2.bf16.msra.mxu0 %v2480_v17 }
  0x96   : > { %1466 = vmatpush1.bf16.msra.mxu1 %v2483_v18  ;;  %1442 = vmatprep.subr.bf16.mxu0 %v2488_v19 }
  0x97   : > { %1467 = vmatprep.subr.bf16.mxu1 %v2491_v20 }
  0x99   : > { %1443 = vmatpush2.bf16.msra.mxu0 %v2486_v21 }
  0x9a   : > { %1468 = vmatpush1.bf16.msra.mxu1 %v2489_v6  ;;  %1444 = vmatprep.subr.bf16.mxu0 %v2494_v22 }
  0x9b   : > { %1469 = vmatprep.subr.bf16.mxu1 %v2497_v23 }
  0x9d   : > { %1445 = vmatpush2.bf16.msra.mxu0 %v2492_v24 }
  0x9e   : > { %1470 = vmatpush1.bf16.msra.mxu1 %v2495_v25  ;;  %1446 = vmatprep.subr.bf16.mxu0 %v2500_v16 }
  0x9f   : > { %1471 = vmatprep.subr.bf16.mxu1 %v2503_v26 }
  0xa1   : > { %1447 = vmatpush2.bf16.msra.mxu0 %v2498_v27 }
  0xa2   : > { %1472 = vmatpush1.bf16.msra.mxu1 %v2501_v28  ;;  %1448 = vmatprep.subr.bf16.mxu0 %v2506_v29 }
  0xa3   : > { %1473 = vmatprep.subr.bf16.mxu1 %v2509_v30 }
  0xa5   : > { %1449 = vmatpush2.bf16.msra.mxu0 %v2504_v31 }
  0xa6   : > { %1474 = vmatpush1.bf16.msra.mxu1 %v2507_v32  ;;  %1450 = vmatprep.subr.bf16.mxu0 %v2512_v33 }
  0xa7   : > { %1475 = vmatprep.subr.bf16.mxu1 %v2515_v34 }
  0xa9   : > { %1451 = vmatpush2.bf16.msra.mxu0 %v2510_v35 }
  0xaa   : > { %1476 = vmatpush1.bf16.msra.mxu1 %v2513_v36  ;;  %1452 = vmatprep.subr.bf16.mxu0 %v2518_v37 }
  0xab   : > { %1477 = vmatprep.subr.bf16.mxu1 %v2521_v38 }
  0xad   : > { %1453 = vmatpush2.bf16.msra.mxu0 %v2516_v39 }
  0xae   : > { %1478 = vmatpush1.bf16.msra.mxu1 %v2519_v40 }
  0xb0   : > { %1455 = vmatmul.mubr.bf16.vlgmr.msra.gmra.mxu0 %v2717_v7 }
  0xb1   : > { %1496 = vmatmul.mubr.bf16.vlgmr.msra.gmra.mxu1 %v2756_v41 }
 0x110   : > { %v1292_v42 = vpop.f32.mrf.mxu0 }
 0x111   : > { %v1333_v43 = vpop.f32.mrf.mxu1 }
 0x112   : > { %v1334_v44 = vadd.f32 %v1333_v43, %v1292_v42  ;;  %v1294_v45 = vpop.f32.mrf.mxu0 }
 0x113   : > { %v1335_v46 = vpop.f32.mrf.mxu1 }
 0x114   : > { %v1336_v47 = vadd.f32 %v1335_v46, %v1294_v45  ;;  %v1296_v48 = vpop.f32.mrf.mxu0 }
 0x115   : > { %v1337_v49 = vpop.f32.mrf.mxu1 }
 0x116   : > { %v1297_v50 = vpop.f32.mrf.mxu0 }
 0x117   : > { %v1338_v51 = vpop.f32.mrf.mxu1 }
 0x130   : > { %v1374_v53 = vpop.f32.mrf.mxu0 }
 0x131   : > { %v2826_v54 = vadd.f32 %v1374_v53, %v1334_v44 }
 0x132   : > { %v1376_v55 = vpop.f32.mrf.mxu0 }
 0x133   : > { %v2828_v56 = vadd.f32 %v1376_v55, %v1336_v47 }
 0x134   : > { %v1378_v52 = vpop.f32.mrf.mxu0 }
 0x136   : > { %v1379_v7 = vpop.f32.mrf.mxu0 }
 0x151   : > { %v1415_v57 = vpop.f32.mrf.mxu1 }
 0x153   : > { %v1417_v41 = vpop.f32.mrf.mxu1 }
 0x155   : > { %v1419_v58 = vpop.f32.mrf.mxu1 }
 0x157   : > { %v1420_v59 = vpop.f32.mrf.mxu1 }
 0x170   : > { %v1456_v60 = vpop.f32.mrf.mxu0 }
 0x171   : > { %v1497_v61 = vpop.f32.mrf.mxu1  ;;  %v1457_v62 = vadd.f32 %v1456_v60, %v1415_v57 }
 0x172   : > { %v1458_v63 = vpop.f32.mrf.mxu0 }
 0x173   : > { %v1499_v0 = vpop.f32.mrf.mxu1  ;;  %v2830_v1 = vadd.f32 %v1497_v61, %v1457_v62  ;;  %v1459_v2 = vadd.f32 %v1458_v63, %v1417_v41  ;;  %1507 = sbr.rel (%p2169_p6) target bundleno = 378 (0x17a), region = 44 }
 0x174   : > { %v1460_v3 = vpop.f32.mrf.mxu0 }
 0x175   : > { %v1501_v4 = vpop.f32.mrf.mxu1  ;;  %v2832_v5 = vadd.f32 %v1499_v0, %v1459_v2 }
 0x176   : > { %v1461_v8 = vpop.f32.mrf.mxu0 }
 0x177   : > { %v1502_v9 = vpop.f32.mrf.mxu1 }
 0x178   : > { %1508 = vst [vmem:[#allocation2 + $0x10] sm:$0xff] %v2826_v54  ;;  %1509 = vst [vmem:[#allocation2] sm:$0xff] %v2828_v56 }
 0x179   : > { %1510 = vst [vmem:[#allocation2 + $0x18] sm:$0xff] %v2830_v1  ;;  %1511 = vst [vmem:[#allocation2 + $0x8] sm:$0xff] %v2832_v5 }
 0x17a PF: > { %p1512_p7 = scmp.gt.s32.totalorder %s2568_s18, 0  ;;  %p1513_p8 = scmp.lt.s32.totalorder %s2568_s18, 4 }
 0x17c   : > { %p1514_p9 = pnand %p1513_p8, %p1512_p7 }
 0x17e   : > { %1517 = sbr.rel (%p1514_p9) target bundleno = 392 (0x188), region = 48 }
 0x183   : > { %v1518_v10 = vld [vmem:[#allocation2 + $0x10] sm:$0xff]  ;;  %v1519_v11 = vld [vmem:[#allocation2] sm:$0xff]  ;;  %v1520_v12 = vld [vmem:[#allocation2 + $0x18] sm:$0xff] }
 0x184   : > { %v1522_v13 = vadd.f32 %v1518_v10, %v2826_v54  ;;  %v1523_v14 = vadd.f32 %v1519_v11, %v2828_v56  ;;  %v1524_v15 = vadd.f32 %v1520_v12, %v2830_v1  ;;  %v1521_v17 = vld [vmem:[#allocation2 + $0x8] sm:$0xff] }
 0x185   : > { %v1525_v18 = vadd.f32 %v1521_v17, %v2832_v5 }
 0x186   : > { %1526 = vst [vmem:[#allocation2 + $0x10] sm:$0xff] %v1522_v13  ;;  %1527 = vst [vmem:[#allocation2] sm:$0xff] %v1523_v14 }
 0x187   : > { %1528 = vst [vmem:[#allocation2 + $0x18] sm:$0xff] %v1524_v15  ;;  %1529 = vst [vmem:[#allocation2 + $0x8] sm:$0xff] %v1525_v18 }
 0x188 PF: > { %p2170_p10 = scmp.ne.s32.totalorder %s2568_s18, 4 }
 0x18a   : > { %1533 = sbr.rel (%p2170_p10) target bundleno = 635 (0x27b), region = 52 }
 0x18f   : > { %v2522_v19 = vld [vmem:[%s2967_s3 + $0x78] sm:$0xff]   ;;  %v2526_v22 = vld [vmem:[%s2967_s3 + $0x70] sm:$0xff]   ;;  %v2530_v16 = vld [vmem:[%s2967_s3 + $0x68] sm:$0xff]   ;;  %v1544_v37 = vlaneseq }
 0x190   : > { %v2523_v20 = vld [vmem:[%s2967_s3 + $0xf8] sm:$0xff]   ;;  %2208 = vmatprep.subr.bf16.mxu0 %v2522_v19  ;;  %v2527_v23 = vld [vmem:[%s2967_s3 + $0xf0] sm:$0xff]   ;;  %v2531_v26 = vld [vmem:[%s2967_s3 + $0xe8] sm:$0xff]  }
 0x191   : > { %v2524_v21 = vld [vmem:[%s2967_s3 + $0x38] sm:$0xff]   ;;  %2230 = vmatprep.subr.bf16.mxu1 %v2523_v20  ;;  %v2528_v24 = vld [vmem:[%s2967_s3 + $0x30] sm:$0xff]   ;;  %v2532_v27 = vld [vmem:[%s2967_s3 + $0x28] sm:$0xff]   ;;  %v1545_v43 = vshrl.u32 %v1544_v37, 7 }
 0x192   : > { %v2525_v6 = vld [vmem:[%s2967_s3 + $0xb8] sm:$0xff]   ;;  %2209 = vmatpush3.bf16.msra.mxu0 %v2524_v21  ;;  %v2529_v25 = vld [vmem:[%s2967_s3 + $0xb0] sm:$0xff]   ;;  %v2533_v28 = vld [vmem:[%s2967_s3 + $0xa8] sm:$0xff]  }
 0x193   : > { %2231 = vmatpush3.bf16.msra.mxu1 %v2525_v6  ;;  %2210 = vmatprep.subr.bf16.mxu0 %v2526_v22  ;;  %v2534_v29 = vld [vmem:[%s2967_s3 + $0x60] sm:$0xff]   ;;  %v2538_v33 = vld [vmem:[%s2967_s3 + $0x58] sm:$0xff]   ;;  %v2542_v38 = vld [vmem:[%s2967_s3 + $0x50] sm:$0xff]   ;;  %v1550_v48 = vsub.s32 1, %v1545_v43  ;;  %v1558_v50 = vsub.s32 3, %v1545_v43  ;;  %v1546_v53 = vsub.s32 0, %v1545_v43 }
 0x194   : > { %2232 = vmatprep.subr.bf16.mxu1 %v2527_v23  ;;  %v2535_v30 = vld [vmem:[%s2967_s3 + $0xe0] sm:$0xff]   ;;  %v2539_v34 = vld [vmem:[%s2967_s3 + $0xd8] sm:$0xff]   ;;  %v2543_v39 = vld [vmem:[%s2967_s3 + $0xd0] sm:$0xff]   ;;  %v1554_v52 = vsub.s32 2, %v1545_v43 }
 0x195   : > { %v2536_v31 = vld [vmem:[%s2967_s3 + $0x20] sm:$0xff]   ;;  %v2540_v35 = vld [vmem:[%s2967_s3 + $0x18] sm:$0xff]   ;;  %v2544_v40 = vld [vmem:[%s2967_s3 + $0x10] sm:$0xff]  }
 0x196   : > { %2211 = vmatpush3.bf16.msra.mxu0 %v2528_v24  ;;  %v2537_v32 = vld [vmem:[%s2967_s3 + $0xa0] sm:$0xff]   ;;  %v2541_v36 = vld [vmem:[%s2967_s3 + $0x98] sm:$0xff]   ;;  %v2545_v42 = vld [vmem:[%s2967_s3 + $0x90] sm:$0xff]  }
 0x197   : > { %2233 = vmatpush3.bf16.msra.mxu1 %v2529_v25  ;;  %2212 = vmatprep.subr.bf16.mxu0 %v2530_v16  ;;  %v2546_v44 = vld [vmem:[%s2967_s3 + $0x48] sm:$0xff]   ;;  %v2550_v49 = vld [vmem:[%s2967_s3 + $0x40] sm:$0xff]   ;;  %v1534_v63 = vld [vmem:[#allocation2 + $0x10] sm:$0xff] }
 0x198   : > { %2234 = vmatprep.subr.bf16.mxu1 %v2531_v26  ;;  %v2547_v45 = vld [vmem:[%s2967_s3 + $0xc8] sm:$0xff]   ;;  %v2551_v51 = vld [vmem:[%s2967_s3 + $0xc0] sm:$0xff]   ;;  %v1536_v0 = vld [vmem:[#allocation2 + $0x18] sm:$0xff]  ;;  %v1538_v2 = vadd.f32 %v1534_v63, %v2826_v54 }
 0x199   : > { %v2548_v46 = vld [vmem:[%s2967_s3 + $0x8] sm:$0xff]   ;;  %v2552_v55 = vld [vmem:[%s2967_s3] sm:$0xff]   ;;  %v1540_v4 = vadd.f32 %v1536_v0, %v2830_v1 }
 0x19a   : > { %2213 = vmatpush3.bf16.msra.mxu0 %v2532_v27  ;;  %v2549_v47 = vld [vmem:[%s2967_s3 + $0x88] sm:$0xff]   ;;  %v2553_v7 = vld [vmem:[%s2967_s3 + $0x80] sm:$0xff]  }
 0x19b   : > { %2235 = vmatpush3.bf16.msra.mxu1 %v2533_v28  ;;  %2214 = vmatprep.subr.bf16.mxu0 %v2534_v29  ;;  %v1535_v57 = vld [vmem:[#allocation2] sm:$0xff]  ;;  %v1537_v58 = vld [vmem:[#allocation2 + $0x8] sm:$0xff] }
 0x19c   : > { %2236 = vmatprep.subr.bf16.mxu1 %v2535_v30  ;;  %v1542_v41 = vld [vmem:[%s2966_s2] sm:$0xf]  ;;  %v1539_v59 = vadd.f32 %v1535_v57, %v2828_v56  ;;  %v1541_v61 = vadd.f32 %v1537_v58, %v2832_v5 }
 0x19d   : > { %v1551_v60 = vrot.slane %v1542_v41, %v1550_v48  ;;  %v1559_v62 = vrot.slane %v1542_v41, %v1558_v50  ;;  %v1547_v3 = vrot.slane %v1542_v41, %v1546_v53  ;;  %v1555_v8 = vrot.slane %v1542_v41, %v1554_v52  ;;  %v2171_v1 = vld [vmem:[%s2968_s4] ss:$0 sm:$0xff] }
 0x19e   : > { %2215 = vmatpush3.bf16.msra.mxu0 %v2536_v31 }
 0x19f   : > { %2237 = vmatpush3.bf16.msra.mxu1 %v2537_v32  ;;  %2216 = vmatprep.subr.bf16.mxu0 %v2538_v33  ;;  %v1565_v9 = vadd.f32 %v1551_v60, %v1539_v59  ;;  %v1567_v10 = vadd.f32 %v1559_v62, %v1541_v61  ;;  %v1564_v11 = vadd.f32 %v1547_v3, %v1538_v2 }
 0x1a0   : > { %2238 = vmatprep.subr.bf16.mxu1 %v2539_v34  ;;  %v1566_v12 = vadd.f32 %v1555_v8, %v1540_v4 }
 0x1a1   : > { %v1569_v13 = vmax.f32 %v1565_v9, 0.0  ;;  %v1571_v14 = vmax.f32 %v1567_v10, 0.0  ;;  %v1568_v15 = vmax.f32 %v1564_v11, 0.0 }
 0x1a2   : > { %2217 = vmatpush3.bf16.msra.mxu0 %v2540_v35  ;;  %v1570_v56 = vmax.f32 %v1566_v12, 0.0 }
 0x1a3   : > { %2239 = vmatpush3.bf16.msra.mxu1 %v2541_v36  ;;  %2218 = vmatprep.subr.bf16.mxu0 %v2542_v38  ;;  %v1573_v17 = vpack.c.bf16 %v1569_v13, %v1569_v13  ;;  %v1575_v18 = vpack.c.bf16 %v1571_v14, %v1571_v14  ;;  %v1572_v5 = vpack.c.bf16 %v1568_v15, %v1568_v15 }
 0x1a4   : > { %2240 = vmatprep.subr.bf16.mxu1 %v2543_v39  ;;  %v1574_v19 = vpack.c.bf16 %v1570_v56, %v1570_v56 }
 0x1a5   : > { %1871 = vmatprep.mubr.bf16.mxu0 %v1573_v17  ;;  %1911 = vmatprep.mubr.bf16.mxu1 %v1575_v18 }
 0x1a6   : > { %2219 = vmatpush3.bf16.msra.mxu0 %v2544_v40 }
 0x1a7   : > { %2241 = vmatpush3.bf16.msra.mxu1 %v2545_v42  ;;  %2220 = vmatprep.subr.bf16.mxu0 %v2546_v44 }
 0x1a8   : > { %2242 = vmatprep.subr.bf16.mxu1 %v2547_v45 }
 0x1aa   : > { %2221 = vmatpush3.bf16.msra.mxu0 %v2548_v46 }
 0x1ab   : > { %2243 = vmatpush3.bf16.msra.mxu1 %v2549_v47  ;;  %2222 = vmatprep.subr.bf16.mxu0 %v2550_v49 }
 0x1ac   : > { %2244 = vmatprep.subr.bf16.mxu1 %v2551_v51 }
 0x1ae   : > { %2223 = vmatpush3.bf16.msra.mxu0 %v2552_v55 }
 0x1af   : > { %2245 = vmatpush3.bf16.msra.mxu1 %v2553_v7 }
 0x1b1   : > { %1872 = vmatmul.mubr.bf16.vlgmr.msra.gmra.mxu0 %v1572_v5 }
 0x1b2   : > { %1912 = vmatmul.mubr.bf16.vlgmr.msra.gmra.mxu1 %v1574_v19 }
 0x271   : > { %v2224_v54 = vpop.f32.mrf.mxu0 }
 0x272   : > { %v2246_v20 = vpop.f32.mrf.mxu1 }
 0x273   : > { %v2225_v21 = vpop.f32.mrf.mxu0 }
 0x274   : > { %v2247_v6 = vpop.f32.mrf.mxu1  ;;  %v2226_v22 = vadd.f32 %v2225_v21, %v2224_v54 }
 0x275   : > { %v2227_v23 = vpop.f32.mrf.mxu0  ;;  %v2248_v16 = vadd.f32 %v2247_v6, %v2246_v20 }
 0x276   : > { %v2249_v24 = vpop.f32.mrf.mxu1  ;;  %v1874_v25 = vadd.f32 %v2226_v22, %v2171_v1 }
 0x277   : > { %v2228_v26 = vpop.f32.mrf.mxu0 }
 0x278   : > { %v2250_v27 = vpop.f32.mrf.mxu1  ;;  %v1914_v28 = vadd.f32 %v2248_v16, %v1874_v25 }
 0x27a   : > { %1919 = vst [vmem:[%s2969_s5] sm:$0xff] %v1914_v28 }
 0x27b PF: > { %s15_s20 = sadd.s32 1, %s2576_s20   ;;  %s2970_s18 = smov %s2572_s19 }
 0x27c   : > { %p12_p11 = scmp.ge.s32.totalorder %s15_s20, 7   ;;  %s2971_s19 = smov %s2973_s21 }
 0x27e   :  { %14 = sbr.rel (!%p12_p11) target bundleno = 2 (0x2), region = 85 }

</bundles_post_ra>
